<compile_context>
chip_gen: v5e
topology: v5e:2x2
jax: 0.10.0
libtpu: 0.0.40
codegen_flags: <defaults>
</compile_context>

<pallas_src>
import jax
import jax.numpy as jnp
from jax import lax
from jax.experimental import pallas as pl
from jax.experimental.pallas import tpu as pltpu


def _round_up(a, b):
    return ((a + b - 1) // b) * b


def _make_mlp_kernel(ch, n_chunks, n_hidden, n_out, lanes):
    """ch: rows (of 128 samples) per inner chunk; n_chunks: inner trip count."""

    def kernel(x_ref, w1d_ref, b1d_ref, w2_ref, b2_ref, w3_ref, b3_ref,
               o_ref, h1_ref):
        # ---- Pass 1: de-interleave + layer 1 (MXU) + ReLU -------------------
        # x_ref:   (TRX, 256)        128 samples/row, features interleaved
        # w1d_ref: (256, 1280)       w1d[2p+f, 128m+p] = w1[m, f]
        # h1_ref:  (TRX, 1280)       column 128m+p = ReLU(layer1)[unit m, sample p]
        h1_ref[...] = jnp.maximum(
            jnp.dot(x_ref[...], w1d_ref[...],
                    preferred_element_type=jnp.float32) + b1d_ref[...],
            0.0)

        # ---- Pass 2: layers 2 & 3 as VPU AXPYs over lane-dense slabs --------
        # Hoist every scalar weight/bias out of the loop (cheap SMEM reads).
        w2 = [[w2_ref[m, k] for k in range(n_hidden)] for m in range(n_hidden)]
        b2 = [b2_ref[0, m] for m in range(n_hidden)]
        w3 = [[w3_ref[m, k] for k in range(n_hidden)] for m in range(n_out)]
        b3 = [b3_ref[0, m] for m in range(n_out)]

        def chunk(c, carry):
            r0 = pl.multiple_of(c * ch, ch)
            h1 = h1_ref[pl.ds(r0, ch), :]                       # (ch, 1280)
            h1s = [h1[:, lanes * k: lanes * (k + 1)]            # 10 x (ch, 128)
                   for k in range(n_hidden)]
            h2s = []
            for m in range(n_hidden):
                acc = h1s[0] * w2[m][0]
                for k in range(1, n_hidden):
                    acc = acc + h1s[k] * w2[m][k]
                h2s.append(jnp.maximum(acc + b2[m], 0.0))
            for j in range(n_out):
                acc = h2s[0] * w3[j][0]
                for k in range(1, n_hidden):
                    acc = acc + h2s[k] * w3[j][k]
                o_ref[j, pl.ds(r0, ch), :] = acc + b3[j]        # lane-dense store
            return carry

        lax.fori_loop(0, n_chunks, chunk, 0)

    return kernel


def spiral_model_v0(x, params, *, tile_samples=65536, feature_major_output=False):
    """Forward pass of SpiralModelV0.

    x: (N, 2) float32, params in PyTorch layout (w: (out, in), b: (out,)).
    Returns (N, 3) float32 (or (3, N) when feature_major_output=True).
    tile_samples: samples per grid step; sweep 64K-256K (keep <=256K on v7x).
    """
    n, in_f = x.shape
    assert in_f == 2
    w1, b1 = params["w1"].astype(jnp.float32), params["b1"].astype(jnp.float32)
    w2, b2 = params["w2"].astype(jnp.float32), params["b2"].astype(jnp.float32)
    w3, b3 = params["w3"].astype(jnp.float32), params["b3"].astype(jnp.float32)
    n_hidden, n_out = w1.shape[0], w3.shape[0]
    lanes = 128

    # Pad the batch up to a whole 128-sample row.  When n % 128 == 0 (the usual
    # production case) the reshape below is a free view; otherwise only a tiny
    # flat tail pad is materialized.
    n_pad = _round_up(n, lanes)
    x_flat = x.reshape(-1)
    if n_pad != n:
        x_flat = jnp.pad(x_flat, (0, 2 * (n_pad - n)))
    rows = n_pad // lanes
    x2d = x_flat.reshape(rows, 2 * lanes)              # (rows, 256), interleaved

    # Tile choice: large (>=64K samples) for DMA efficiency, but keep >=2 grid
    # steps when the batch allows it so v7x's two TensorCores both get work.
    assert tile_samples % 1024 == 0
    if n_pad >= 2048:
        tn = min(tile_samples, 1024 * pl.cdiv(n_pad, 2048))
    else:
        tn = n_pad
    trx = tn // lanes                                   # rows per grid step
    grid = (pl.cdiv(rows, trx),)
    ch = next(c for c in (8, 4, 2, 1) if trx % c == 0)  # rows per inner chunk
    n_chunks = trx // ch

    # Layer-1 weights scattered so a single MXU matmul de-interleaves the two
    # features and applies layer 1:  w1d[2p + f, 128*m + p] = w1[m, f].
    eye = jnp.eye(lanes, dtype=jnp.float32)
    w1d = jnp.einsum("mf,pq->pfmq", w1, eye).reshape(2 * lanes, n_hidden * lanes)
    b1d = jnp.repeat(b1, lanes).reshape(1, n_hidden * lanes)

    kernel = _make_mlp_kernel(ch, n_chunks, n_hidden, n_out, lanes)

    # VMEM footprint: double-buffered x / out blocks, h1 scratch, resident w1d.
    vmem_need = (2 * trx * 2 * lanes * 4
                 + 2 * n_out * trx * lanes * 4
                 + trx * n_hidden * lanes * 4
                 + 2 * w1d.size * 4 + 4 * b1d.size)
    vmem_limit = int(min(100 * 2**20, max(32 * 2**20, vmem_need + 16 * 2**20)))

    cost = pl.CostEstimate(
        flops=2 * n_pad * (2 * n_hidden + n_hidden * n_hidden + n_hidden * n_out)
        + 3 * n_pad * n_hidden,
        transcendentals=0,
        bytes_accessed=4 * (x2d.size + n_out * n_pad + w1d.size + b1d.size
                            + w2.size + b2.size + w3.size + b3.size),
    )

    smem = pltpu.MemorySpace.SMEM
    const = lambda i: (0, 0)
    out = pl.pallas_call(
        kernel,
        out_shape=jax.ShapeDtypeStruct((n_out, rows, lanes), jnp.float32),
        grid=grid,
        in_specs=[
            pl.BlockSpec((trx, 2 * lanes), lambda i: (i, 0)),     # streamed x tile
            pl.BlockSpec(w1d.shape, const),                       # VMEM-resident
            pl.BlockSpec(b1d.shape, const),
            pl.BlockSpec(w2.shape, const, memory_space=smem),     # scalar tables
            pl.BlockSpec((1, n_hidden), const, memory_space=smem),
            pl.BlockSpec(w3.shape, const, memory_space=smem),
            pl.BlockSpec((1, n_out), const, memory_space=smem),
        ],
        out_specs=pl.BlockSpec((n_out, trx, lanes), lambda i: (0, i, 0)),
        scratch_shapes=[pltpu.VMEM((trx, n_hidden * lanes), jnp.float32)],
        compiler_params=pltpu.CompilerParams(
            dimension_semantics=("parallel",),      # 2 TCs on v7x; no-op v5e/v6e
            vmem_limit_bytes=vmem_limit,
        ),
        cost_estimate=cost,
    )(x2d, w1d, b1d, w2, b2.reshape(1, -1), w3, b3.reshape(1, -1))

    out = out.reshape(n_out, n_pad)[:, :n]          # (3, N), class-major
    if feature_major_output:
        return out                                   # zero extra HBM passes
    return out.T                                     # (N, 3): matches nn.Module


def init_params(key):
    """nn.Linear-style init (uniform +/- 1/sqrt(fan_in)), PyTorch weight layout."""
    def linear(key, fan_in, fan_out):
        kw, kb = jax.random.split(key)
        bound = 1.0 / jnp.sqrt(jnp.float32(fan_in))
        w = jax.random.uniform(kw, (fan_out, fan_in), jnp.float32, -bound, bound)
        b = jax.random.uniform(kb, (fan_out,), jnp.float32, -bound, bound)
        return w, b

    k1, k2, k3 = jax.random.split(key, 3)
    w1, b1 = linear(k1, 2, 10)
    w2, b2 = linear(k2, 10, 10)
    w3, b3 = linear(k3, 10, 3)
    return {"w1": w1, "b1": b1, "w2": w2, "b2": b2, "w3": w3, "b3": b3}


def reference(x, p):
    h1 = jnp.maximum(x @ p["w1"].T + p["b1"], 0.0)
    h2 = jnp.maximum(h1 @ p["w2"].T + p["b2"], 0.0)
    return h2 @ p["w3"].T + p["b3"]


if __name__ == "__main__":
    key = jax.random.PRNGKey(0)
    kx, kp, kx2 = jax.random.split(key, 3)
    params = init_params(kp)

    # Small shape consistent with the module: batch=8, in_features=2.
    x = jax.random.normal(kx, (8, 2), jnp.float32)
    out = jax.block_until_ready(spiral_model_v0(x, params))
    ref = reference(x, params)
    assert out.shape == (8, 3)
    assert jnp.allclose(out, ref, atol=1e-4, rtol=1e-4)

    # Multi-block case: exercises the cdiv grid and a partial last block.
    x2 = jax.random.normal(kx2, (2500, 2), jnp.float32)
    out2 = jax.block_until_ready(spiral_model_v0(x2, params))
    ref2 = reference(x2, params)
    assert out2.shape == (2500, 3)
    assert jnp.allclose(out2, ref2, atol=1e-4, rtol=1e-4)

    print("KERNEL_OK")
</pallas_src>

<mosaic_0001>
module attributes {stable_mosaic.version = 11 : i64} {
  func.func @kernel(%arg0: i32, %arg1: memref<1x256xf32, #tpu.memory_space<vmem>>, %arg2: memref<256x1280xf32, #tpu.memory_space<vmem>>, %arg3: memref<1x1280xf32, #tpu.memory_space<vmem>>, %arg4: memref<10x10xf32, #tpu.memory_space<smem>>, %arg5: memref<1x10xf32, #tpu.memory_space<smem>>, %arg6: memref<3x10xf32, #tpu.memory_space<smem>>, %arg7: memref<1x3xf32, #tpu.memory_space<smem>>, %arg8: memref<3x1x128xf32, #tpu.memory_space<vmem>>, %arg9: memref<1x1280xf32, #tpu.memory_space<vmem>>) attributes {dimension_semantics = [#tpu.dimension_semantics<parallel>], iteration_bounds = array<i64: 1>, scalar_prefetch = 0 : i64, scratch_operands = 1 : i64, tpu.core_type = #tpu.core_type<tc>, window_params = [{transform_indices = @transform_0, window_bounds = array<i64: 1, 256>}, {pipeline_mode = #tpu.pipeline_mode<synchronous>, transform_indices = @transform_1, window_bounds = array<i64: 256, 1280>}, {pipeline_mode = #tpu.pipeline_mode<synchronous>, transform_indices = @transform_2, window_bounds = array<i64: 1, 1280>}, {transform_indices = @transform_3, window_bounds = array<i64: 10, 10>}, {transform_indices = @transform_4, window_bounds = array<i64: 1, 10>}, {transform_indices = @transform_5, window_bounds = array<i64: 3, 10>}, {transform_indices = @transform_6, window_bounds = array<i64: 1, 3>}, {transform_indices = @transform_7, window_bounds = array<i64: 3, 1, 128>}]} {
    %c0 = arith.constant 0 : index
    %c0_0 = arith.constant 0 : index
    %0 = vector.load %arg1[%c0, %c0_0] : memref<1x256xf32, #tpu.memory_space<vmem>>, vector<1x256xf32>
    %c0_1 = arith.constant 0 : index
    %c0_2 = arith.constant 0 : index
    %1 = vector.load %arg2[%c0_1, %c0_2] : memref<256x1280xf32, #tpu.memory_space<vmem>>, vector<256x1280xf32>
    %cst = arith.constant dense<0.000000e+00> : vector<1x1280xf32>
    %2 = tpu.matmul %0, %1, %cst {dimension_numbers = #tpu.dot_dimension_numbers<[1], [0], [0], [1], [0, 0, 1, 1], [], []>} : vector<1x256xf32>, vector<256x1280xf32>, vector<1x1280xf32> -> vector<1x1280xf32>
    %c0_3 = arith.constant 0 : index
    %c0_4 = arith.constant 0 : index
    %3 = vector.load %arg3[%c0_3, %c0_4] : memref<1x1280xf32, #tpu.memory_space<vmem>>, vector<1x1280xf32>
    %4 = arith.addf %2, %3 : vector<1x1280xf32>
    %cst_5 = arith.constant 0.000000e+00 : f32
    %5 = vector.broadcast %cst_5 : f32 to vector<1x1280xf32>
    %6 = arith.maximumf %4, %5 : vector<1x1280xf32>
    %c0_6 = arith.constant 0 : index
    %c0_7 = arith.constant 0 : index
    %7 = vector.load %arg9[%c0_6, %c0_7] : memref<1x1280xf32, #tpu.memory_space<vmem>>, vector<1x1280xf32>
    tpu.vector_store %arg9[%c0_6, %c0_7], %6 {strides = array<i32>} : memref<1x1280xf32, #tpu.memory_space<vmem>>, vector<1x1280xf32>,
    %c0_8 = arith.constant 0 : index
    %c0_9 = arith.constant 0 : index
    %8 = memref.load %arg4[%c0_8, %c0_9] : memref<10x10xf32, #tpu.memory_space<smem>>
    %c0_10 = arith.constant 0 : index
    %c1 = arith.constant 1 : index
    %9 = memref.load %arg4[%c0_10, %c1] : memref<10x10xf32, #tpu.memory_space<smem>>
    %c0_11 = arith.constant 0 : index
    %c2 = arith.constant 2 : index
    %10 = memref.load %arg4[%c0_11, %c2] : memref<10x10xf32, #tpu.memory_space<smem>>
    %c0_12 = arith.constant 0 : index
    %c3 = arith.constant 3 : index
    %11 = memref.load %arg4[%c0_12, %c3] : memref<10x10xf32, #tpu.memory_space<smem>>
    %c0_13 = arith.constant 0 : index
    %c4 = arith.constant 4 : index
    %12 = memref.load %arg4[%c0_13, %c4] : memref<10x10xf32, #tpu.memory_space<smem>>
    %c0_14 = arith.constant 0 : index
    %c5 = arith.constant 5 : index
    %13 = memref.load %arg4[%c0_14, %c5] : memref<10x10xf32, #tpu.memory_space<smem>>
    %c0_15 = arith.constant 0 : index
    %c6 = arith.constant 6 : index
    %14 = memref.load %arg4[%c0_15, %c6] : memref<10x10xf32, #tpu.memory_space<smem>>
    %c0_16 = arith.constant 0 : index
    %c7 = arith.constant 7 : index
    %15 = memref.load %arg4[%c0_16, %c7] : memref<10x10xf32, #tpu.memory_space<smem>>
    %c0_17 = arith.constant 0 : index
    %c8 = arith.constant 8 : index
    %16 = memref.load %arg4[%c0_17, %c8] : memref<10x10xf32, #tpu.memory_space<smem>>
    %c0_18 = arith.constant 0 : index
    %c9 = arith.constant 9 : index
    %17 = memref.load %arg4[%c0_18, %c9] : memref<10x10xf32, #tpu.memory_space<smem>>
    %c1_19 = arith.constant 1 : index
    %c0_20 = arith.constant 0 : index
    %18 = memref.load %arg4[%c1_19, %c0_20] : memref<10x10xf32, #tpu.memory_space<smem>>
    %c1_21 = arith.constant 1 : index
    %c1_22 = arith.constant 1 : index
    %19 = memref.load %arg4[%c1_21, %c1_22] : memref<10x10xf32, #tpu.memory_space<smem>>
    %c1_23 = arith.constant 1 : index
    %c2_24 = arith.constant 2 : index
    %20 = memref.load %arg4[%c1_23, %c2_24] : memref<10x10xf32, #tpu.memory_space<smem>>
    %c1_25 = arith.constant 1 : index
    %c3_26 = arith.constant 3 : index
    %21 = memref.load %arg4[%c1_25, %c3_26] : memref<10x10xf32, #tpu.memory_space<smem>>
    %c1_27 = arith.constant 1 : index
    %c4_28 = arith.constant 4 : index
    %22 = memref.load %arg4[%c1_27, %c4_28] : memref<10x10xf32, #tpu.memory_space<smem>>
    %c1_29 = arith.constant 1 : index
    %c5_30 = arith.constant 5 : index
    %23 = memref.load %arg4[%c1_29, %c5_30] : memref<10x10xf32, #tpu.memory_space<smem>>
    %c1_31 = arith.constant 1 : index
    %c6_32 = arith.constant 6 : index
    %24 = memref.load %arg4[%c1_31, %c6_32] : memref<10x10xf32, #tpu.memory_space<smem>>
    %c1_33 = arith.constant 1 : index
    %c7_34 = arith.constant 7 : index
    %25 = memref.load %arg4[%c1_33, %c7_34] : memref<10x10xf32, #tpu.memory_space<smem>>
    %c1_35 = arith.constant 1 : index
    %c8_36 = arith.constant 8 : index
    %26 = memref.load %arg4[%c1_35, %c8_36] : memref<10x10xf32, #tpu.memory_space<smem>>
    %c1_37 = arith.constant 1 : index
    %c9_38 = arith.constant 9 : index
    %27 = memref.load %arg4[%c1_37, %c9_38] : memref<10x10xf32, #tpu.memory_space<smem>>
    %c2_39 = arith.constant 2 : index
    %c0_40 = arith.constant 0 : index
    %28 = memref.load %arg4[%c2_39, %c0_40] : memref<10x10xf32, #tpu.memory_space<smem>>
    %c2_41 = arith.constant 2 : index
    %c1_42 = arith.constant 1 : index
    %29 = memref.load %arg4[%c2_41, %c1_42] : memref<10x10xf32, #tpu.memory_space<smem>>
    %c2_43 = arith.constant 2 : index
    %c2_44 = arith.constant 2 : index
    %30 = memref.load %arg4[%c2_43, %c2_44] : memref<10x10xf32, #tpu.memory_space<smem>>
    %c2_45 = arith.constant 2 : index
    %c3_46 = arith.constant 3 : index
    %31 = memref.load %arg4[%c2_45, %c3_46] : memref<10x10xf32, #tpu.memory_space<smem>>
    %c2_47 = arith.constant 2 : index
    %c4_48 = arith.constant 4 : index
    %32 = memref.load %arg4[%c2_47, %c4_48] : memref<10x10xf32, #tpu.memory_space<smem>>
    %c2_49 = arith.constant 2 : index
    %c5_50 = arith.constant 5 : index
    %33 = memref.load %arg4[%c2_49, %c5_50] : memref<10x10xf32, #tpu.memory_space<smem>>
    %c2_51 = arith.constant 2 : index
    %c6_52 = arith.constant 6 : index
    %34 = memref.load %arg4[%c2_51, %c6_52] : memref<10x10xf32, #tpu.memory_space<smem>>
    %c2_53 = arith.constant 2 : index
    %c7_54 = arith.constant 7 : index
    %35 = memref.load %arg4[%c2_53, %c7_54] : memref<10x10xf32, #tpu.memory_space<smem>>
    %c2_55 = arith.constant 2 : index
    %c8_56 = arith.constant 8 : index
    %36 = memref.load %arg4[%c2_55, %c8_56] : memref<10x10xf32, #tpu.memory_space<smem>>
    %c2_57 = arith.constant 2 : index
    %c9_58 = arith.constant 9 : index
    %37 = memref.load %arg4[%c2_57, %c9_58] : memref<10x10xf32, #tpu.memory_space<smem>>
    %c3_59 = arith.constant 3 : index
    %c0_60 = arith.constant 0 : index
    %38 = memref.load %arg4[%c3_59, %c0_60] : memref<10x10xf32, #tpu.memory_space<smem>>
    %c3_61 = arith.constant 3 : index
    %c1_62 = arith.constant 1 : index
    %39 = memref.load %arg4[%c3_61, %c1_62] : memref<10x10xf32, #tpu.memory_space<smem>>
    %c3_63 = arith.constant 3 : index
    %c2_64 = arith.constant 2 : index
    %40 = memref.load %arg4[%c3_63, %c2_64] : memref<10x10xf32, #tpu.memory_space<smem>>
    %c3_65 = arith.constant 3 : index
    %c3_66 = arith.constant 3 : index
    %41 = memref.load %arg4[%c3_65, %c3_66] : memref<10x10xf32, #tpu.memory_space<smem>>
    %c3_67 = arith.constant 3 : index
    %c4_68 = arith.constant 4 : index
    %42 = memref.load %arg4[%c3_67, %c4_68] : memref<10x10xf32, #tpu.memory_space<smem>>
    %c3_69 = arith.constant 3 : index
    %c5_70 = arith.constant 5 : index
    %43 = memref.load %arg4[%c3_69, %c5_70] : memref<10x10xf32, #tpu.memory_space<smem>>
    %c3_71 = arith.constant 3 : index
    %c6_72 = arith.constant 6 : index
    %44 = memref.load %arg4[%c3_71, %c6_72] : memref<10x10xf32, #tpu.memory_space<smem>>
    %c3_73 = arith.constant 3 : index
    %c7_74 = arith.constant 7 : index
    %45 = memref.load %arg4[%c3_73, %c7_74] : memref<10x10xf32, #tpu.memory_space<smem>>
    %c3_75 = arith.constant 3 : index
    %c8_76 = arith.constant 8 : index
    %46 = memref.load %arg4[%c3_75, %c8_76] : memref<10x10xf32, #tpu.memory_space<smem>>
    %c3_77 = arith.constant 3 : index
    %c9_78 = arith.constant 9 : index
    %47 = memref.load %arg4[%c3_77, %c9_78] : memref<10x10xf32, #tpu.memory_space<smem>>
    %c4_79 = arith.constant 4 : index
    %c0_80 = arith.constant 0 : index
    %48 = memref.load %arg4[%c4_79, %c0_80] : memref<10x10xf32, #tpu.memory_space<smem>>
    %c4_81 = arith.constant 4 : index
    %c1_82 = arith.constant 1 : index
    %49 = memref.load %arg4[%c4_81, %c1_82] : memref<10x10xf32, #tpu.memory_space<smem>>
    %c4_83 = arith.constant 4 : index
    %c2_84 = arith.constant 2 : index
    %50 = memref.load %arg4[%c4_83, %c2_84] : memref<10x10xf32, #tpu.memory_space<smem>>
    %c4_85 = arith.constant 4 : index
    %c3_86 = arith.constant 3 : index
    %51 = memref.load %arg4[%c4_85, %c3_86] : memref<10x10xf32, #tpu.memory_space<smem>>
    %c4_87 = arith.constant 4 : index
    %c4_88 = arith.constant 4 : index
    %52 = memref.load %arg4[%c4_87, %c4_88] : memref<10x10xf32, #tpu.memory_space<smem>>
    %c4_89 = arith.constant 4 : index
    %c5_90 = arith.constant 5 : index
    %53 = memref.load %arg4[%c4_89, %c5_90] : memref<10x10xf32, #tpu.memory_space<smem>>
    %c4_91 = arith.constant 4 : index
    %c6_92 = arith.constant 6 : index
    %54 = memref.load %arg4[%c4_91, %c6_92] : memref<10x10xf32, #tpu.memory_space<smem>>
    %c4_93 = arith.constant 4 : index
    %c7_94 = arith.constant 7 : index
    %55 = memref.load %arg4[%c4_93, %c7_94] : memref<10x10xf32, #tpu.memory_space<smem>>
    %c4_95 = arith.constant 4 : index
    %c8_96 = arith.constant 8 : index
    %56 = memref.load %arg4[%c4_95, %c8_96] : memref<10x10xf32, #tpu.memory_space<smem>>
    %c4_97 = arith.constant 4 : index
    %c9_98 = arith.constant 9 : index
    %57 = memref.load %arg4[%c4_97, %c9_98] : memref<10x10xf32, #tpu.memory_space<smem>>
    %c5_99 = arith.constant 5 : index
    %c0_100 = arith.constant 0 : index
    %58 = memref.load %arg4[%c5_99, %c0_100] : memref<10x10xf32, #tpu.memory_space<smem>>
    %c5_101 = arith.constant 5 : index
    %c1_102 = arith.constant 1 : index
    %59 = memref.load %arg4[%c5_101, %c1_102] : memref<10x10xf32, #tpu.memory_space<smem>>
    %c5_103 = arith.constant 5 : index
    %c2_104 = arith.constant 2 : index
    %60 = memref.load %arg4[%c5_103, %c2_104] : memref<10x10xf32, #tpu.memory_space<smem>>
    %c5_105 = arith.constant 5 : index
    %c3_106 = arith.constant 3 : index
    %61 = memref.load %arg4[%c5_105, %c3_106] : memref<10x10xf32, #tpu.memory_space<smem>>
    %c5_107 = arith.constant 5 : index
    %c4_108 = arith.constant 4 : index
    %62 = memref.load %arg4[%c5_107, %c4_108] : memref<10x10xf32, #tpu.memory_space<smem>>
    %c5_109 = arith.constant 5 : index
    %c5_110 = arith.constant 5 : index
    %63 = memref.load %arg4[%c5_109, %c5_110] : memref<10x10xf32, #tpu.memory_space<smem>>
    %c5_111 = arith.constant 5 : index
    %c6_112 = arith.constant 6 : index
    %64 = memref.load %arg4[%c5_111, %c6_112] : memref<10x10xf32, #tpu.memory_space<smem>>
    %c5_113 = arith.constant 5 : index
    %c7_114 = arith.constant 7 : index
    %65 = memref.load %arg4[%c5_113, %c7_114] : memref<10x10xf32, #tpu.memory_space<smem>>
    %c5_115 = arith.constant 5 : index
    %c8_116 = arith.constant 8 : index
    %66 = memref.load %arg4[%c5_115, %c8_116] : memref<10x10xf32, #tpu.memory_space<smem>>
    %c5_117 = arith.constant 5 : index
    %c9_118 = arith.constant 9 : index
    %67 = memref.load %arg4[%c5_117, %c9_118] : memref<10x10xf32, #tpu.memory_space<smem>>
    %c6_119 = arith.constant 6 : index
    %c0_120 = arith.constant 0 : index
    %68 = memref.load %arg4[%c6_119, %c0_120] : memref<10x10xf32, #tpu.memory_space<smem>>
    %c6_121 = arith.constant 6 : index
    %c1_122 = arith.constant 1 : index
    %69 = memref.load %arg4[%c6_121, %c1_122] : memref<10x10xf32, #tpu.memory_space<smem>>
    %c6_123 = arith.constant 6 : index
    %c2_124 = arith.constant 2 : index
    %70 = memref.load %arg4[%c6_123, %c2_124] : memref<10x10xf32, #tpu.memory_space<smem>>
    %c6_125 = arith.constant 6 : index
    %c3_126 = arith.constant 3 : index
    %71 = memref.load %arg4[%c6_125, %c3_126] : memref<10x10xf32, #tpu.memory_space<smem>>
    %c6_127 = arith.constant 6 : index
    %c4_128 = arith.constant 4 : index
    %72 = memref.load %arg4[%c6_127, %c4_128] : memref<10x10xf32, #tpu.memory_space<smem>>
    %c6_129 = arith.constant 6 : index
    %c5_130 = arith.constant 5 : index
    %73 = memref.load %arg4[%c6_129, %c5_130] : memref<10x10xf32, #tpu.memory_space<smem>>
    %c6_131 = arith.constant 6 : index
    %c6_132 = arith.constant 6 : index
    %74 = memref.load %arg4[%c6_131, %c6_132] : memref<10x10xf32, #tpu.memory_space<smem>>
    %c6_133 = arith.constant 6 : index
    %c7_134 = arith.constant 7 : index
    %75 = memref.load %arg4[%c6_133, %c7_134] : memref<10x10xf32, #tpu.memory_space<smem>>
    %c6_135 = arith.constant 6 : index
    %c8_136 = arith.constant 8 : index
    %76 = memref.load %arg4[%c6_135, %c8_136] : memref<10x10xf32, #tpu.memory_space<smem>>
    %c6_137 = arith.constant 6 : index
    %c9_138 = arith.constant 9 : index
    %77 = memref.load %arg4[%c6_137, %c9_138] : memref<10x10xf32, #tpu.memory_space<smem>>
    %c7_139 = arith.constant 7 : index
    %c0_140 = arith.constant 0 : index
    %78 = memref.load %arg4[%c7_139, %c0_140] : memref<10x10xf32, #tpu.memory_space<smem>>
    %c7_141 = arith.constant 7 : index
    %c1_142 = arith.constant 1 : index
    %79 = memref.load %arg4[%c7_141, %c1_142] : memref<10x10xf32, #tpu.memory_space<smem>>
    %c7_143 = arith.constant 7 : index
    %c2_144 = arith.constant 2 : index
    %80 = memref.load %arg4[%c7_143, %c2_144] : memref<10x10xf32, #tpu.memory_space<smem>>
    %c7_145 = arith.constant 7 : index
    %c3_146 = arith.constant 3 : index
    %81 = memref.load %arg4[%c7_145, %c3_146] : memref<10x10xf32, #tpu.memory_space<smem>>
    %c7_147 = arith.constant 7 : index
    %c4_148 = arith.constant 4 : index
    %82 = memref.load %arg4[%c7_147, %c4_148] : memref<10x10xf32, #tpu.memory_space<smem>>
    %c7_149 = arith.constant 7 : index
    %c5_150 = arith.constant 5 : index
    %83 = memref.load %arg4[%c7_149, %c5_150] : memref<10x10xf32, #tpu.memory_space<smem>>
    %c7_151 = arith.constant 7 : index
    %c6_152 = arith.constant 6 : index
    %84 = memref.load %arg4[%c7_151, %c6_152] : memref<10x10xf32, #tpu.memory_space<smem>>
    %c7_153 = arith.constant 7 : index
    %c7_154 = arith.constant 7 : index
    %85 = memref.load %arg4[%c7_153, %c7_154] : memref<10x10xf32, #tpu.memory_space<smem>>
    %c7_155 = arith.constant 7 : index
    %c8_156 = arith.constant 8 : index
    %86 = memref.load %arg4[%c7_155, %c8_156] : memref<10x10xf32, #tpu.memory_space<smem>>
    %c7_157 = arith.constant 7 : index
    %c9_158 = arith.constant 9 : index
    %87 = memref.load %arg4[%c7_157, %c9_158] : memref<10x10xf32, #tpu.memory_space<smem>>
    %c8_159 = arith.constant 8 : index
    %c0_160 = arith.constant 0 : index
    %88 = memref.load %arg4[%c8_159, %c0_160] : memref<10x10xf32, #tpu.memory_space<smem>>
    %c8_161 = arith.constant 8 : index
    %c1_162 = arith.constant 1 : index
    %89 = memref.load %arg4[%c8_161, %c1_162] : memref<10x10xf32, #tpu.memory_space<smem>>
    %c8_163 = arith.constant 8 : index
    %c2_164 = arith.constant 2 : index
    %90 = memref.load %arg4[%c8_163, %c2_164] : memref<10x10xf32, #tpu.memory_space<smem>>
    %c8_165 = arith.constant 8 : index
    %c3_166 = arith.constant 3 : index
    %91 = memref.load %arg4[%c8_165, %c3_166] : memref<10x10xf32, #tpu.memory_space<smem>>
    %c8_167 = arith.constant 8 : index
    %c4_168 = arith.constant 4 : index
    %92 = memref.load %arg4[%c8_167, %c4_168] : memref<10x10xf32, #tpu.memory_space<smem>>
    %c8_169 = arith.constant 8 : index
    %c5_170 = arith.constant 5 : index
    %93 = memref.load %arg4[%c8_169, %c5_170] : memref<10x10xf32, #tpu.memory_space<smem>>
    %c8_171 = arith.constant 8 : index
    %c6_172 = arith.constant 6 : index
    %94 = memref.load %arg4[%c8_171, %c6_172] : memref<10x10xf32, #tpu.memory_space<smem>>
    %c8_173 = arith.constant 8 : index
    %c7_174 = arith.constant 7 : index
    %95 = memref.load %arg4[%c8_173, %c7_174] : memref<10x10xf32, #tpu.memory_space<smem>>
    %c8_175 = arith.constant 8 : index
    %c8_176 = arith.constant 8 : index
    %96 = memref.load %arg4[%c8_175, %c8_176] : memref<10x10xf32, #tpu.memory_space<smem>>
    %c8_177 = arith.constant 8 : index
    %c9_178 = arith.constant 9 : index
    %97 = memref.load %arg4[%c8_177, %c9_178] : memref<10x10xf32, #tpu.memory_space<smem>>
    %c9_179 = arith.constant 9 : index
    %c0_180 = arith.constant 0 : index
    %98 = memref.load %arg4[%c9_179, %c0_180] : memref<10x10xf32, #tpu.memory_space<smem>>
    %c9_181 = arith.constant 9 : index
    %c1_182 = arith.constant 1 : index
    %99 = memref.load %arg4[%c9_181, %c1_182] : memref<10x10xf32, #tpu.memory_space<smem>>
    %c9_183 = arith.constant 9 : index
    %c2_184 = arith.constant 2 : index
    %100 = memref.load %arg4[%c9_183, %c2_184] : memref<10x10xf32, #tpu.memory_space<smem>>
    %c9_185 = arith.constant 9 : index
    %c3_186 = arith.constant 3 : index
    %101 = memref.load %arg4[%c9_185, %c3_186] : memref<10x10xf32, #tpu.memory_space<smem>>
    %c9_187 = arith.constant 9 : index
    %c4_188 = arith.constant 4 : index
    %102 = memref.load %arg4[%c9_187, %c4_188] : memref<10x10xf32, #tpu.memory_space<smem>>
    %c9_189 = arith.constant 9 : index
    %c5_190 = arith.constant 5 : index
    %103 = memref.load %arg4[%c9_189, %c5_190] : memref<10x10xf32, #tpu.memory_space<smem>>
    %c9_191 = arith.constant 9 : index
    %c6_192 = arith.constant 6 : index
    %104 = memref.load %arg4[%c9_191, %c6_192] : memref<10x10xf32, #tpu.memory_space<smem>>
    %c9_193 = arith.constant 9 : index
    %c7_194 = arith.constant 7 : index
    %105 = memref.load %arg4[%c9_193, %c7_194] : memref<10x10xf32, #tpu.memory_space<smem>>
    %c9_195 = arith.constant 9 : index
    %c8_196 = arith.constant 8 : index
    %106 = memref.load %arg4[%c9_195, %c8_196] : memref<10x10xf32, #tpu.memory_space<smem>>
    %c9_197 = arith.constant 9 : index
    %c9_198 = arith.constant 9 : index
    %107 = memref.load %arg4[%c9_197, %c9_198] : memref<10x10xf32, #tpu.memory_space<smem>>
    %c0_199 = arith.constant 0 : index
    %c0_200 = arith.constant 0 : index
    %108 = memref.load %arg5[%c0_199, %c0_200] : memref<1x10xf32, #tpu.memory_space<smem>>
    %c0_201 = arith.constant 0 : index
    %c1_202 = arith.constant 1 : index
    %109 = memref.load %arg5[%c0_201, %c1_202] : memref<1x10xf32, #tpu.memory_space<smem>>
    %c0_203 = arith.constant 0 : index
    %c2_204 = arith.constant 2 : index
    %110 = memref.load %arg5[%c0_203, %c2_204] : memref<1x10xf32, #tpu.memory_space<smem>>
    %c0_205 = arith.constant 0 : index
    %c3_206 = arith.constant 3 : index
    %111 = memref.load %arg5[%c0_205, %c3_206] : memref<1x10xf32, #tpu.memory_space<smem>>
    %c0_207 = arith.constant 0 : index
    %c4_208 = arith.constant 4 : index
    %112 = memref.load %arg5[%c0_207, %c4_208] : memref<1x10xf32, #tpu.memory_space<smem>>
    %c0_209 = arith.constant 0 : index
    %c5_210 = arith.constant 5 : index
    %113 = memref.load %arg5[%c0_209, %c5_210] : memref<1x10xf32, #tpu.memory_space<smem>>
    %c0_211 = arith.constant 0 : index
    %c6_212 = arith.constant 6 : index
    %114 = memref.load %arg5[%c0_211, %c6_212] : memref<1x10xf32, #tpu.memory_space<smem>>
    %c0_213 = arith.constant 0 : index
    %c7_214 = arith.constant 7 : index
    %115 = memref.load %arg5[%c0_213, %c7_214] : memref<1x10xf32, #tpu.memory_space<smem>>
    %c0_215 = arith.constant 0 : index
    %c8_216 = arith.constant 8 : index
    %116 = memref.load %arg5[%c0_215, %c8_216] : memref<1x10xf32, #tpu.memory_space<smem>>
    %c0_217 = arith.constant 0 : index
    %c9_218 = arith.constant 9 : index
    %117 = memref.load %arg5[%c0_217, %c9_218] : memref<1x10xf32, #tpu.memory_space<smem>>
    %c0_219 = arith.constant 0 : index
    %c0_220 = arith.constant 0 : index
    %118 = memref.load %arg6[%c0_219, %c0_220] : memref<3x10xf32, #tpu.memory_space<smem>>
    %c0_221 = arith.constant 0 : index
    %c1_222 = arith.constant 1 : index
    %119 = memref.load %arg6[%c0_221, %c1_222] : memref<3x10xf32, #tpu.memory_space<smem>>
    %c0_223 = arith.constant 0 : index
    %c2_224 = arith.constant 2 : index
    %120 = memref.load %arg6[%c0_223, %c2_224] : memref<3x10xf32, #tpu.memory_space<smem>>
    %c0_225 = arith.constant 0 : index
    %c3_226 = arith.constant 3 : index
    %121 = memref.load %arg6[%c0_225, %c3_226] : memref<3x10xf32, #tpu.memory_space<smem>>
    %c0_227 = arith.constant 0 : index
    %c4_228 = arith.constant 4 : index
    %122 = memref.load %arg6[%c0_227, %c4_228] : memref<3x10xf32, #tpu.memory_space<smem>>
    %c0_229 = arith.constant 0 : index
    %c5_230 = arith.constant 5 : index
    %123 = memref.load %arg6[%c0_229, %c5_230] : memref<3x10xf32, #tpu.memory_space<smem>>
    %c0_231 = arith.constant 0 : index
    %c6_232 = arith.constant 6 : index
    %124 = memref.load %arg6[%c0_231, %c6_232] : memref<3x10xf32, #tpu.memory_space<smem>>
    %c0_233 = arith.constant 0 : index
    %c7_234 = arith.constant 7 : index
    %125 = memref.load %arg6[%c0_233, %c7_234] : memref<3x10xf32, #tpu.memory_space<smem>>
    %c0_235 = arith.constant 0 : index
    %c8_236 = arith.constant 8 : index
    %126 = memref.load %arg6[%c0_235, %c8_236] : memref<3x10xf32, #tpu.memory_space<smem>>
    %c0_237 = arith.constant 0 : index
    %c9_238 = arith.constant 9 : index
    %127 = memref.load %arg6[%c0_237, %c9_238] : memref<3x10xf32, #tpu.memory_space<smem>>
    %c1_239 = arith.constant 1 : index
    %c0_240 = arith.constant 0 : index
    %128 = memref.load %arg6[%c1_239, %c0_240] : memref<3x10xf32, #tpu.memory_space<smem>>
    %c1_241 = arith.constant 1 : index
    %c1_242 = arith.constant 1 : index
    %129 = memref.load %arg6[%c1_241, %c1_242] : memref<3x10xf32, #tpu.memory_space<smem>>
    %c1_243 = arith.constant 1 : index
    %c2_244 = arith.constant 2 : index
    %130 = memref.load %arg6[%c1_243, %c2_244] : memref<3x10xf32, #tpu.memory_space<smem>>
    %c1_245 = arith.constant 1 : index
    %c3_246 = arith.constant 3 : index
    %131 = memref.load %arg6[%c1_245, %c3_246] : memref<3x10xf32, #tpu.memory_space<smem>>
    %c1_247 = arith.constant 1 : index
    %c4_248 = arith.constant 4 : index
    %132 = memref.load %arg6[%c1_247, %c4_248] : memref<3x10xf32, #tpu.memory_space<smem>>
    %c1_249 = arith.constant 1 : index
    %c5_250 = arith.constant 5 : index
    %133 = memref.load %arg6[%c1_249, %c5_250] : memref<3x10xf32, #tpu.memory_space<smem>>
    %c1_251 = arith.constant 1 : index
    %c6_252 = arith.constant 6 : index
    %134 = memref.load %arg6[%c1_251, %c6_252] : memref<3x10xf32, #tpu.memory_space<smem>>
    %c1_253 = arith.constant 1 : index
    %c7_254 = arith.constant 7 : index
    %135 = memref.load %arg6[%c1_253, %c7_254] : memref<3x10xf32, #tpu.memory_space<smem>>
    %c1_255 = arith.constant 1 : index
    %c8_256 = arith.constant 8 : index
    %136 = memref.load %arg6[%c1_255, %c8_256] : memref<3x10xf32, #tpu.memory_space<smem>>
    %c1_257 = arith.constant 1 : index
    %c9_258 = arith.constant 9 : index
    %137 = memref.load %arg6[%c1_257, %c9_258] : memref<3x10xf32, #tpu.memory_space<smem>>
    %c2_259 = arith.constant 2 : index
    %c0_260 = arith.constant 0 : index
    %138 = memref.load %arg6[%c2_259, %c0_260] : memref<3x10xf32, #tpu.memory_space<smem>>
    %c2_261 = arith.constant 2 : index
    %c1_262 = arith.constant 1 : index
    %139 = memref.load %arg6[%c2_261, %c1_262] : memref<3x10xf32, #tpu.memory_space<smem>>
    %c2_263 = arith.constant 2 : index
    %c2_264 = arith.constant 2 : index
    %140 = memref.load %arg6[%c2_263, %c2_264] : memref<3x10xf32, #tpu.memory_space<smem>>
    %c2_265 = arith.constant 2 : index
    %c3_266 = arith.constant 3 : index
    %141 = memref.load %arg6[%c2_265, %c3_266] : memref<3x10xf32, #tpu.memory_space<smem>>
    %c2_267 = arith.constant 2 : index
    %c4_268 = arith.constant 4 : index
    %142 = memref.load %arg6[%c2_267, %c4_268] : memref<3x10xf32, #tpu.memory_space<smem>>
    %c2_269 = arith.constant 2 : index
    %c5_270 = arith.constant 5 : index
    %143 = memref.load %arg6[%c2_269, %c5_270] : memref<3x10xf32, #tpu.memory_space<smem>>
    %c2_271 = arith.constant 2 : index
    %c6_272 = arith.constant 6 : index
    %144 = memref.load %arg6[%c2_271, %c6_272] : memref<3x10xf32, #tpu.memory_space<smem>>
    %c2_273 = arith.constant 2 : index
    %c7_274 = arith.constant 7 : index
    %145 = memref.load %arg6[%c2_273, %c7_274] : memref<3x10xf32, #tpu.memory_space<smem>>
    %c2_275 = arith.constant 2 : index
    %c8_276 = arith.constant 8 : index
    %146 = memref.load %arg6[%c2_275, %c8_276] : memref<3x10xf32, #tpu.memory_space<smem>>
    %c2_277 = arith.constant 2 : index
    %c9_278 = arith.constant 9 : index
    %147 = memref.load %arg6[%c2_277, %c9_278] : memref<3x10xf32, #tpu.memory_space<smem>>
    %c0_279 = arith.constant 0 : index
    %c0_280 = arith.constant 0 : index
    %148 = memref.load %arg7[%c0_279, %c0_280] : memref<1x3xf32, #tpu.memory_space<smem>>
    %c0_281 = arith.constant 0 : index
    %c1_282 = arith.constant 1 : index
    %149 = memref.load %arg7[%c0_281, %c1_282] : memref<1x3xf32, #tpu.memory_space<smem>>
    %c0_283 = arith.constant 0 : index
    %c2_284 = arith.constant 2 : index
    %150 = memref.load %arg7[%c0_283, %c2_284] : memref<1x3xf32, #tpu.memory_space<smem>>
    %c0_i32 = arith.constant 0 : i32
    %c1_i32 = arith.constant 1 : i32
    %151 = arith.muli %c0_i32, %c1_i32 : i32
    %152 = tpu.assume_multiple %151, 1 : i32
    %153 = arith.index_cast %152 : i32 to index
    %c0_285 = arith.constant 0 : index
    %154 = vector.load %arg9[%153, %c0_285] : memref<1x1280xf32, #tpu.memory_space<vmem>>, vector<1x1280xf32>
    %155 = vector.extract_strided_slice %154 {offsets = [0, 0], sizes = [1, 128], strides = [1, 1]} : vector<1x1280xf32> to vector<1x128xf32>
    %156 = vector.extract_strided_slice %154 {offsets = [0, 128], sizes = [1, 128], strides = [1, 1]} : vector<1x1280xf32> to vector<1x128xf32>
    %157 = vector.extract_strided_slice %154 {offsets = [0, 256], sizes = [1, 128], strides = [1, 1]} : vector<1x1280xf32> to vector<1x128xf32>
    %158 = vector.extract_strided_slice %154 {offsets = [0, 384], sizes = [1, 128], strides = [1, 1]} : vector<1x1280xf32> to vector<1x128xf32>
    %159 = vector.extract_strided_slice %154 {offsets = [0, 512], sizes = [1, 128], strides = [1, 1]} : vector<1x1280xf32> to vector<1x128xf32>
    %160 = vector.extract_strided_slice %154 {offsets = [0, 640], sizes = [1, 128], strides = [1, 1]} : vector<1x1280xf32> to vector<1x128xf32>
    %161 = vector.extract_strided_slice %154 {offsets = [0, 768], sizes = [1, 128], strides = [1, 1]} : vector<1x1280xf32> to vector<1x128xf32>
    %162 = vector.extract_strided_slice %154 {offsets = [0, 896], sizes = [1, 128], strides = [1, 1]} : vector<1x1280xf32> to vector<1x128xf32>
    %163 = vector.extract_strided_slice %154 {offsets = [0, 1024], sizes = [1, 128], strides = [1, 1]} : vector<1x1280xf32> to vector<1x128xf32>
    %164 = vector.extract_strided_slice %154 {offsets = [0, 1152], sizes = [1, 128], strides = [1, 1]} : vector<1x1280xf32> to vector<1x128xf32>
    %165 = vector.broadcast %8 : f32 to vector<1x128xf32>
    %166 = arith.mulf %155, %165 : vector<1x128xf32>
    %167 = vector.broadcast %9 : f32 to vector<1x128xf32>
    %168 = arith.mulf %156, %167 : vector<1x128xf32>
    %169 = arith.addf %166, %168 : vector<1x128xf32>
    %170 = vector.broadcast %10 : f32 to vector<1x128xf32>
    %171 = arith.mulf %157, %170 : vector<1x128xf32>
    %172 = arith.addf %169, %171 : vector<1x128xf32>
    %173 = vector.broadcast %11 : f32 to vector<1x128xf32>
    %174 = arith.mulf %158, %173 : vector<1x128xf32>
    %175 = arith.addf %172, %174 : vector<1x128xf32>
    %176 = vector.broadcast %12 : f32 to vector<1x128xf32>
    %177 = arith.mulf %159, %176 : vector<1x128xf32>
    %178 = arith.addf %175, %177 : vector<1x128xf32>
    %179 = vector.broadcast %13 : f32 to vector<1x128xf32>
    %180 = arith.mulf %160, %179 : vector<1x128xf32>
    %181 = arith.addf %178, %180 : vector<1x128xf32>
    %182 = vector.broadcast %14 : f32 to vector<1x128xf32>
    %183 = arith.mulf %161, %182 : vector<1x128xf32>
    %184 = arith.addf %181, %183 : vector<1x128xf32>
    %185 = vector.broadcast %15 : f32 to vector<1x128xf32>
    %186 = arith.mulf %162, %185 : vector<1x128xf32>
    %187 = arith.addf %184, %186 : vector<1x128xf32>
    %188 = vector.broadcast %16 : f32 to vector<1x128xf32>
    %189 = arith.mulf %163, %188 : vector<1x128xf32>
    %190 = arith.addf %187, %189 : vector<1x128xf32>
    %191 = vector.broadcast %17 : f32 to vector<1x128xf32>
    %192 = arith.mulf %164, %191 : vector<1x128xf32>
    %193 = arith.addf %190, %192 : vector<1x128xf32>
    %194 = vector.broadcast %108 : f32 to vector<1x128xf32>
    %195 = arith.addf %193, %194 : vector<1x128xf32>
    %cst_286 = arith.constant 0.000000e+00 : f32
    %196 = vector.broadcast %cst_286 : f32 to vector<1x128xf32>
    %197 = arith.maximumf %195, %196 : vector<1x128xf32>
    %198 = vector.broadcast %18 : f32 to vector<1x128xf32>
    %199 = arith.mulf %155, %198 : vector<1x128xf32>
    %200 = vector.broadcast %19 : f32 to vector<1x128xf32>
    %201 = arith.mulf %156, %200 : vector<1x128xf32>
    %202 = arith.addf %199, %201 : vector<1x128xf32>
    %203 = vector.broadcast %20 : f32 to vector<1x128xf32>
    %204 = arith.mulf %157, %203 : vector<1x128xf32>
    %205 = arith.addf %202, %204 : vector<1x128xf32>
    %206 = vector.broadcast %21 : f32 to vector<1x128xf32>
    %207 = arith.mulf %158, %206 : vector<1x128xf32>
    %208 = arith.addf %205, %207 : vector<1x128xf32>
    %209 = vector.broadcast %22 : f32 to vector<1x128xf32>
    %210 = arith.mulf %159, %209 : vector<1x128xf32>
    %211 = arith.addf %208, %210 : vector<1x128xf32>
    %212 = vector.broadcast %23 : f32 to vector<1x128xf32>
    %213 = arith.mulf %160, %212 : vector<1x128xf32>
    %214 = arith.addf %211, %213 : vector<1x128xf32>
    %215 = vector.broadcast %24 : f32 to vector<1x128xf32>
    %216 = arith.mulf %161, %215 : vector<1x128xf32>
    %217 = arith.addf %214, %216 : vector<1x128xf32>
    %218 = vector.broadcast %25 : f32 to vector<1x128xf32>
    %219 = arith.mulf %162, %218 : vector<1x128xf32>
    %220 = arith.addf %217, %219 : vector<1x128xf32>
    %221 = vector.broadcast %26 : f32 to vector<1x128xf32>
    %222 = arith.mulf %163, %221 : vector<1x128xf32>
    %223 = arith.addf %220, %222 : vector<1x128xf32>
    %224 = vector.broadcast %27 : f32 to vector<1x128xf32>
    %225 = arith.mulf %164, %224 : vector<1x128xf32>
    %226 = arith.addf %223, %225 : vector<1x128xf32>
    %227 = vector.broadcast %109 : f32 to vector<1x128xf32>
    %228 = arith.addf %226, %227 : vector<1x128xf32>
    %cst_287 = arith.constant 0.000000e+00 : f32
    %229 = vector.broadcast %cst_287 : f32 to vector<1x128xf32>
    %230 = arith.maximumf %228, %229 : vector<1x128xf32>
    %231 = vector.broadcast %28 : f32 to vector<1x128xf32>
    %232 = arith.mulf %155, %231 : vector<1x128xf32>
    %233 = vector.broadcast %29 : f32 to vector<1x128xf32>
    %234 = arith.mulf %156, %233 : vector<1x128xf32>
    %235 = arith.addf %232, %234 : vector<1x128xf32>
    %236 = vector.broadcast %30 : f32 to vector<1x128xf32>
    %237 = arith.mulf %157, %236 : vector<1x128xf32>
    %238 = arith.addf %235, %237 : vector<1x128xf32>
    %239 = vector.broadcast %31 : f32 to vector<1x128xf32>
    %240 = arith.mulf %158, %239 : vector<1x128xf32>
    %241 = arith.addf %238, %240 : vector<1x128xf32>
    %242 = vector.broadcast %32 : f32 to vector<1x128xf32>
    %243 = arith.mulf %159, %242 : vector<1x128xf32>
    %244 = arith.addf %241, %243 : vector<1x128xf32>
    %245 = vector.broadcast %33 : f32 to vector<1x128xf32>
    %246 = arith.mulf %160, %245 : vector<1x128xf32>
    %247 = arith.addf %244, %246 : vector<1x128xf32>
    %248 = vector.broadcast %34 : f32 to vector<1x128xf32>
    %249 = arith.mulf %161, %248 : vector<1x128xf32>
    %250 = arith.addf %247, %249 : vector<1x128xf32>
    %251 = vector.broadcast %35 : f32 to vector<1x128xf32>
    %252 = arith.mulf %162, %251 : vector<1x128xf32>
    %253 = arith.addf %250, %252 : vector<1x128xf32>
    %254 = vector.broadcast %36 : f32 to vector<1x128xf32>
    %255 = arith.mulf %163, %254 : vector<1x128xf32>
    %256 = arith.addf %253, %255 : vector<1x128xf32>
    %257 = vector.broadcast %37 : f32 to vector<1x128xf32>
    %258 = arith.mulf %164, %257 : vector<1x128xf32>
    %259 = arith.addf %256, %258 : vector<1x128xf32>
    %260 = vector.broadcast %110 : f32 to vector<1x128xf32>
    %261 = arith.addf %259, %260 : vector<1x128xf32>
    %cst_288 = arith.constant 0.000000e+00 : f32
    %262 = vector.broadcast %cst_288 : f32 to vector<1x128xf32>
    %263 = arith.maximumf %261, %262 : vector<1x128xf32>
    %264 = vector.broadcast %38 : f32 to vector<1x128xf32>
    %265 = arith.mulf %155, %264 : vector<1x128xf32>
    %266 = vector.broadcast %39 : f32 to vector<1x128xf32>
    %267 = arith.mulf %156, %266 : vector<1x128xf32>
    %268 = arith.addf %265, %267 : vector<1x128xf32>
    %269 = vector.broadcast %40 : f32 to vector<1x128xf32>
    %270 = arith.mulf %157, %269 : vector<1x128xf32>
    %271 = arith.addf %268, %270 : vector<1x128xf32>
    %272 = vector.broadcast %41 : f32 to vector<1x128xf32>
    %273 = arith.mulf %158, %272 : vector<1x128xf32>
    %274 = arith.addf %271, %273 : vector<1x128xf32>
    %275 = vector.broadcast %42 : f32 to vector<1x128xf32>
    %276 = arith.mulf %159, %275 : vector<1x128xf32>
    %277 = arith.addf %274, %276 : vector<1x128xf32>
    %278 = vector.broadcast %43 : f32 to vector<1x128xf32>
    %279 = arith.mulf %160, %278 : vector<1x128xf32>
    %280 = arith.addf %277, %279 : vector<1x128xf32>
    %281 = vector.broadcast %44 : f32 to vector<1x128xf32>
    %282 = arith.mulf %161, %281 : vector<1x128xf32>
    %283 = arith.addf %280, %282 : vector<1x128xf32>
    %284 = vector.broadcast %45 : f32 to vector<1x128xf32>
    %285 = arith.mulf %162, %284 : vector<1x128xf32>
    %286 = arith.addf %283, %285 : vector<1x128xf32>
    %287 = vector.broadcast %46 : f32 to vector<1x128xf32>
    %288 = arith.mulf %163, %287 : vector<1x128xf32>
    %289 = arith.addf %286, %288 : vector<1x128xf32>
    %290 = vector.broadcast %47 : f32 to vector<1x128xf32>
    %291 = arith.mulf %164, %290 : vector<1x128xf32>
    %292 = arith.addf %289, %291 : vector<1x128xf32>
    %293 = vector.broadcast %111 : f32 to vector<1x128xf32>
    %294 = arith.addf %292, %293 : vector<1x128xf32>
    %cst_289 = arith.constant 0.000000e+00 : f32
    %295 = vector.broadcast %cst_289 : f32 to vector<1x128xf32>
    %296 = arith.maximumf %294, %295 : vector<1x128xf32>
    %297 = vector.broadcast %48 : f32 to vector<1x128xf32>
    %298 = arith.mulf %155, %297 : vector<1x128xf32>
    %299 = vector.broadcast %49 : f32 to vector<1x128xf32>
    %300 = arith.mulf %156, %299 : vector<1x128xf32>
    %301 = arith.addf %298, %300 : vector<1x128xf32>
    %302 = vector.broadcast %50 : f32 to vector<1x128xf32>
    %303 = arith.mulf %157, %302 : vector<1x128xf32>
    %304 = arith.addf %301, %303 : vector<1x128xf32>
    %305 = vector.broadcast %51 : f32 to vector<1x128xf32>
    %306 = arith.mulf %158, %305 : vector<1x128xf32>
    %307 = arith.addf %304, %306 : vector<1x128xf32>
    %308 = vector.broadcast %52 : f32 to vector<1x128xf32>
    %309 = arith.mulf %159, %308 : vector<1x128xf32>
    %310 = arith.addf %307, %309 : vector<1x128xf32>
    %311 = vector.broadcast %53 : f32 to vector<1x128xf32>
    %312 = arith.mulf %160, %311 : vector<1x128xf32>
    %313 = arith.addf %310, %312 : vector<1x128xf32>
    %314 = vector.broadcast %54 : f32 to vector<1x128xf32>
    %315 = arith.mulf %161, %314 : vector<1x128xf32>
    %316 = arith.addf %313, %315 : vector<1x128xf32>
    %317 = vector.broadcast %55 : f32 to vector<1x128xf32>
    %318 = arith.mulf %162, %317 : vector<1x128xf32>
    %319 = arith.addf %316, %318 : vector<1x128xf32>
    %320 = vector.broadcast %56 : f32 to vector<1x128xf32>
    %321 = arith.mulf %163, %320 : vector<1x128xf32>
    %322 = arith.addf %319, %321 : vector<1x128xf32>
    %323 = vector.broadcast %57 : f32 to vector<1x128xf32>
    %324 = arith.mulf %164, %323 : vector<1x128xf32>
    %325 = arith.addf %322, %324 : vector<1x128xf32>
    %326 = vector.broadcast %112 : f32 to vector<1x128xf32>
    %327 = arith.addf %325, %326 : vector<1x128xf32>
    %cst_290 = arith.constant 0.000000e+00 : f32
    %328 = vector.broadcast %cst_290 : f32 to vector<1x128xf32>
    %329 = arith.maximumf %327, %328 : vector<1x128xf32>
    %330 = vector.broadcast %58 : f32 to vector<1x128xf32>
    %331 = arith.mulf %155, %330 : vector<1x128xf32>
    %332 = vector.broadcast %59 : f32 to vector<1x128xf32>
    %333 = arith.mulf %156, %332 : vector<1x128xf32>
    %334 = arith.addf %331, %333 : vector<1x128xf32>
    %335 = vector.broadcast %60 : f32 to vector<1x128xf32>
    %336 = arith.mulf %157, %335 : vector<1x128xf32>
    %337 = arith.addf %334, %336 : vector<1x128xf32>
    %338 = vector.broadcast %61 : f32 to vector<1x128xf32>
    %339 = arith.mulf %158, %338 : vector<1x128xf32>
    %340 = arith.addf %337, %339 : vector<1x128xf32>
    %341 = vector.broadcast %62 : f32 to vector<1x128xf32>
    %342 = arith.mulf %159, %341 : vector<1x128xf32>
    %343 = arith.addf %340, %342 : vector<1x128xf32>
    %344 = vector.broadcast %63 : f32 to vector<1x128xf32>
    %345 = arith.mulf %160, %344 : vector<1x128xf32>
    %346 = arith.addf %343, %345 : vector<1x128xf32>
    %347 = vector.broadcast %64 : f32 to vector<1x128xf32>
    %348 = arith.mulf %161, %347 : vector<1x128xf32>
    %349 = arith.addf %346, %348 : vector<1x128xf32>
    %350 = vector.broadcast %65 : f32 to vector<1x128xf32>
    %351 = arith.mulf %162, %350 : vector<1x128xf32>
    %352 = arith.addf %349, %351 : vector<1x128xf32>
    %353 = vector.broadcast %66 : f32 to vector<1x128xf32>
    %354 = arith.mulf %163, %353 : vector<1x128xf32>
    %355 = arith.addf %352, %354 : vector<1x128xf32>
    %356 = vector.broadcast %67 : f32 to vector<1x128xf32>
    %357 = arith.mulf %164, %356 : vector<1x128xf32>
    %358 = arith.addf %355, %357 : vector<1x128xf32>
    %359 = vector.broadcast %113 : f32 to vector<1x128xf32>
    %360 = arith.addf %358, %359 : vector<1x128xf32>
    %cst_291 = arith.constant 0.000000e+00 : f32
    %361 = vector.broadcast %cst_291 : f32 to vector<1x128xf32>
    %362 = arith.maximumf %360, %361 : vector<1x128xf32>
    %363 = vector.broadcast %68 : f32 to vector<1x128xf32>
    %364 = arith.mulf %155, %363 : vector<1x128xf32>
    %365 = vector.broadcast %69 : f32 to vector<1x128xf32>
    %366 = arith.mulf %156, %365 : vector<1x128xf32>
    %367 = arith.addf %364, %366 : vector<1x128xf32>
    %368 = vector.broadcast %70 : f32 to vector<1x128xf32>
    %369 = arith.mulf %157, %368 : vector<1x128xf32>
    %370 = arith.addf %367, %369 : vector<1x128xf32>
    %371 = vector.broadcast %71 : f32 to vector<1x128xf32>
    %372 = arith.mulf %158, %371 : vector<1x128xf32>
    %373 = arith.addf %370, %372 : vector<1x128xf32>
    %374 = vector.broadcast %72 : f32 to vector<1x128xf32>
    %375 = arith.mulf %159, %374 : vector<1x128xf32>
    %376 = arith.addf %373, %375 : vector<1x128xf32>
    %377 = vector.broadcast %73 : f32 to vector<1x128xf32>
    %378 = arith.mulf %160, %377 : vector<1x128xf32>
    %379 = arith.addf %376, %378 : vector<1x128xf32>
    %380 = vector.broadcast %74 : f32 to vector<1x128xf32>
    %381 = arith.mulf %161, %380 : vector<1x128xf32>
    %382 = arith.addf %379, %381 : vector<1x128xf32>
    %383 = vector.broadcast %75 : f32 to vector<1x128xf32>
    %384 = arith.mulf %162, %383 : vector<1x128xf32>
    %385 = arith.addf %382, %384 : vector<1x128xf32>
    %386 = vector.broadcast %76 : f32 to vector<1x128xf32>
    %387 = arith.mulf %163, %386 : vector<1x128xf32>
    %388 = arith.addf %385, %387 : vector<1x128xf32>
    %389 = vector.broadcast %77 : f32 to vector<1x128xf32>
    %390 = arith.mulf %164, %389 : vector<1x128xf32>
    %391 = arith.addf %388, %390 : vector<1x128xf32>
    %392 = vector.broadcast %114 : f32 to vector<1x128xf32>
    %393 = arith.addf %391, %392 : vector<1x128xf32>
    %cst_292 = arith.constant 0.000000e+00 : f32
    %394 = vector.broadcast %cst_292 : f32 to vector<1x128xf32>
    %395 = arith.maximumf %393, %394 : vector<1x128xf32>
    %396 = vector.broadcast %78 : f32 to vector<1x128xf32>
    %397 = arith.mulf %155, %396 : vector<1x128xf32>
    %398 = vector.broadcast %79 : f32 to vector<1x128xf32>
    %399 = arith.mulf %156, %398 : vector<1x128xf32>
    %400 = arith.addf %397, %399 : vector<1x128xf32>
    %401 = vector.broadcast %80 : f32 to vector<1x128xf32>
    %402 = arith.mulf %157, %401 : vector<1x128xf32>
    %403 = arith.addf %400, %402 : vector<1x128xf32>
    %404 = vector.broadcast %81 : f32 to vector<1x128xf32>
    %405 = arith.mulf %158, %404 : vector<1x128xf32>
    %406 = arith.addf %403, %405 : vector<1x128xf32>
    %407 = vector.broadcast %82 : f32 to vector<1x128xf32>
    %408 = arith.mulf %159, %407 : vector<1x128xf32>
    %409 = arith.addf %406, %408 : vector<1x128xf32>
    %410 = vector.broadcast %83 : f32 to vector<1x128xf32>
    %411 = arith.mulf %160, %410 : vector<1x128xf32>
    %412 = arith.addf %409, %411 : vector<1x128xf32>
    %413 = vector.broadcast %84 : f32 to vector<1x128xf32>
    %414 = arith.mulf %161, %413 : vector<1x128xf32>
    %415 = arith.addf %412, %414 : vector<1x128xf32>
    %416 = vector.broadcast %85 : f32 to vector<1x128xf32>
    %417 = arith.mulf %162, %416 : vector<1x128xf32>
    %418 = arith.addf %415, %417 : vector<1x128xf32>
    %419 = vector.broadcast %86 : f32 to vector<1x128xf32>
    %420 = arith.mulf %163, %419 : vector<1x128xf32>
    %421 = arith.addf %418, %420 : vector<1x128xf32>
    %422 = vector.broadcast %87 : f32 to vector<1x128xf32>
    %423 = arith.mulf %164, %422 : vector<1x128xf32>
    %424 = arith.addf %421, %423 : vector<1x128xf32>
    %425 = vector.broadcast %115 : f32 to vector<1x128xf32>
    %426 = arith.addf %424, %425 : vector<1x128xf32>
    %cst_293 = arith.constant 0.000000e+00 : f32
    %427 = vector.broadcast %cst_293 : f32 to vector<1x128xf32>
    %428 = arith.maximumf %426, %427 : vector<1x128xf32>
    %429 = vector.broadcast %88 : f32 to vector<1x128xf32>
    %430 = arith.mulf %155, %429 : vector<1x128xf32>
    %431 = vector.broadcast %89 : f32 to vector<1x128xf32>
    %432 = arith.mulf %156, %431 : vector<1x128xf32>
    %433 = arith.addf %430, %432 : vector<1x128xf32>
    %434 = vector.broadcast %90 : f32 to vector<1x128xf32>
    %435 = arith.mulf %157, %434 : vector<1x128xf32>
    %436 = arith.addf %433, %435 : vector<1x128xf32>
    %437 = vector.broadcast %91 : f32 to vector<1x128xf32>
    %438 = arith.mulf %158, %437 : vector<1x128xf32>
    %439 = arith.addf %436, %438 : vector<1x128xf32>
    %440 = vector.broadcast %92 : f32 to vector<1x128xf32>
    %441 = arith.mulf %159, %440 : vector<1x128xf32>
    %442 = arith.addf %439, %441 : vector<1x128xf32>
    %443 = vector.broadcast %93 : f32 to vector<1x128xf32>
    %444 = arith.mulf %160, %443 : vector<1x128xf32>
    %445 = arith.addf %442, %444 : vector<1x128xf32>
    %446 = vector.broadcast %94 : f32 to vector<1x128xf32>
    %447 = arith.mulf %161, %446 : vector<1x128xf32>
    %448 = arith.addf %445, %447 : vector<1x128xf32>
    %449 = vector.broadcast %95 : f32 to vector<1x128xf32>
    %450 = arith.mulf %162, %449 : vector<1x128xf32>
    %451 = arith.addf %448, %450 : vector<1x128xf32>
    %452 = vector.broadcast %96 : f32 to vector<1x128xf32>
    %453 = arith.mulf %163, %452 : vector<1x128xf32>
    %454 = arith.addf %451, %453 : vector<1x128xf32>
    %455 = vector.broadcast %97 : f32 to vector<1x128xf32>
    %456 = arith.mulf %164, %455 : vector<1x128xf32>
    %457 = arith.addf %454, %456 : vector<1x128xf32>
    %458 = vector.broadcast %116 : f32 to vector<1x128xf32>
    %459 = arith.addf %457, %458 : vector<1x128xf32>
    %cst_294 = arith.constant 0.000000e+00 : f32
    %460 = vector.broadcast %cst_294 : f32 to vector<1x128xf32>
    %461 = arith.maximumf %459, %460 : vector<1x128xf32>
    %462 = vector.broadcast %98 : f32 to vector<1x128xf32>
    %463 = arith.mulf %155, %462 : vector<1x128xf32>
    %464 = vector.broadcast %99 : f32 to vector<1x128xf32>
    %465 = arith.mulf %156, %464 : vector<1x128xf32>
    %466 = arith.addf %463, %465 : vector<1x128xf32>
    %467 = vector.broadcast %100 : f32 to vector<1x128xf32>
    %468 = arith.mulf %157, %467 : vector<1x128xf32>
    %469 = arith.addf %466, %468 : vector<1x128xf32>
    %470 = vector.broadcast %101 : f32 to vector<1x128xf32>
    %471 = arith.mulf %158, %470 : vector<1x128xf32>
    %472 = arith.addf %469, %471 : vector<1x128xf32>
    %473 = vector.broadcast %102 : f32 to vector<1x128xf32>
    %474 = arith.mulf %159, %473 : vector<1x128xf32>
    %475 = arith.addf %472, %474 : vector<1x128xf32>
    %476 = vector.broadcast %103 : f32 to vector<1x128xf32>
    %477 = arith.mulf %160, %476 : vector<1x128xf32>
    %478 = arith.addf %475, %477 : vector<1x128xf32>
    %479 = vector.broadcast %104 : f32 to vector<1x128xf32>
    %480 = arith.mulf %161, %479 : vector<1x128xf32>
    %481 = arith.addf %478, %480 : vector<1x128xf32>
    %482 = vector.broadcast %105 : f32 to vector<1x128xf32>
    %483 = arith.mulf %162, %482 : vector<1x128xf32>
    %484 = arith.addf %481, %483 : vector<1x128xf32>
    %485 = vector.broadcast %106 : f32 to vector<1x128xf32>
    %486 = arith.mulf %163, %485 : vector<1x128xf32>
    %487 = arith.addf %484, %486 : vector<1x128xf32>
    %488 = vector.broadcast %107 : f32 to vector<1x128xf32>
    %489 = arith.mulf %164, %488 : vector<1x128xf32>
    %490 = arith.addf %487, %489 : vector<1x128xf32>
    %491 = vector.broadcast %117 : f32 to vector<1x128xf32>
    %492 = arith.addf %490, %491 : vector<1x128xf32>
    %cst_295 = arith.constant 0.000000e+00 : f32
    %493 = vector.broadcast %cst_295 : f32 to vector<1x128xf32>
    %494 = arith.maximumf %492, %493 : vector<1x128xf32>
    %495 = vector.broadcast %118 : f32 to vector<1x128xf32>
    %496 = arith.mulf %197, %495 : vector<1x128xf32>
    %497 = vector.broadcast %119 : f32 to vector<1x128xf32>
    %498 = arith.mulf %230, %497 : vector<1x128xf32>
    %499 = arith.addf %496, %498 : vector<1x128xf32>
    %500 = vector.broadcast %120 : f32 to vector<1x128xf32>
    %501 = arith.mulf %263, %500 : vector<1x128xf32>
    %502 = arith.addf %499, %501 : vector<1x128xf32>
    %503 = vector.broadcast %121 : f32 to vector<1x128xf32>
    %504 = arith.mulf %296, %503 : vector<1x128xf32>
    %505 = arith.addf %502, %504 : vector<1x128xf32>
    %506 = vector.broadcast %122 : f32 to vector<1x128xf32>
    %507 = arith.mulf %329, %506 : vector<1x128xf32>
    %508 = arith.addf %505, %507 : vector<1x128xf32>
    %509 = vector.broadcast %123 : f32 to vector<1x128xf32>
    %510 = arith.mulf %362, %509 : vector<1x128xf32>
    %511 = arith.addf %508, %510 : vector<1x128xf32>
    %512 = vector.broadcast %124 : f32 to vector<1x128xf32>
    %513 = arith.mulf %395, %512 : vector<1x128xf32>
    %514 = arith.addf %511, %513 : vector<1x128xf32>
    %515 = vector.broadcast %125 : f32 to vector<1x128xf32>
    %516 = arith.mulf %428, %515 : vector<1x128xf32>
    %517 = arith.addf %514, %516 : vector<1x128xf32>
    %518 = vector.broadcast %126 : f32 to vector<1x128xf32>
    %519 = arith.mulf %461, %518 : vector<1x128xf32>
    %520 = arith.addf %517, %519 : vector<1x128xf32>
    %521 = vector.broadcast %127 : f32 to vector<1x128xf32>
    %522 = arith.mulf %494, %521 : vector<1x128xf32>
    %523 = arith.addf %520, %522 : vector<1x128xf32>
    %524 = vector.broadcast %148 : f32 to vector<1x128xf32>
    %525 = arith.addf %523, %524 : vector<1x128xf32>
    %c0_296 = arith.constant 0 : index
    %526 = arith.index_cast %152 : i32 to index
    %c0_297 = arith.constant 0 : index
    %527 = vector.load %arg8[%c0_296, %526, %c0_297] : memref<3x1x128xf32, #tpu.memory_space<vmem>>, vector<1x1x128xf32>
    %528 = vector.shape_cast %527 : vector<1x1x128xf32> to vector<1x128xf32>
    %529 = vector.shape_cast %525 : vector<1x128xf32> to vector<1x1x128xf32>
    tpu.vector_store %arg8[%c0_296, %526, %c0_297], %529 {strides = array<i32>} : memref<3x1x128xf32, #tpu.memory_space<vmem>>, vector<1x1x128xf32>,
    %530 = vector.broadcast %128 : f32 to vector<1x128xf32>
    %531 = arith.mulf %197, %530 : vector<1x128xf32>
    %532 = vector.broadcast %129 : f32 to vector<1x128xf32>
    %533 = arith.mulf %230, %532 : vector<1x128xf32>
    %534 = arith.addf %531, %533 : vector<1x128xf32>
    %535 = vector.broadcast %130 : f32 to vector<1x128xf32>
    %536 = arith.mulf %263, %535 : vector<1x128xf32>
    %537 = arith.addf %534, %536 : vector<1x128xf32>
    %538 = vector.broadcast %131 : f32 to vector<1x128xf32>
    %539 = arith.mulf %296, %538 : vector<1x128xf32>
    %540 = arith.addf %537, %539 : vector<1x128xf32>
    %541 = vector.broadcast %132 : f32 to vector<1x128xf32>
    %542 = arith.mulf %329, %541 : vector<1x128xf32>
    %543 = arith.addf %540, %542 : vector<1x128xf32>
    %544 = vector.broadcast %133 : f32 to vector<1x128xf32>
    %545 = arith.mulf %362, %544 : vector<1x128xf32>
    %546 = arith.addf %543, %545 : vector<1x128xf32>
    %547 = vector.broadcast %134 : f32 to vector<1x128xf32>
    %548 = arith.mulf %395, %547 : vector<1x128xf32>
    %549 = arith.addf %546, %548 : vector<1x128xf32>
    %550 = vector.broadcast %135 : f32 to vector<1x128xf32>
    %551 = arith.mulf %428, %550 : vector<1x128xf32>
    %552 = arith.addf %549, %551 : vector<1x128xf32>
    %553 = vector.broadcast %136 : f32 to vector<1x128xf32>
    %554 = arith.mulf %461, %553 : vector<1x128xf32>
    %555 = arith.addf %552, %554 : vector<1x128xf32>
    %556 = vector.broadcast %137 : f32 to vector<1x128xf32>
    %557 = arith.mulf %494, %556 : vector<1x128xf32>
    %558 = arith.addf %555, %557 : vector<1x128xf32>
    %559 = vector.broadcast %149 : f32 to vector<1x128xf32>
    %560 = arith.addf %558, %559 : vector<1x128xf32>
    %c1_298 = arith.constant 1 : index
    %561 = arith.index_cast %152 : i32 to index
    %c0_299 = arith.constant 0 : index
    %562 = vector.load %arg8[%c1_298, %561, %c0_299] : memref<3x1x128xf32, #tpu.memory_space<vmem>>, vector<1x1x128xf32>
    %563 = vector.shape_cast %562 : vector<1x1x128xf32> to vector<1x128xf32>
    %564 = vector.shape_cast %560 : vector<1x128xf32> to vector<1x1x128xf32>
    tpu.vector_store %arg8[%c1_298, %561, %c0_299], %564 {strides = array<i32>} : memref<3x1x128xf32, #tpu.memory_space<vmem>>, vector<1x1x128xf32>,
    %565 = vector.broadcast %138 : f32 to vector<1x128xf32>
    %566 = arith.mulf %197, %565 : vector<1x128xf32>
    %567 = vector.broadcast %139 : f32 to vector<1x128xf32>
    %568 = arith.mulf %230, %567 : vector<1x128xf32>
    %569 = arith.addf %566, %568 : vector<1x128xf32>
    %570 = vector.broadcast %140 : f32 to vector<1x128xf32>
    %571 = arith.mulf %263, %570 : vector<1x128xf32>
    %572 = arith.addf %569, %571 : vector<1x128xf32>
    %573 = vector.broadcast %141 : f32 to vector<1x128xf32>
    %574 = arith.mulf %296, %573 : vector<1x128xf32>
    %575 = arith.addf %572, %574 : vector<1x128xf32>
    %576 = vector.broadcast %142 : f32 to vector<1x128xf32>
    %577 = arith.mulf %329, %576 : vector<1x128xf32>
    %578 = arith.addf %575, %577 : vector<1x128xf32>
    %579 = vector.broadcast %143 : f32 to vector<1x128xf32>
    %580 = arith.mulf %362, %579 : vector<1x128xf32>
    %581 = arith.addf %578, %580 : vector<1x128xf32>
    %582 = vector.broadcast %144 : f32 to vector<1x128xf32>
    %583 = arith.mulf %395, %582 : vector<1x128xf32>
    %584 = arith.addf %581, %583 : vector<1x128xf32>
    %585 = vector.broadcast %145 : f32 to vector<1x128xf32>
    %586 = arith.mulf %428, %585 : vector<1x128xf32>
    %587 = arith.addf %584, %586 : vector<1x128xf32>
    %588 = vector.broadcast %146 : f32 to vector<1x128xf32>
    %589 = arith.mulf %461, %588 : vector<1x128xf32>
    %590 = arith.addf %587, %589 : vector<1x128xf32>
    %591 = vector.broadcast %147 : f32 to vector<1x128xf32>
    %592 = arith.mulf %494, %591 : vector<1x128xf32>
    %593 = arith.addf %590, %592 : vector<1x128xf32>
    %594 = vector.broadcast %150 : f32 to vector<1x128xf32>
    %595 = arith.addf %593, %594 : vector<1x128xf32>
    %c2_300 = arith.constant 2 : index
    %596 = arith.index_cast %152 : i32 to index
    %c0_301 = arith.constant 0 : index
    %597 = vector.load %arg8[%c2_300, %596, %c0_301] : memref<3x1x128xf32, #tpu.memory_space<vmem>>, vector<1x1x128xf32>
    %598 = vector.shape_cast %597 : vector<1x1x128xf32> to vector<1x128xf32>
    %599 = vector.shape_cast %595 : vector<1x128xf32> to vector<1x1x128xf32>
    tpu.vector_store %arg8[%c2_300, %596, %c0_301], %599 {strides = array<i32>} : memref<3x1x128xf32, #tpu.memory_space<vmem>>, vector<1x1x128xf32>,
    %c1_i32_302 = arith.constant 1 : i32
    return
  }
  func.func @transform_0(%arg0: i32) -> (i32, i32) {
    %c0_i32 = arith.constant 0 : i32
    %c0_i32_0 = arith.constant 0 : i32
    return %arg0, %c0_i32 : i32, i32
  }
  func.func @transform_1(%arg0: i32) -> (i32, i32) {
    %c0_i32 = arith.constant 0 : i32
    %c0_i32_0 = arith.constant 0 : i32
    %c0_i32_1 = arith.constant 0 : i32
    return %c0_i32, %c0_i32_0 : i32, i32
  }
  func.func @transform_2(%arg0: i32) -> (i32, i32) {
    %c0_i32 = arith.constant 0 : i32
    %c0_i32_0 = arith.constant 0 : i32
    %c0_i32_1 = arith.constant 0 : i32
    return %c0_i32, %c0_i32_0 : i32, i32
  }
  func.func @transform_3(%arg0: i32) -> (i32, i32) {
    %c0_i32 = arith.constant 0 : i32
    %c0_i32_0 = arith.constant 0 : i32
    %c0_i32_1 = arith.constant 0 : i32
    return %c0_i32, %c0_i32_0 : i32, i32
  }
  func.func @transform_4(%arg0: i32) -> (i32, i32) {
    %c0_i32 = arith.constant 0 : i32
    %c0_i32_0 = arith.constant 0 : i32
    %c0_i32_1 = arith.constant 0 : i32
    return %c0_i32, %c0_i32_0 : i32, i32
  }
  func.func @transform_5(%arg0: i32) -> (i32, i32) {
    %c0_i32 = arith.constant 0 : i32
    %c0_i32_0 = arith.constant 0 : i32
    %c0_i32_1 = arith.constant 0 : i32
    return %c0_i32, %c0_i32_0 : i32, i32
  }
  func.func @transform_6(%arg0: i32) -> (i32, i32) {
    %c0_i32 = arith.constant 0 : i32
    %c0_i32_0 = arith.constant 0 : i32
    %c0_i32_1 = arith.constant 0 : i32
    return %c0_i32, %c0_i32_0 : i32, i32
  }
  func.func @transform_7(%arg0: i32) -> (i32, i32, i32) {
    %c0_i32 = arith.constant 0 : i32
    %c0_i32_0 = arith.constant 0 : i32
    %c0_i32_1 = arith.constant 0 : i32
    return %c0_i32, %arg0, %c0_i32_0 : i32, i32, i32
  }
}

</mosaic_0001>

<bundles_post_ra>
// kernel: tpu_custom_call.1
= control target key start
LH: loop header
LB: loop body
LE: loop exit
PB: predicated region body
PF: predicated region fallthrough
CT: control target
= control target key end

     0   :  { %s2727_s0 = inlined_call_operand.hbm [shape: f32[1,256], index: 0, kind: input, shape index: {}]   ;;  %s2728_s1 = inlined_call_operand.hbm [shape: f32[256,1280], index: 1, kind: input, shape index: {}]   ;;  %s2729_s2 = inlined_call_operand.hbm [shape: f32[1,1280], index: 2, kind: input, shape index: {}]   ;;  %s2730_s3 = inlined_call_operand.hbm [shape: f32[10,10], index: 3, kind: input, shape index: {}]   ;;  %s2731_s4 = inlined_call_operand.hbm [shape: f32[1,10], index: 4, kind: input, shape index: {}]   ;;  %s2732_s5 = inlined_call_operand.hbm [shape: f32[3,10], index: 5, kind: input, shape index: {}]   ;;  %s2733_s6 = inlined_call_operand.hbm [shape: f32[1,3], index: 6, kind: input, shape index: {}]   ;;  %s2734_s7 = inlined_call_operand.hbm [shape: f32[3,1,128], index: 7, kind: output, shape index: {}]  }
   0x1   :  { %2793 = sst [smem:[#allocation69_spill]] %s2734_s7 }
   0x2   :  { %12 = vsyncpa [#allocation4], 0 }
   0x3   :  { %13 = vsyncpa [#allocation8], 0 }
   0x4   :  { %14 = vsyncpa [#allocation6], 0 }
   0x5   :  { %15 = vsyncpa [#allocation12], 0 }
   0x6   :  { %16 = vsyncpa [#allocation15], 0  ;;  %s33_s26 = sshll.u32 %s2728_s1, 4  ;;  %s34_s26 = int_to_ptr.hbm [resolvable:$true] %s33_s26 }
   0x7   :  { %17 = vsyncpa [#allocation5], 0  ;;  %s1840_s27 = smov [#allocation7]   ;;  %s69_s8 = sshll.u32 %s2731_s4, 4  ;;  %s70_s8 = int_to_ptr.hbm [resolvable:$true] %s69_s8 }
   0x8   :  { %s35_s28 = sshll.u32 %s1840_s27, 4  ;;  %s1841_s9 = smov 1280   ;;  %s36_s28 = int_to_ptr.vmem [resolvable:$true] %s35_s28 }
   0x9   :  { %s1842_s10 = smov 80   ;;  %s1843_s11 = smov [#allocation11]  }
   0xa   :  { %41 = dma.hbm_to_vmem [thread:$0]  %s34_s26, 40960, %s36_s28, [#allocation8], %s1841_s9, %s1841_s9, %s1842_s10  }
   0xb   :  { %72 = dma.hbm_to_smem %s70_s8, 16, %s1843_s11, [#allocation12]  }
   0xc   :  { %s23_s14 = sshll.u32 %s2727_s0, 4  ;;  %s1844_s1 = smov [#allocation3]   ;;  %s24_s14 = int_to_ptr.hbm [resolvable:$true] %s23_s14 }
   0xd   :  { %s25_s15 = sshll.u32 %s1844_s1, 4  ;;  %s47_s18 = sshll.u32 %s2729_s2, 4  ;;  %s26_s15 = int_to_ptr.vmem [resolvable:$true] %s25_s15  ;;  %s48_s18 = int_to_ptr.hbm [resolvable:$true] %s47_s18 }
   0xe   :  { %28 = dma.hbm_to_vmem [thread:$0]  %s24_s14, 32, %s26_s15, [#allocation4]  }
   0xf   :  { %s1845_s4 = smov [#allocation9]   ;;  %s57_s22 = sshll.u32 %s2730_s3, 4  ;;  %s58_s22 = int_to_ptr.hbm [resolvable:$true] %s57_s22 }
  0x10   :  { %s49_s19 = sshll.u32 %s1845_s4, 4  ;;  %s78_s24 = sshll.u32 %s2732_s5, 4  ;;  %s50_s19 = int_to_ptr.vmem [resolvable:$true] %s49_s19  ;;  %s79_s24 = int_to_ptr.hbm [resolvable:$true] %s78_s24 }
  0x11   :  { %52 = dma.hbm_to_vmem [thread:$0]  %s48_s18, 160, %s50_s19, [#allocation8]  }
  0x12   :  { %s1846_s25 = smov [#allocation10]   ;;  %s1847_s26 = smov 128  }
  0x13   :  { %s1848_s27 = smov 8   ;;  %s1849_s2 = smov [#allocation13]  }
  0x14   :  { %63 = dma.hbm_to_smem %s58_s22, 256, %s1846_s25, [#allocation6], %s1847_s26, %s1847_s26, %s1848_s27  }
  0x15   :  { %81 = dma.hbm_to_smem %s79_s24, 64, %s1849_s2, [#allocation12]  }
  0x16   :  { %s87_s30 = sshll.u32 %s2733_s6, 4  ;;  %s1850_s3 = smov [#allocation14]   ;;  %s88_s30 = int_to_ptr.hbm [resolvable:$true] %s87_s30 }
  0x17   :  { %90 = dma.hbm_to_smem %s88_s30, 16, %s1850_s3, [#allocation15]  }
  0x18   :  { %1828 = dma.done.wait [#allocation4], 32  }
  0x19   :  { %1829 = vsyncadd [#allocation4], 4294967264 }
  0x1a   :  { %1830 = dma.done.wait [#allocation8], 41120  }
  0x1b   :  { %1831 = vsyncadd [#allocation8], 4294926176 }
  0x1c   :  { %1832 = dma.done.wait [#allocation6], 256  }
  0x1d   :  { %1833 = vsyncadd [#allocation6], 4294967040 }
  0x1e   :  { %1834 = dma.done.wait [#allocation12], 80  }
  0x1f   :  { %1835 = vsyncadd [#allocation12], 4294967216 }
  0x20   :  { %1836 = dma.done.wait [#allocation15], 16  }
  0x21   :  { %1837 = vsyncadd [#allocation15], 4294967280 }
  0x22   :  { %119 = sfence }
  0x23   :  { %v272_v0 = vld [vmem:[#allocation7 + $0x4b8] sm:$0xff]  ;;  %v262_v1 = vld [vmem:[#allocation7 + $0x468] sm:$0xff]  ;;  %v271_v4 = vld [vmem:[#allocation7 + $0x4b0] sm:$0xff]  ;;  %s1939_s5 = sld [smem:[#allocation10]]  ;;  %vm898_vm0 = vcmask 1040384   ;;  %vm900_vm1 = vcmask 1042434  }
  0x24   :  { %v432_v2 = vld [vmem:[#allocation7 + $0x9b8] sm:$0xff]  ;;  %510 = vmatpush.msra.mxu2 %v272_v0  ;;  %v422_v3 = vld [vmem:[#allocation7 + $0x968] sm:$0xff]  ;;  %470 = vmatpush.msra.mxu0 %v271_v4  ;;  %v261_v7 = vld [vmem:[#allocation7 + $0x460] sm:$0xff]  ;;  %s1941_s6 = sld [smem:[#allocation10 + $0x80]]  ;;  %vm902_vm2 = vcmask 1041408   ;;  %vm904_vm3 = vcmask 1044484  }
  0x25   :  { %530 = vmatpush.msra.mxu3 %v432_v2  ;;  %v252_v5 = vld [vmem:[#allocation7 + $0x418] sm:$0xff]  ;;  %v242_v8 = vld [vmem:[#allocation7 + $0x3c8] sm:$0xff]  ;;  %v431_v9 = vld [vmem:[#allocation7 + $0x9b0] sm:$0xff]  ;;  %s1943_s8 = sld [smem:[#allocation10 + $0x1]]  ;;  %vm906_vm4 = vcmask 1046534   ;;  %vm908_vm5 = vcmask 1045508  }
  0x26   :  { %v412_v6 = vld [vmem:[#allocation7 + $0x918] sm:$0xff]  ;;  %511 = vmatpush.msra.mxu2 %v262_v1  ;;  %471 = vmatpush.msra.mxu0 %v261_v7  ;;  %v402_v10 = vld [vmem:[#allocation7 + $0x8c8] sm:$0xff]  ;;  %v251_v11 = vld [vmem:[#allocation7 + $0x410] sm:$0xff]  ;;  %s1945_s9 = sld [smem:[#allocation10 + $0x2]]  ;;  %vm910_vm6 = vcmask 1043456  }
  0x27   :  { %531 = vmatpush.msra.mxu3 %v422_v3  ;;  %490 = vmatpush.msra.mxu1 %v431_v9  ;;  %v421_v12 = vld [vmem:[#allocation7 + $0x960] sm:$0xff]  ;;  %v411_v14 = vld [vmem:[#allocation7 + $0x910] sm:$0xff]  ;;  %v232_v15 = vld [vmem:[#allocation7 + $0x378] sm:$0xff]  ;;  %s1947_s10 = sld [smem:[#allocation10 + $0x3]] }
  0x28   :  { %512 = vmatpush.msra.mxu2 %v252_v5  ;;  %v241_v13 = vld [vmem:[#allocation7 + $0x3c0] sm:$0xff]  ;;  %472 = vmatpush.msra.mxu0 %v251_v11  ;;  %v392_v16 = vld [vmem:[#allocation7 + $0x878] sm:$0xff]  ;;  %v231_v17 = vld [vmem:[#allocation7 + $0x370] sm:$0xff]  ;;  %s1949_s11 = sld [smem:[#allocation10 + $0x4]] }
  0x29   :  { %532 = vmatpush.msra.mxu3 %v412_v6  ;;  %491 = vmatpush.msra.mxu1 %v421_v12  ;;  %v401_v18 = vld [vmem:[#allocation7 + $0x8c0] sm:$0xff]  ;;  %v222_v19 = vld [vmem:[#allocation7 + $0x328] sm:$0xff]  ;;  %v391_v22 = vld [vmem:[#allocation7 + $0x870] sm:$0xff]  ;;  %s1951_s12 = sld [smem:[#allocation10 + $0x5]] }
  0x2a   :  { %513 = vmatpush.msra.mxu2 %v242_v8  ;;  %473 = vmatpush.msra.mxu0 %v241_v13  ;;  %v382_v20 = vld [vmem:[#allocation7 + $0x828] sm:$0xff]  ;;  %v221_v21 = vld [vmem:[#allocation7 + $0x320] sm:$0xff]  ;;  %v212_v23 = vld [vmem:[#allocation7 + $0x2d8] sm:$0xff]  ;;  %2794 = sst [smem:[#allocation23_spill]] %s1941_s6 }
  0x2b   :  { %533 = vmatpush.msra.mxu3 %v402_v10  ;;  %492 = vmatpush.msra.mxu1 %v411_v14  ;;  %v372_v24 = vld [vmem:[#allocation7 + $0x7d8] sm:$0xff]  ;;  %v211_v25 = vld [vmem:[#allocation7 + $0x2d0] sm:$0xff]  ;;  %v381_v26 = vld [vmem:[#allocation7 + $0x820] sm:$0xff]  ;;  %s1953_s13 = sld [smem:[#allocation10 + $0x6]] }
  0x2c   :  { %514 = vmatpush.msra.mxu2 %v232_v15  ;;  %474 = vmatpush.msra.mxu0 %v231_v17  ;;  %v202_v27 = vld [vmem:[#allocation7 + $0x288] sm:$0xff]  ;;  %v201_v29 = vld [vmem:[#allocation7 + $0x280] sm:$0xff]  ;;  %v371_v30 = vld [vmem:[#allocation7 + $0x7d0] sm:$0xff]  ;;  %s1955_s14 = sld [smem:[#allocation10 + $0x7]] }
  0x2d   :  { %534 = vmatpush.msra.mxu3 %v392_v16  ;;  %493 = vmatpush.msra.mxu1 %v401_v18  ;;  %v362_v28 = vld [vmem:[#allocation7 + $0x788] sm:$0xff]  ;;  %v192_v31 = vld [vmem:[#allocation7 + $0x238] sm:$0xff]  ;;  %v191_v33 = vld [vmem:[#allocation7 + $0x230] sm:$0xff]  ;;  %2795 = sst [smem:[#allocation24_spill]] %s1947_s10 }
  0x2e   :  { %515 = vmatpush.msra.mxu2 %v222_v19  ;;  %475 = vmatpush.msra.mxu0 %v221_v21  ;;  %v352_v32 = vld [vmem:[#allocation7 + $0x738] sm:$0xff]  ;;  %v361_v34 = vld [vmem:[#allocation7 + $0x780] sm:$0xff]  ;;  %v182_v35 = vld [vmem:[#allocation7 + $0x1e8] sm:$0xff]  ;;  %2796 = sst [smem:[#allocation25_spill]] %s1949_s11 }
  0x2f   :  { %535 = vmatpush.msra.mxu3 %v382_v20  ;;  %494 = vmatpush.msra.mxu1 %v391_v22  ;;  %v342_v36 = vld [vmem:[#allocation7 + $0x6e8] sm:$0xff]  ;;  %v181_v37 = vld [vmem:[#allocation7 + $0x1e0] sm:$0xff]  ;;  %v351_v38 = vld [vmem:[#allocation7 + $0x730] sm:$0xff]  ;;  %2797 = sst [smem:[#allocation26_spill]] %s1951_s12 }
  0x30   :  { %516 = vmatpush.msra.mxu2 %v212_v23  ;;  %476 = vmatpush.msra.mxu0 %v211_v25  ;;  %v172_v39 = vld [vmem:[#allocation7 + $0x198] sm:$0xff]  ;;  %v171_v41 = vld [vmem:[#allocation7 + $0x190] sm:$0xff]  ;;  %v341_v42 = vld [vmem:[#allocation7 + $0x6e0] sm:$0xff]  ;;  %s1957_s1 = sld [smem:[#allocation10 + $0x81]] }
  0x31   :  { %536 = vmatpush.msra.mxu3 %v372_v24  ;;  %495 = vmatpush.msra.mxu1 %v381_v26  ;;  %v332_v40 = vld [vmem:[#allocation7 + $0x698] sm:$0xff]  ;;  %v162_v43 = vld [vmem:[#allocation7 + $0x148] sm:$0xff]  ;;  %v161_v45 = vld [vmem:[#allocation7 + $0x140] sm:$0xff]  ;;  %2798 = sst [smem:[#allocation27_spill]] %s1953_s13 }
  0x32   :  { %517 = vmatpush.msra.mxu2 %v202_v27  ;;  %477 = vmatpush.msra.mxu0 %v201_v29  ;;  %v322_v44 = vld [vmem:[#allocation7 + $0x648] sm:$0xff]  ;;  %v331_v46 = vld [vmem:[#allocation7 + $0x690] sm:$0xff]  ;;  %v152_v47 = vld [vmem:[#allocation7 + $0xf8] sm:$0xff]  ;;  %2799 = sst [smem:[#allocation28_spill]] %s1955_s14 }
  0x33   :  { %537 = vmatpush.msra.mxu3 %v362_v28  ;;  %496 = vmatpush.msra.mxu1 %v371_v30  ;;  %v312_v48 = vld [vmem:[#allocation7 + $0x5f8] sm:$0xff]  ;;  %v151_v49 = vld [vmem:[#allocation7 + $0xf0] sm:$0xff]  ;;  %v321_v50 = vld [vmem:[#allocation7 + $0x640] sm:$0xff]  ;;  %s1959_s15 = sld [smem:[#allocation10 + $0x82]] }
  0x34   :  { %518 = vmatpush.msra.mxu2 %v192_v31  ;;  %478 = vmatpush.msra.mxu0 %v191_v33  ;;  %v142_v51 = vld [vmem:[#allocation7 + $0xa8] sm:$0xff]  ;;  %v141_v53 = vld [vmem:[#allocation7 + $0xa0] sm:$0xff]  ;;  %v311_v54 = vld [vmem:[#allocation7 + $0x5f0] sm:$0xff]  ;;  %s1961_s16 = sld [smem:[#allocation10 + $0x83]] }
  0x35   :  { %538 = vmatpush.msra.mxu3 %v352_v32  ;;  %497 = vmatpush.msra.mxu1 %v361_v34  ;;  %v302_v52 = vld [vmem:[#allocation7 + $0x5a8] sm:$0xff]  ;;  %v132_v55 = vld [vmem:[#allocation7 + $0x58] sm:$0xff]  ;;  %v131_v57 = vld [vmem:[#allocation7 + $0x50] sm:$0xff]  ;;  %s1963_s17 = sld [smem:[#allocation10 + $0x84]] }
  0x36   :  { %519 = vmatpush.msra.mxu2 %v182_v35  ;;  %479 = vmatpush.msra.mxu0 %v181_v37  ;;  %v292_v56 = vld [vmem:[#allocation7 + $0x558] sm:$0xff]  ;;  %v301_v58 = vld [vmem:[#allocation7 + $0x5a0] sm:$0xff]  ;;  %v122_v59 = vld [vmem:[#allocation7 + $0x8] sm:$0xff]  ;;  %2800 = sst [smem:[#allocation29_spill]] %s1957_s1 }
  0x37   :  { %539 = vmatpush.msra.mxu3 %v342_v36  ;;  %498 = vmatpush.msra.mxu1 %v351_v38  ;;  %v282_v60 = vld [vmem:[#allocation7 + $0x508] sm:$0xff]  ;;  %v121_v63 = vld [vmem:[#allocation7] sm:$0xff]  ;;  %v291_v0 = vld [vmem:[#allocation7 + $0x550] sm:$0xff]  ;;  %s1965_s18 = sld [smem:[#allocation10 + $0x85]] }
  0x38   :  { %520 = vmatpush.msra.mxu2 %v172_v39  ;;  %480 = vmatpush.msra.mxu0 %v171_v41  ;;  %v274_v61 = vld [vmem:[#allocation7 + $0x4c8] sm:$0xff]  ;;  %v264_v1 = vld [vmem:[#allocation7 + $0x478] sm:$0xff]  ;;  %v273_v3 = vld [vmem:[#allocation7 + $0x4c0] sm:$0xff]  ;;  %s1967_s4 = sld [smem:[#allocation10 + $0x86]] }
  0x39   :  { %540 = vmatpush.msra.mxu3 %v332_v40  ;;  %499 = vmatpush.msra.mxu1 %v341_v42  ;;  %v434_v62 = vld [vmem:[#allocation7 + $0x9c8] sm:$0xff]  ;;  %v424_v2 = vld [vmem:[#allocation7 + $0x978] sm:$0xff]  ;;  %v281_v4 = vld [vmem:[#allocation7 + $0x500] sm:$0xff]  ;;  %2801 = sst [smem:[#allocation30_spill]] %s1959_s15 }
  0x3a   :  { %521 = vmatpush.msra.mxu2 %v162_v43  ;;  %481 = vmatpush.msra.mxu0 %v161_v45  ;;  %v254_v5 = vld [vmem:[#allocation7 + $0x428] sm:$0xff]  ;;  %v263_v7 = vld [vmem:[#allocation7 + $0x470] sm:$0xff]  ;;  %v433_v8 = vld [vmem:[#allocation7 + $0x9c0] sm:$0xff]  ;;  %2802 = sst [smem:[#allocation31_spill]] %s1961_s16 }
  0x3b   :  { %541 = vmatpush.msra.mxu3 %v322_v44  ;;  %500 = vmatpush.msra.mxu1 %v331_v46  ;;  %v414_v6 = vld [vmem:[#allocation7 + $0x928] sm:$0xff]  ;;  %v244_v9 = vld [vmem:[#allocation7 + $0x3d8] sm:$0xff]  ;;  %v253_v11 = vld [vmem:[#allocation7 + $0x420] sm:$0xff]  ;;  %2803 = sst [smem:[#allocation32_spill]] %s1963_s17 }
  0x3c   :  { %522 = vmatpush.msra.mxu2 %v152_v47  ;;  %482 = vmatpush.msra.mxu0 %v151_v49  ;;  %v404_v10 = vld [vmem:[#allocation7 + $0x8d8] sm:$0xff]  ;;  %v423_v12 = vld [vmem:[#allocation7 + $0x970] sm:$0xff]  ;;  %v234_v13 = vld [vmem:[#allocation7 + $0x388] sm:$0xff]  ;;  %s1971_s19 = sld [smem:[#allocation10 + $0x87]] }
  0x3d   :  { %542 = vmatpush.msra.mxu3 %v312_v48  ;;  %501 = vmatpush.msra.mxu1 %v321_v50  ;;  %v394_v14 = vld [vmem:[#allocation7 + $0x888] sm:$0xff]  ;;  %v243_v15 = vld [vmem:[#allocation7 + $0x3d0] sm:$0xff]  ;;  %v413_v16 = vld [vmem:[#allocation7 + $0x920] sm:$0xff]  ;;  %2804 = sst [smem:[#allocation33_spill]] %s1965_s18 }
  0x3e   :  { %523 = vmatpush.msra.mxu2 %v142_v51  ;;  %483 = vmatpush.msra.mxu0 %v141_v53  ;;  %v224_v17 = vld [vmem:[#allocation7 + $0x338] sm:$0xff]  ;;  %v233_v19 = vld [vmem:[#allocation7 + $0x380] sm:$0xff]  ;;  %v403_v20 = vld [vmem:[#allocation7 + $0x8d0] sm:$0xff]  ;;  %2805 = sst [smem:[#allocation34_spill]] %s1967_s4 }
  0x3f   :  { %543 = vmatpush.msra.mxu3 %v302_v52  ;;  %502 = vmatpush.msra.mxu1 %v311_v54  ;;  %v384_v18 = vld [vmem:[#allocation7 + $0x838] sm:$0xff]  ;;  %v214_v21 = vld [vmem:[#allocation7 + $0x2e8] sm:$0xff]  ;;  %v223_v23 = vld [vmem:[#allocation7 + $0x330] sm:$0xff]  ;;  %s1973_s20 = sld [smem:[#allocation10 + $0x100]] }
  0x40   :  { %524 = vmatpush.msra.mxu2 %v132_v55  ;;  %484 = vmatpush.msra.mxu0 %v131_v57  ;;  %v374_v22 = vld [vmem:[#allocation7 + $0x7e8] sm:$0xff]  ;;  %v393_v24 = vld [vmem:[#allocation7 + $0x880] sm:$0xff]  ;;  %v204_v25 = vld [vmem:[#allocation7 + $0x298] sm:$0xff]  ;;  %s1975_s21 = sld [smem:[#allocation10 + $0x101]] }
  0x41   :  { %544 = vmatpush.msra.mxu3 %v292_v56  ;;  %503 = vmatpush.msra.mxu1 %v301_v58  ;;  %v364_v26 = vld [vmem:[#allocation7 + $0x798] sm:$0xff]  ;;  %v213_v27 = vld [vmem:[#allocation7 + $0x2e0] sm:$0xff]  ;;  %v383_v28 = vld [vmem:[#allocation7 + $0x830] sm:$0xff]  ;;  %s1980_s22 = sld [smem:[#allocation10 + $0x102]] }
  0x42   :  { %525 = vmatpush.msra.mxu2 %v122_v59  ;;  %485 = vmatpush.msra.mxu0 %v121_v63  ;;  %v194_v29 = vld [vmem:[#allocation7 + $0x248] sm:$0xff]  ;;  %v203_v31 = vld [vmem:[#allocation7 + $0x290] sm:$0xff]  ;;  %v373_v32 = vld [vmem:[#allocation7 + $0x7e0] sm:$0xff]  ;;  %2806 = sst [smem:[#allocation35_spill]] %s1971_s19 }
  0x43   :  { %545 = vmatpush.msra.mxu3 %v282_v60  ;;  %504 = vmatpush.msra.mxu1 %v291_v0  ;;  %v354_v30 = vld [vmem:[#allocation7 + $0x748] sm:$0xff]  ;;  %v120_v33 = vld [vmem:[#allocation3] sm:$0x3]  ;;  %v193_v36 = vld [vmem:[#allocation7 + $0x240] sm:$0xff]  ;;  %s1982_s0 = sld [smem:[#allocation10 + $0x103]] }
  0x44   :  { %590 = vmatpush.msrb.mxu2 %v274_v61  ;;  %550 = vmatpush.msrb.mxu0 %v273_v3  ;;  %v184_v34 = vld [vmem:[#allocation7 + $0x1f8] sm:$0xff]  ;;  %v363_v37 = vld [vmem:[#allocation7 + $0x790] sm:$0xff]  ;;  %v174_v38 = vld [vmem:[#allocation7 + $0x1a8] sm:$0xff]  ;;  %v1915_v40 = vperm.slane %v120_v33, 0  ;;  %v1917_v45 = vperm.slane %v120_v33, 1  ;;  %s1984_s23 = sld [smem:[#allocation10 + $0x104]] }
  0x45   :  { %610 = vmatpush.msrb.mxu3 %v434_v62  ;;  %505 = vmatpush.msra.mxu1 %v281_v4  ;;  %v344_v35 = vld [vmem:[#allocation7 + $0x6f8] sm:$0xff]  ;;  %v334_v39 = vld [vmem:[#allocation7 + $0x6a8] sm:$0xff]  ;;  %v183_v41 = vld [vmem:[#allocation7 + $0x1f0] sm:$0xff]  ;;  %2807 = sst [smem:[#allocation36_spill]] %s1973_s20 }
  0x46   :  { %591 = vmatpush.msrb.mxu2 %v264_v1  ;;  %551 = vmatpush.msrb.mxu0 %v263_v7  ;;  %v164_v42 = vld [vmem:[#allocation7 + $0x158] sm:$0xff]  ;;  %v353_v43 = vld [vmem:[#allocation7 + $0x740] sm:$0xff]  ;;  %v154_v47 = vld [vmem:[#allocation7 + $0x108] sm:$0xff]  ;;  %2808 = sst [smem:[#allocation37_spill]] %s1975_s21 }
  0x47   :  { %611 = vmatpush.msrb.mxu3 %v424_v2  ;;  %570 = vmatpush.msrb.mxu1 %v433_v8  ;;  %v324_v44 = vld [vmem:[#allocation7 + $0x658] sm:$0xff]  ;;  %v173_v46 = vld [vmem:[#allocation7 + $0x1a0] sm:$0xff]  ;;  %v343_v48 = vld [vmem:[#allocation7 + $0x6f0] sm:$0xff]  ;;  %2809 = sst [smem:[#allocation38_spill]] %s1980_s22 }
  0x48   :  { %592 = vmatpush.msrb.mxu2 %v254_v5  ;;  %552 = vmatpush.msrb.mxu0 %v253_v11  ;;  %v314_v49 = vld [vmem:[#allocation7 + $0x608] sm:$0xff]  ;;  %v144_v50 = vld [vmem:[#allocation7 + $0xb8] sm:$0xff]  ;;  %v163_v51 = vld [vmem:[#allocation7 + $0x150] sm:$0xff]  ;;  %s1987_s24 = sld [smem:[#allocation10 + $0x105]] }
  0x49   :  { %612 = vmatpush.msrb.mxu3 %v414_v6  ;;  %571 = vmatpush.msrb.mxu1 %v423_v12  ;;  %v333_v52 = vld [vmem:[#allocation7 + $0x6a0] sm:$0xff]  ;;  %v304_v53 = vld [vmem:[#allocation7 + $0x5b8] sm:$0xff]  ;;  %v134_v54 = vld [vmem:[#allocation7 + $0x68] sm:$0xff]  ;;  %2810 = sst [smem:[#allocation39_spill]] %s1982_s0 }
  0x4a   :  { %593 = vmatpush.msrb.mxu2 %v244_v9  ;;  %553 = vmatpush.msrb.mxu0 %v243_v15  ;;  %v153_v55 = vld [vmem:[#allocation7 + $0x100] sm:$0xff]  ;;  %v323_v56 = vld [vmem:[#allocation7 + $0x650] sm:$0xff]  ;;  %v124_v57 = vld [vmem:[#allocation7 + $0x18] sm:$0xff]  ;;  %2811 = sst [smem:[#allocation40_spill]] %s1984_s23 }
  0x4b   :  { %613 = vmatpush.msrb.mxu3 %v404_v10  ;;  %572 = vmatpush.msrb.mxu1 %v413_v16  ;;  %v294_v58 = vld [vmem:[#allocation7 + $0x568] sm:$0xff]  ;;  %v276_v59 = vld [vmem:[#allocation7 + $0x4d8] sm:$0xff]  ;;  %v143_v60 = vld [vmem:[#allocation7 + $0xb0] sm:$0xff]  ;;  %s1989_s25 = sld [smem:[#allocation10 + $0x106]] }
  0x4c   :  { %594 = vmatpush.msrb.mxu2 %v234_v13  ;;  %554 = vmatpush.msrb.mxu0 %v233_v19  ;;  %v313_v61 = vld [vmem:[#allocation7 + $0x600] sm:$0xff]  ;;  %v284_v62 = vld [vmem:[#allocation7 + $0x518] sm:$0xff]  ;;  %v266_v63 = vld [vmem:[#allocation7 + $0x488] sm:$0xff]  ;;  %s1991_s26 = sld [smem:[#allocation10 + $0x107]] }
  0x4d   :  { %614 = vmatpush.msrb.mxu3 %v394_v14  ;;  %573 = vmatpush.msrb.mxu1 %v403_v20  ;;  %v436_v0 = vld [vmem:[#allocation7 + $0x9d8] sm:$0xff]  ;;  %v133_v1 = vld [vmem:[#allocation7 + $0x60] sm:$0xff]  ;;  %v303_v2 = vld [vmem:[#allocation7 + $0x5b0] sm:$0xff]  ;;  %s1993_s27 = sld [smem:[#allocation10 + $0x180]] }
  0x4e   :  { %595 = vmatpush.msrb.mxu2 %v224_v17  ;;  %555 = vmatpush.msrb.mxu0 %v223_v23  ;;  %v256_v3 = vld [vmem:[#allocation7 + $0x438] sm:$0xff]  ;;  %v426_v4 = vld [vmem:[#allocation7 + $0x988] sm:$0xff]  ;;  %v123_v5 = vld [vmem:[#allocation7 + $0x10] sm:$0xff]  ;;  %2812 = sst [smem:[#allocation41_spill]] %s1987_s24 }
  0x4f   :  { %615 = vmatpush.msrb.mxu3 %v384_v18  ;;  %574 = vmatpush.msrb.mxu1 %v393_v24  ;;  %v293_v6 = vld [vmem:[#allocation7 + $0x560] sm:$0xff]  ;;  %v275_v7 = vld [vmem:[#allocation7 + $0x4d0] sm:$0xff]  ;;  %v246_v8 = vld [vmem:[#allocation7 + $0x3e8] sm:$0xff]  ;;  %s1995_s2 = sld [smem:[#allocation10 + $0x181]] }
  0x50   :  { %596 = vmatpush.msrb.mxu2 %v214_v21  ;;  %556 = vmatpush.msrb.mxu0 %v213_v27  ;;  %v416_v9 = vld [vmem:[#allocation7 + $0x938] sm:$0xff]  ;;  %v283_v10 = vld [vmem:[#allocation7 + $0x510] sm:$0xff]  ;;  %v265_v11 = vld [vmem:[#allocation7 + $0x480] sm:$0xff]  ;;  %s1997_s28 = sld [smem:[#allocation10 + $0x182]] }
  0x51   :  { %616 = vmatpush.msrb.mxu3 %v374_v22  ;;  %575 = vmatpush.msrb.mxu1 %v383_v28  ;;  %v435_v12 = vld [vmem:[#allocation7 + $0x9d0] sm:$0xff]  ;;  %v236_v13 = vld [vmem:[#allocation7 + $0x398] sm:$0xff]  ;;  %v406_v14 = vld [vmem:[#allocation7 + $0x8e8] sm:$0xff]  ;;  %2813 = sst [smem:[#allocation42_spill]] %s1989_s25 }
  0x52   :  { %597 = vmatpush.msrb.mxu2 %v204_v25  ;;  %557 = vmatpush.msrb.mxu0 %v203_v31  ;;  %v255_v15 = vld [vmem:[#allocation7 + $0x430] sm:$0xff]  ;;  %v425_v16 = vld [vmem:[#allocation7 + $0x980] sm:$0xff]  ;;  %v226_v17 = vld [vmem:[#allocation7 + $0x348] sm:$0xff]  ;;  %2814 = sst [smem:[#allocation43_spill]] %s1991_s26 }
  0x53   :  { %617 = vmatpush.msrb.mxu3 %v364_v26  ;;  %576 = vmatpush.msrb.mxu1 %v373_v32  ;;  %v396_v18 = vld [vmem:[#allocation7 + $0x898] sm:$0xff]  ;;  %v245_v19 = vld [vmem:[#allocation7 + $0x3e0] sm:$0xff]  ;;  %v415_v20 = vld [vmem:[#allocation7 + $0x930] sm:$0xff]  ;;  %2815 = sst [smem:[#allocation44_spill]] %s1993_s27 }
  0x54   :  { %598 = vmatpush.msrb.mxu2 %v194_v29  ;;  %558 = vmatpush.msrb.mxu0 %v193_v36  ;;  %v216_v21 = vld [vmem:[#allocation7 + $0x2f8] sm:$0xff]  ;;  %v386_v22 = vld [vmem:[#allocation7 + $0x848] sm:$0xff]  ;;  %v235_v23 = vld [vmem:[#allocation7 + $0x390] sm:$0xff]  ;;  %s1999_s29 = sld [smem:[#allocation10 + $0x183]] }
  0x55   :  { %618 = vmatpush.msrb.mxu3 %v354_v30  ;;  %577 = vmatpush.msrb.mxu1 %v363_v37  ;;  %v405_v24 = vld [vmem:[#allocation7 + $0x8e0] sm:$0xff]  ;;  %v206_v25 = vld [vmem:[#allocation7 + $0x2a8] sm:$0xff]  ;;  %v376_v26 = vld [vmem:[#allocation7 + $0x7f8] sm:$0xff]  ;;  %2816 = sst [smem:[#allocation45_spill]] %s1995_s2 }
  0x56   :  { %599 = vmatpush.msrb.mxu2 %v184_v34  ;;  %559 = vmatpush.msrb.mxu0 %v183_v41  ;;  %v225_v27 = vld [vmem:[#allocation7 + $0x340] sm:$0xff]  ;;  %v395_v28 = vld [vmem:[#allocation7 + $0x890] sm:$0xff]  ;;  %v196_v29 = vld [vmem:[#allocation7 + $0x258] sm:$0xff]  ;;  %2817 = sst [smem:[#allocation46_spill]] %s1997_s28 }
  0x57   :  { %619 = vmatpush.msrb.mxu3 %v344_v35  ;;  %526 = vmatmul.f32.vlgmr.msra.gmra.mxu2 %v1915_v40  ;;  %v366_v30 = vld [vmem:[#allocation7 + $0x7a8] sm:$0xff]  ;;  %v215_v31 = vld [vmem:[#allocation7 + $0x2f0] sm:$0xff]  ;;  %v385_v32 = vld [vmem:[#allocation7 + $0x840] sm:$0xff]  ;;  %s2001_s30 = sld [smem:[#allocation10 + $0x184]] }
  0x58   :  { %600 = vmatpush.msrb.mxu2 %v174_v38  ;;  %578 = vmatpush.msrb.mxu1 %v353_v43  ;;  %v186_v33 = vld [vmem:[#allocation7 + $0x208] sm:$0xff]  ;;  %v356_v34 = vld [vmem:[#allocation7 + $0x758] sm:$0xff]  ;;  %v205_v35 = vld [vmem:[#allocation7 + $0x2a0] sm:$0xff]  ;;  %s2003_s3 = sld [smem:[#allocation10 + $0x185]] }
  0x59   :  { %620 = vmatpush.msrb.mxu3 %v334_v39  ;;  %560 = vmatpush.msrb.mxu0 %v173_v46  ;;  %v375_v36 = vld [vmem:[#allocation7 + $0x7f0] sm:$0xff]  ;;  %v176_v37 = vld [vmem:[#allocation7 + $0x1b8] sm:$0xff]  ;;  %v346_v38 = vld [vmem:[#allocation7 + $0x708] sm:$0xff]  ;;  %s2005_s7 = sld [smem:[#allocation10 + $0x186]] }
  0x5a   :  { %601 = vmatpush.msrb.mxu2 %v164_v42  ;;  %546 = vmatmul.f32.vlgmr.msra.gmra.mxu3 %v1917_v45  ;;  %v195_v39 = vld [vmem:[#allocation7 + $0x250] sm:$0xff]  ;;  %v365_v41 = vld [vmem:[#allocation7 + $0x7a0] sm:$0xff]  ;;  %v166_v42 = vld [vmem:[#allocation7 + $0x168] sm:$0xff]  ;;  %2818 = sst [smem:[#allocation47_spill]] %s1999_s29 }
  0x5b   :  { %621 = vmatpush.msrb.mxu3 %v324_v44  ;;  %579 = vmatpush.msrb.mxu1 %v343_v48  ;;  %v336_v43 = vld [vmem:[#allocation7 + $0x6b8] sm:$0xff]  ;;  %v185_v44 = vld [vmem:[#allocation7 + $0x200] sm:$0xff]  ;;  %v355_v46 = vld [vmem:[#allocation7 + $0x750] sm:$0xff]  ;;  %s2007_s26 = sld [smem:[#allocation10 + $0x187]] }
  0x5c   :  { %602 = vmatpush.msrb.mxu2 %v154_v47  ;;  %561 = vmatpush.msrb.mxu0 %v163_v51  ;;  %v156_v47 = vld [vmem:[#allocation7 + $0x118] sm:$0xff]  ;;  %v326_v48 = vld [vmem:[#allocation7 + $0x668] sm:$0xff]  ;;  %s2009_s2 = sld [smem:[#allocation10 + $0x200]] }
  0x5d   :  { %622 = vmatpush.msrb.mxu3 %v314_v49  ;;  %580 = vmatpush.msrb.mxu1 %v333_v52  ;;  %v175_v49 = vld [vmem:[#allocation7 + $0x1b0] sm:$0xff]  ;;  %v146_v51 = vld [vmem:[#allocation7 + $0xc8] sm:$0xff]  ;;  %v316_v52 = vld [vmem:[#allocation7 + $0x618] sm:$0xff]  ;;  %2819 = sst [smem:[#allocation48_spill]] %s2001_s30 }
  0x5e   :  { %603 = vmatpush.msrb.mxu2 %v144_v50  ;;  %486 = vmatmul.f32.vlgmr.msra.gmra.mxu0 %v1915_v40  ;;  %v345_v50 = vld [vmem:[#allocation7 + $0x700] sm:$0xff]  ;;  %2820 = sst [smem:[#allocation49_spill]] %s2003_s3 }
  0x5f   :  { %623 = vmatpush.msrb.mxu3 %v304_v53  ;;  %562 = vmatpush.msrb.mxu0 %v153_v55  ;;  %v165_v53 = vld [vmem:[#allocation7 + $0x160] sm:$0xff]  ;;  %v136_v55 = vld [vmem:[#allocation7 + $0x78] sm:$0xff]  ;;  %2821 = sst [smem:[#allocation50_spill]] %s2005_s7 }
  0x60   :  { %604 = vmatpush.msrb.mxu2 %v134_v54  ;;  %581 = vmatpush.msrb.mxu1 %v323_v56  ;;  %v335_v54 = vld [vmem:[#allocation7 + $0x6b0] sm:$0xff]  ;;  %v306_v56 = vld [vmem:[#allocation7 + $0x5c8] sm:$0xff]  ;;  %s2012_s28 = sld [smem:[#allocation10 + $0x201]] }
  0x61   :  { %624 = vmatpush.msrb.mxu3 %v294_v58  ;;  %506 = vmatmul.f32.vlgmr.msra.gmra.mxu1 %v1917_v45  ;;  %v325_v58 = vld [vmem:[#allocation7 + $0x660] sm:$0xff]  ;;  %2822 = sst [smem:[#allocation51_spill]] %s2007_s26 }
  0x62   :  { %605 = vmatpush.msrb.mxu2 %v124_v57  ;;  %563 = vmatpush.msrb.mxu0 %v143_v60  ;;  %v155_v57 = vld [vmem:[#allocation7 + $0x110] sm:$0xff]  ;;  %v296_v60 = vld [vmem:[#allocation7 + $0x578] sm:$0xff]  ;;  %2823 = sst [smem:[#allocation52_spill]] %s2009_s2 }
  0x63   :  { %606 = vmatmul.f32.vlgmr.msrb.gmra.mxu2 %v1915_v40  ;;  %582 = vmatpush.msrb.mxu1 %v313_v61  ;;  %v278_v61 = vld [vmem:[#allocation7 + $0x4e8] sm:$0xff]  ;;  %s2015_s3 = sld [smem:[#allocation10 + $0x202]] }
  0x64   :  { %670 = vmatpush.msra.mxu2 %v276_v59  ;;  %625 = vmatpush.msrb.mxu3 %v284_v62  ;;  %v126_v59 = vld [vmem:[#allocation7 + $0x28] sm:$0xff]  ;;  %v145_v62 = vld [vmem:[#allocation7 + $0xc0] sm:$0xff]  ;;  %s2017_s30 = sld [smem:[#allocation10 + $0x203]] }
  0x65   :  { %626 = vmatmul.f32.vlgmr.msrb.gmra.mxu3 %v1917_v45  ;;  %564 = vmatpush.msrb.mxu0 %v133_v1  ;;  %v268_v1 = vld [vmem:[#allocation7 + $0x498] sm:$0xff]  ;;  %s2019_s26 = sld [smem:[#allocation10 + $0x204]] }
  0x66   :  { %671 = vmatpush.msra.mxu2 %v266_v63  ;;  %690 = vmatpush.msra.mxu3 %v436_v0  ;;  %v315_v63 = vld [vmem:[#allocation7 + $0x610] sm:$0xff]  ;;  %v286_v0 = vld [vmem:[#allocation7 + $0x528] sm:$0xff]  ;;  %2824 = sst [smem:[#allocation53_spill]] %s2012_s28 }
  0x67   :  { %583 = vmatpush.msrb.mxu1 %v303_v2  ;;  %565 = vmatpush.msrb.mxu0 %v123_v5  ;;  %v438_v2 = vld [vmem:[#allocation7 + $0x9e8] sm:$0xff]  ;;  %s2021_s2 = sld [smem:[#allocation10 + $0x205]] }
  0x68   :  { %672 = vmatpush.msra.mxu2 %v256_v3  ;;  %691 = vmatpush.msra.mxu3 %v426_v4  ;;  %v135_v3 = vld [vmem:[#allocation7 + $0x70] sm:$0xff]  ;;  %v305_v4 = vld [vmem:[#allocation7 + $0x5c0] sm:$0xff]  ;;  %v258_v5 = vld [vmem:[#allocation7 + $0x448] sm:$0xff]  ;;  %s2024_s28 = sld [smem:[#allocation10 + $0x206]] }
  0x69   :  { %584 = vmatpush.msrb.mxu1 %v293_v6  ;;  %566 = vmatmul.f32.vlgmr.msrb.gmra.mxu0 %v1915_v40  ;;  %v428_v6 = vld [vmem:[#allocation7 + $0x998] sm:$0xff]  ;;  %2825 = sst [smem:[#allocation54_spill]] %s2015_s3 }
  0x6a   :  { %630 = vmatpush.msra.mxu0 %v275_v7  ;;  %673 = vmatpush.msra.mxu2 %v246_v8  ;;  %v125_v7 = vld [vmem:[#allocation7 + $0x20] sm:$0xff]  ;;  %v295_v8 = vld [vmem:[#allocation7 + $0x570] sm:$0xff]  ;;  %2826 = sst [smem:[#allocation55_spill]] %s2017_s30 }
  0x6b   :  { %692 = vmatpush.msra.mxu3 %v416_v9  ;;  %585 = vmatpush.msrb.mxu1 %v283_v10  ;;  %v277_v9 = vld [vmem:[#allocation7 + $0x4e0] sm:$0xff]  ;;  %v248_v10 = vld [vmem:[#allocation7 + $0x3f8] sm:$0xff]  ;;  %2827 = sst [smem:[#allocation56_spill]] %s2019_s26 }
  0x6c   :  { %586 = vmatmul.f32.vlgmr.msrb.gmra.mxu1 %v1917_v45  ;;  %631 = vmatpush.msra.mxu0 %v265_v11  ;;  %v418_v11 = vld [vmem:[#allocation7 + $0x948] sm:$0xff]  ;;  %s2026_s3 = sld [smem:[#allocation10 + $0x207]] }
  0x6d   :  { %650 = vmatpush.msra.mxu1 %v435_v12  ;;  %674 = vmatpush.msra.mxu2 %v236_v13  ;;  %v285_v12 = vld [vmem:[#allocation7 + $0x520] sm:$0xff]  ;;  %v267_v13 = vld [vmem:[#allocation7 + $0x490] sm:$0xff]  ;;  %2828 = sst [smem:[#allocation57_spill]] %s2021_s2 }
  0x6e   :  { %693 = vmatpush.msra.mxu3 %v406_v14  ;;  %632 = vmatpush.msra.mxu0 %v255_v15  ;;  %v437_v14 = vld [vmem:[#allocation7 + $0x9e0] sm:$0xff]  ;;  %v238_v15 = vld [vmem:[#allocation7 + $0x3a8] sm:$0xff]  ;;  %2829 = sst [smem:[#allocation58_spill]] %s2024_s28 }
  0x6f   :  { %651 = vmatpush.msra.mxu1 %v425_v16  ;;  %675 = vmatpush.msra.mxu2 %v226_v17  ;;  %v408_v16 = vld [vmem:[#allocation7 + $0x8f8] sm:$0xff]  ;;  %v257_v17 = vld [vmem:[#allocation7 + $0x440] sm:$0xff]  ;;  %s2030_s26 = sld [smem:[#allocation10 + $0x280]] }
  0x70   :  { %694 = vmatpush.msra.mxu3 %v396_v18  ;;  %633 = vmatpush.msra.mxu0 %v245_v19  ;;  %v427_v18 = vld [vmem:[#allocation7 + $0x990] sm:$0xff]  ;;  %v228_v19 = vld [vmem:[#allocation7 + $0x358] sm:$0xff]  ;;  %s2034_s2 = sld [smem:[#allocation10 + $0x281]] }
  0x71   :  { %652 = vmatpush.msra.mxu1 %v415_v20  ;;  %676 = vmatpush.msra.mxu2 %v216_v21  ;;  %v398_v20 = vld [vmem:[#allocation7 + $0x8a8] sm:$0xff]  ;;  %v247_v21 = vld [vmem:[#allocation7 + $0x3f0] sm:$0xff]  ;;  %s2041_s28 = sld [smem:[#allocation10 + $0x283]] }
  0x72   :  { %695 = vmatpush.msra.mxu3 %v386_v22  ;;  %634 = vmatpush.msra.mxu0 %v235_v23  ;;  %v417_v22 = vld [vmem:[#allocation7 + $0x940] sm:$0xff]  ;;  %v218_v23 = vld [vmem:[#allocation7 + $0x308] sm:$0xff]  ;;  %2830 = sst [smem:[#allocation59_spill]] %s2026_s3 }
  0x73   :  { %653 = vmatpush.msra.mxu1 %v405_v24  ;;  %677 = vmatpush.msra.mxu2 %v206_v25  ;;  %v388_v24 = vld [vmem:[#allocation7 + $0x858] sm:$0xff]  ;;  %v237_v25 = vld [vmem:[#allocation7 + $0x3a0] sm:$0xff]  ;;  %s2038_s3 = sld [smem:[#allocation10 + $0x282]] }
  0x74   :  { %696 = vmatpush.msra.mxu3 %v376_v26  ;;  %635 = vmatpush.msra.mxu0 %v225_v27  ;;  %v407_v26 = vld [vmem:[#allocation7 + $0x8f0] sm:$0xff]  ;;  %v208_v27 = vld [vmem:[#allocation7 + $0x2b8] sm:$0xff]  ;;  %s2052_s30 = sld [smem:[#allocation10 + $0x285]] }
  0x75   :  { %654 = vmatpush.msra.mxu1 %v395_v28  ;;  %678 = vmatpush.msra.mxu2 %v196_v29  ;;  %v378_v28 = vld [vmem:[#allocation7 + $0x808] sm:$0xff]  ;;  %v227_v29 = vld [vmem:[#allocation7 + $0x350] sm:$0xff]  ;;  %2831 = sst [smem:[#allocation60_spill]] %s2030_s26 }
  0x76   :  { %697 = vmatpush.msra.mxu3 %v366_v30  ;;  %636 = vmatpush.msra.mxu0 %v215_v31  ;;  %v397_v30 = vld [vmem:[#allocation7 + $0x8a0] sm:$0xff]  ;;  %v198_v31 = vld [vmem:[#allocation7 + $0x268] sm:$0xff]  ;;  %2832 = sst [smem:[#allocation61_spill]] %s2034_s2 }
  0x77   :  { %655 = vmatpush.msra.mxu1 %v385_v32  ;;  %679 = vmatpush.msra.mxu2 %v186_v33  ;;  %v368_v32 = vld [vmem:[#allocation7 + $0x7b8] sm:$0xff]  ;;  %v217_v33 = vld [vmem:[#allocation7 + $0x300] sm:$0xff]  ;;  %2834 = sst [smem:[#allocation63_spill]] %s2041_s28 }
  0x78   :  { %698 = vmatpush.msra.mxu3 %v356_v34  ;;  %637 = vmatpush.msra.mxu0 %v205_v35  ;;  %v387_v34 = vld [vmem:[#allocation7 + $0x850] sm:$0xff]  ;;  %v188_v35 = vld [vmem:[#allocation7 + $0x218] sm:$0xff]  ;;  %s2046_s2 = sld [smem:[#allocation10 + $0x284]] }
  0x79   :  { %656 = vmatpush.msra.mxu1 %v375_v36  ;;  %680 = vmatpush.msra.mxu2 %v176_v37  ;;  %v358_v36 = vld [vmem:[#allocation7 + $0x768] sm:$0xff]  ;;  %v207_v37 = vld [vmem:[#allocation7 + $0x2b0] sm:$0xff]  ;;  %2833 = sst [smem:[#allocation62_spill]] %s2038_s3 }
  0x7a   :  { %699 = vmatpush.msra.mxu3 %v346_v38  ;;  %638 = vmatpush.msra.mxu0 %v195_v39  ;;  %v377_v38 = vld [vmem:[#allocation7 + $0x800] sm:$0xff]  ;;  %v178_v39 = vld [vmem:[#allocation7 + $0x1c8] sm:$0xff]  ;;  %2836 = sst [smem:[#allocation65_spill]] %s2052_s30 }
  0x7b   :  { %657 = vmatpush.msra.mxu1 %v365_v41  ;;  %681 = vmatpush.msra.mxu2 %v166_v42  ;;  %v348_v41 = vld [vmem:[#allocation7 + $0x718] sm:$0xff]  ;;  %v197_v42 = vld [vmem:[#allocation7 + $0x260] sm:$0xff]  ;;  %s2146_s30 = sld [smem:[#allocation10 + $0x9]] }
  0x7c   :  { %700 = vmatpush.msra.mxu3 %v336_v43  ;;  %639 = vmatpush.msra.mxu0 %v185_v44  ;;  %v367_v43 = vld [vmem:[#allocation7 + $0x7b0] sm:$0xff]  ;;  %v168_v44 = vld [vmem:[#allocation7 + $0x178] sm:$0xff] }
  0x7d   :  { %658 = vmatpush.msra.mxu1 %v355_v46  ;;  %682 = vmatpush.msra.mxu2 %v156_v47  ;;  %v338_v46 = vld [vmem:[#allocation7 + $0x6c8] sm:$0xff]  ;;  %v187_v47 = vld [vmem:[#allocation7 + $0x210] sm:$0xff] }
  0x7e   :  { %701 = vmatpush.msra.mxu3 %v326_v48  ;;  %640 = vmatpush.msra.mxu0 %v175_v49  ;;  %v357_v48 = vld [vmem:[#allocation7 + $0x760] sm:$0xff]  ;;  %v158_v49 = vld [vmem:[#allocation7 + $0x128] sm:$0xff]  ;;  %2835 = sst [smem:[#allocation64_spill]] %s2046_s2 }
  0x7f   :  { %659 = vmatpush.msra.mxu1 %v345_v50  ;;  %683 = vmatpush.msra.mxu2 %v146_v51  ;;  %v328_v50 = vld [vmem:[#allocation7 + $0x678] sm:$0xff]  ;;  %v177_v51 = vld [vmem:[#allocation7 + $0x1c0] sm:$0xff] }
  0x80   :  { %702 = vmatpush.msra.mxu3 %v316_v52  ;;  %641 = vmatpush.msra.mxu0 %v165_v53  ;;  %v347_v52 = vld [vmem:[#allocation7 + $0x710] sm:$0xff]  ;;  %v148_v53 = vld [vmem:[#allocation7 + $0xd8] sm:$0xff] }
  0x81   :  { %660 = vmatpush.msra.mxu1 %v335_v54  ;;  %684 = vmatpush.msra.mxu2 %v136_v55  ;;  %v318_v54 = vld [vmem:[#allocation7 + $0x628] sm:$0xff]  ;;  %v167_v55 = vld [vmem:[#allocation7 + $0x170] sm:$0xff] }
  0x82   :  { %703 = vmatpush.msra.mxu3 %v306_v56  ;;  %642 = vmatpush.msra.mxu0 %v155_v57  ;;  %v337_v56 = vld [vmem:[#allocation7 + $0x6c0] sm:$0xff]  ;;  %v138_v57 = vld [vmem:[#allocation7 + $0x88] sm:$0xff] }
  0x83   :  { %661 = vmatpush.msra.mxu1 %v325_v58  ;;  %685 = vmatpush.msra.mxu2 %v126_v59  ;;  %v308_v58 = vld [vmem:[#allocation7 + $0x5d8] sm:$0xff]  ;;  %v157_v59 = vld [vmem:[#allocation7 + $0x120] sm:$0xff] }
  0x84   :  { %704 = vmatpush.msra.mxu3 %v296_v60  ;;  %643 = vmatpush.msra.mxu0 %v145_v62  ;;  %v327_v60 = vld [vmem:[#allocation7 + $0x670] sm:$0xff]  ;;  %v298_v62 = vld [vmem:[#allocation7 + $0x588] sm:$0xff] }
  0x85   :  { %750 = vmatpush.msrb.mxu2 %v278_v61  ;;  %662 = vmatpush.msra.mxu1 %v315_v63  ;;  %v128_v61 = vld [vmem:[#allocation7 + $0x38] sm:$0xff] }
  0x86   :  { %705 = vmatpush.msra.mxu3 %v286_v0  ;;  %644 = vmatpush.msra.mxu0 %v135_v3  ;;  %v280_v63 = vld [vmem:[#allocation7 + $0x4f8] sm:$0xff]  ;;  %v147_v0 = vld [vmem:[#allocation7 + $0xd0] sm:$0xff]  ;;  %v270_v3 = vld [vmem:[#allocation7 + $0x4a8] sm:$0xff] }
  0x87   :  { %751 = vmatpush.msrb.mxu2 %v268_v1  ;;  %663 = vmatpush.msra.mxu1 %v305_v4  ;;  %v317_v1 = vld [vmem:[#allocation7 + $0x620] sm:$0xff]  ;;  %v440_v4 = vld [vmem:[#allocation7 + $0x9f8] sm:$0xff] }
  0x88   :  { %770 = vmatpush.msrb.mxu3 %v438_v2  ;;  %645 = vmatpush.msra.mxu0 %v125_v7  ;;  %v288_v2 = vld [vmem:[#allocation7 + $0x538] sm:$0xff] }
  0x89   :  { %752 = vmatpush.msrb.mxu2 %v258_v5  ;;  %664 = vmatpush.msra.mxu1 %v295_v8  ;;  %v137_v5 = vld [vmem:[#allocation7 + $0x80] sm:$0xff]  ;;  %v260_v7 = vld [vmem:[#allocation7 + $0x458] sm:$0xff]  ;;  %v430_v8 = vld [vmem:[#allocation7 + $0x9a8] sm:$0xff] }
  0x8a   :  { %771 = vmatpush.msrb.mxu3 %v428_v6  ;;  %710 = vmatpush.msrb.mxu0 %v277_v9  ;;  %v307_v6 = vld [vmem:[#allocation7 + $0x5d0] sm:$0xff] }
  0x8b   :  { %753 = vmatpush.msrb.mxu2 %v248_v10  ;;  %665 = vmatpush.msra.mxu1 %v285_v12  ;;  %v127_v9 = vld [vmem:[#allocation7 + $0x30] sm:$0xff]  ;;  %v297_v10 = vld [vmem:[#allocation7 + $0x580] sm:$0xff]  ;;  %v420_v12 = vld [vmem:[#allocation7 + $0x958] sm:$0xff] }
  0x8c   :  { %772 = vmatpush.msrb.mxu3 %v418_v11  ;;  %711 = vmatpush.msrb.mxu0 %v267_v13  ;;  %v250_v11 = vld [vmem:[#allocation7 + $0x408] sm:$0xff]  ;;  %v287_v13 = vld [vmem:[#allocation7 + $0x530] sm:$0xff] }
  0x8d   :  { %730 = vmatpush.msrb.mxu1 %v437_v14  ;;  %754 = vmatpush.msrb.mxu2 %v238_v15  ;;  %v279_v14 = vld [vmem:[#allocation7 + $0x4f0] sm:$0xff]  ;;  %v240_v15 = vld [vmem:[#allocation7 + $0x3b8] sm:$0xff] }
  0x8e   :  { %773 = vmatpush.msrb.mxu3 %v408_v16  ;;  %712 = vmatpush.msrb.mxu0 %v257_v17  ;;  %v410_v16 = vld [vmem:[#allocation7 + $0x908] sm:$0xff]  ;;  %v269_v17 = vld [vmem:[#allocation7 + $0x4a0] sm:$0xff] }
  0x8f   :  { %731 = vmatpush.msrb.mxu1 %v427_v18  ;;  %755 = vmatpush.msrb.mxu2 %v228_v19  ;;  %v439_v18 = vld [vmem:[#allocation7 + $0x9f0] sm:$0xff]  ;;  %v230_v19 = vld [vmem:[#allocation7 + $0x368] sm:$0xff] }
  0x90   :  { %774 = vmatpush.msrb.mxu3 %v398_v20  ;;  %713 = vmatpush.msrb.mxu0 %v247_v21  ;;  %v400_v20 = vld [vmem:[#allocation7 + $0x8b8] sm:$0xff]  ;;  %v259_v21 = vld [vmem:[#allocation7 + $0x450] sm:$0xff] }
  0x91   :  { %732 = vmatpush.msrb.mxu1 %v417_v22  ;;  %756 = vmatpush.msrb.mxu2 %v218_v23  ;;  %v429_v22 = vld [vmem:[#allocation7 + $0x9a0] sm:$0xff]  ;;  %v220_v23 = vld [vmem:[#allocation7 + $0x318] sm:$0xff] }
  0x92   :  { %775 = vmatpush.msrb.mxu3 %v388_v24  ;;  %714 = vmatpush.msrb.mxu0 %v237_v25  ;;  %v390_v24 = vld [vmem:[#allocation7 + $0x868] sm:$0xff]  ;;  %v249_v25 = vld [vmem:[#allocation7 + $0x400] sm:$0xff] }
  0x93   :  { %733 = vmatpush.msrb.mxu1 %v407_v26  ;;  %757 = vmatpush.msrb.mxu2 %v208_v27  ;;  %v419_v26 = vld [vmem:[#allocation7 + $0x950] sm:$0xff]  ;;  %v210_v27 = vld [vmem:[#allocation7 + $0x2c8] sm:$0xff] }
  0x94   :  { %776 = vmatpush.msrb.mxu3 %v378_v28  ;;  %715 = vmatpush.msrb.mxu0 %v227_v29  ;;  %v380_v28 = vld [vmem:[#allocation7 + $0x818] sm:$0xff]  ;;  %v239_v29 = vld [vmem:[#allocation7 + $0x3b0] sm:$0xff] }
  0x95   :  { %734 = vmatpush.msrb.mxu1 %v397_v30  ;;  %758 = vmatpush.msrb.mxu2 %v198_v31  ;;  %v409_v30 = vld [vmem:[#allocation7 + $0x900] sm:$0xff]  ;;  %v200_v31 = vld [vmem:[#allocation7 + $0x278] sm:$0xff] }
  0x96   :  { %777 = vmatpush.msrb.mxu3 %v368_v32  ;;  %716 = vmatpush.msrb.mxu0 %v217_v33  ;;  %v370_v32 = vld [vmem:[#allocation7 + $0x7c8] sm:$0xff]  ;;  %v229_v33 = vld [vmem:[#allocation7 + $0x360] sm:$0xff] }
  0x97   :  { %735 = vmatpush.msrb.mxu1 %v387_v34  ;;  %759 = vmatpush.msrb.mxu2 %v188_v35  ;;  %v399_v34 = vld [vmem:[#allocation7 + $0x8b0] sm:$0xff]  ;;  %v190_v35 = vld [vmem:[#allocation7 + $0x228] sm:$0xff] }
  0x98   :  { %778 = vmatpush.msrb.mxu3 %v358_v36  ;;  %717 = vmatpush.msrb.mxu0 %v207_v37  ;;  %v360_v36 = vld [vmem:[#allocation7 + $0x778] sm:$0xff]  ;;  %v219_v37 = vld [vmem:[#allocation7 + $0x310] sm:$0xff] }
  0x99   :  { %736 = vmatpush.msrb.mxu1 %v377_v38  ;;  %760 = vmatpush.msrb.mxu2 %v178_v39  ;;  %v389_v38 = vld [vmem:[#allocation7 + $0x860] sm:$0xff]  ;;  %v180_v39 = vld [vmem:[#allocation7 + $0x1d8] sm:$0xff] }
  0x9a   :  { %779 = vmatpush.msrb.mxu3 %v348_v41  ;;  %718 = vmatpush.msrb.mxu0 %v197_v42  ;;  %v350_v41 = vld [vmem:[#allocation7 + $0x728] sm:$0xff]  ;;  %v209_v42 = vld [vmem:[#allocation7 + $0x2c0] sm:$0xff] }
  0x9b   :  { %737 = vmatpush.msrb.mxu1 %v367_v43  ;;  %761 = vmatpush.msrb.mxu2 %v168_v44  ;;  %v379_v43 = vld [vmem:[#allocation7 + $0x810] sm:$0xff]  ;;  %v170_v44 = vld [vmem:[#allocation7 + $0x188] sm:$0xff] }
  0x9c   :  { %780 = vmatpush.msrb.mxu3 %v338_v46  ;;  %686 = vmatmul.f32.vlgmr.msra.gmra.mxu2 %v1915_v40  ;;  %v340_v46 = vld [vmem:[#allocation7 + $0x6d8] sm:$0xff] }
  0x9d   :  { %719 = vmatpush.msrb.mxu0 %v187_v47  ;;  %738 = vmatpush.msrb.mxu1 %v357_v48  ;;  %v199_v47 = vld [vmem:[#allocation7 + $0x270] sm:$0xff]  ;;  %v369_v48 = vld [vmem:[#allocation7 + $0x7c0] sm:$0xff] }
  0x9e   :  { %762 = vmatpush.msrb.mxu2 %v158_v49  ;;  %781 = vmatpush.msrb.mxu3 %v328_v50  ;;  %v160_v49 = vld [vmem:[#allocation7 + $0x138] sm:$0xff]  ;;  %v330_v50 = vld [vmem:[#allocation7 + $0x688] sm:$0xff] }
  0x9f   :  { %706 = vmatmul.f32.vlgmr.msra.gmra.mxu3 %v1917_v45  ;;  %720 = vmatpush.msrb.mxu0 %v177_v51  ;;  %v189_v51 = vld [vmem:[#allocation7 + $0x220] sm:$0xff] }
  0xa0   :  { %739 = vmatpush.msrb.mxu1 %v347_v52  ;;  %763 = vmatpush.msrb.mxu2 %v148_v53  ;;  %v359_v52 = vld [vmem:[#allocation7 + $0x770] sm:$0xff]  ;;  %v150_v53 = vld [vmem:[#allocation7 + $0xe8] sm:$0xff] }
  0xa1   :  { %782 = vmatpush.msrb.mxu3 %v318_v54  ;;  %721 = vmatpush.msrb.mxu0 %v167_v55  ;;  %v320_v54 = vld [vmem:[#allocation7 + $0x638] sm:$0xff]  ;;  %v179_v55 = vld [vmem:[#allocation7 + $0x1d0] sm:$0xff] }
  0xa2   :  { %740 = vmatpush.msrb.mxu1 %v337_v56  ;;  %764 = vmatpush.msrb.mxu2 %v138_v57  ;;  %v349_v56 = vld [vmem:[#allocation7 + $0x720] sm:$0xff]  ;;  %v140_v57 = vld [vmem:[#allocation7 + $0x98] sm:$0xff] }
  0xa3   :  { %783 = vmatpush.msrb.mxu3 %v308_v58  ;;  %646 = vmatmul.f32.vlgmr.msra.gmra.mxu0 %v1915_v40  ;;  %v310_v58 = vld [vmem:[#allocation7 + $0x5e8] sm:$0xff] }
  0xa4   :  { %722 = vmatpush.msrb.mxu0 %v157_v59  ;;  %741 = vmatpush.msrb.mxu1 %v327_v60  ;;  %v169_v59 = vld [vmem:[#allocation7 + $0x180] sm:$0xff]  ;;  %v339_v60 = vld [vmem:[#allocation7 + $0x6d0] sm:$0xff] }
  0xa5   :  { %765 = vmatpush.msrb.mxu2 %v128_v61  ;;  %784 = vmatpush.msrb.mxu3 %v298_v62  ;;  %v130_v61 = vld [vmem:[#allocation7 + $0x48] sm:$0xff]  ;;  %v300_v62 = vld [vmem:[#allocation7 + $0x598] sm:$0xff] }
  0xa6   :  { %666 = vmatmul.f32.vlgmr.msra.gmra.mxu1 %v1917_v45  ;;  %766 = vmatmul.f32.vlgmr.msrb.gmra.mxu2 %v1915_v40 }
  0xa7   :  { %830 = vmatpush.msra.mxu2 %v280_v63  ;;  %723 = vmatpush.msrb.mxu0 %v147_v0  ;;  %v159_v63 = vld [vmem:[#allocation7 + $0x130] sm:$0xff]  ;;  %v329_v0 = vld [vmem:[#allocation7 + $0x680] sm:$0xff] }
  0xa8   :  { %742 = vmatpush.msrb.mxu1 %v317_v1  ;;  %785 = vmatpush.msrb.mxu3 %v288_v2  ;;  %v290_v1 = vld [vmem:[#allocation7 + $0x548] sm:$0xff]  ;;  %v149_v2 = vld [vmem:[#allocation7 + $0xe0] sm:$0xff] }
  0xa9   :  { %786 = vmatmul.f32.vlgmr.msrb.gmra.mxu3 %v1917_v45  ;;  %831 = vmatpush.msra.mxu2 %v270_v3  ;;  %v319_v3 = vld [vmem:[#allocation7 + $0x630] sm:$0xff] }
  0xaa   :  { %850 = vmatpush.msra.mxu3 %v440_v4  ;;  %724 = vmatpush.msrb.mxu0 %v137_v5  ;;  %v139_v4 = vld [vmem:[#allocation7 + $0x90] sm:$0xff]  ;;  %v309_v5 = vld [vmem:[#allocation7 + $0x5e0] sm:$0xff] }
  0xab   :  { %743 = vmatpush.msrb.mxu1 %v307_v6  ;;  %832 = vmatpush.msra.mxu2 %v260_v7  ;;  %v129_v6 = vld [vmem:[#allocation7 + $0x40] sm:$0xff]  ;;  %v299_v7 = vld [vmem:[#allocation7 + $0x590] sm:$0xff] }
  0xac   :  { %851 = vmatpush.msra.mxu3 %v430_v8  ;;  %725 = vmatpush.msrb.mxu0 %v127_v9  ;;  %v289_v8 = vld [vmem:[#allocation7 + $0x540] sm:$0xff] }
  0xad   :  { %744 = vmatpush.msrb.mxu1 %v297_v10  ;;  %726 = vmatmul.f32.vlgmr.msrb.gmra.mxu0 %v1915_v40 }
  0xae   :  { %833 = vmatpush.msra.mxu2 %v250_v11  ;;  %852 = vmatpush.msra.mxu3 %v420_v12  ;;  %v1969_v11 = vld [vmem:[#allocation9] sm:$0xff] }
  0xaf   :  { %745 = vmatpush.msrb.mxu1 %v287_v13  ;;  %790 = vmatpush.msra.mxu0 %v279_v14  ;;  %v451_v12 = vperm.slane %v1969_v11, 1  ;;  %v452_v13 = vperm.slane %v1969_v11, 2  ;;  %v453_v14 = vperm.slane %v1969_v11, 3 }
  0xb0   :  { %746 = vmatmul.f32.vlgmr.msrb.gmra.mxu1 %v1917_v45  ;;  %834 = vmatpush.msra.mxu2 %v240_v15 }
  0xb1   :  { %853 = vmatpush.msra.mxu3 %v410_v16  ;;  %791 = vmatpush.msra.mxu0 %v269_v17  ;;  %v450_v17 = vperm.slane %v1969_v11, 0 }
  0xb2   :  { %810 = vmatpush.msra.mxu1 %v439_v18  ;;  %835 = vmatpush.msra.mxu2 %v230_v19 }
  0xb3   :  { %854 = vmatpush.msra.mxu3 %v400_v20  ;;  %792 = vmatpush.msra.mxu0 %v259_v21 }
  0xb4   :  { %811 = vmatpush.msra.mxu1 %v429_v22  ;;  %836 = vmatpush.msra.mxu2 %v220_v23 }
  0xb5   :  { %855 = vmatpush.msra.mxu3 %v390_v24  ;;  %793 = vmatpush.msra.mxu0 %v249_v25 }
  0xb6   :  { %812 = vmatpush.msra.mxu1 %v419_v26  ;;  %837 = vmatpush.msra.mxu2 %v210_v27 }
  0xb7   :  { %856 = vmatpush.msra.mxu3 %v380_v28  ;;  %794 = vmatpush.msra.mxu0 %v239_v29 }
  0xb8   :  { %813 = vmatpush.msra.mxu1 %v409_v30  ;;  %838 = vmatpush.msra.mxu2 %v200_v31 }
  0xb9   :  { %857 = vmatpush.msra.mxu3 %v370_v32  ;;  %795 = vmatpush.msra.mxu0 %v229_v33  ;;  %v454_v32 = vperm.slane %v1969_v11, 4 }
  0xba   :  { %814 = vmatpush.msra.mxu1 %v399_v34  ;;  %839 = vmatpush.msra.mxu2 %v190_v35 }
  0xbb   :  { %858 = vmatpush.msra.mxu3 %v360_v36  ;;  %796 = vmatpush.msra.mxu0 %v219_v37  ;;  %v455_v36 = vperm.slane %v1969_v11, 5 }
  0xbc   :  { %815 = vmatpush.msra.mxu1 %v389_v38  ;;  %840 = vmatpush.msra.mxu2 %v180_v39 }
  0xbd   :  { %859 = vmatpush.msra.mxu3 %v350_v41  ;;  %797 = vmatpush.msra.mxu0 %v209_v42 }
  0xbe   :  { %816 = vmatpush.msra.mxu1 %v379_v43  ;;  %841 = vmatpush.msra.mxu2 %v170_v44 }
  0xbf   :  { %860 = vmatpush.msra.mxu3 %v340_v46  ;;  %798 = vmatpush.msra.mxu0 %v199_v47  ;;  %v2028_v47 = vld [vmem:[#allocation9 + $0x8] sm:$0x3] }
  0xc0   :  { %817 = vmatpush.msra.mxu1 %v369_v48  ;;  %842 = vmatpush.msra.mxu2 %v160_v49 }
  0xc1   :  { %861 = vmatpush.msra.mxu3 %v330_v50  ;;  %799 = vmatpush.msra.mxu0 %v189_v51  ;;  %v456_v51 = vperm.slane %v1969_v11, 6 }
  0xc2   :  { %818 = vmatpush.msra.mxu1 %v359_v52  ;;  %843 = vmatpush.msra.mxu2 %v150_v53  ;;  %v457_v52 = vperm.slane %v1969_v11, 7  ;;  %v459_v53 = vperm.slane %v2028_v47, 1  ;;  %v1152_v11 = vstv %s1975_s21  ;;  %s2078_s21 = sld [smem:[#allocation10 + $0x302]] }
  0xc3   :  { %862 = vmatpush.msra.mxu3 %v320_v54  ;;  %800 = vmatpush.msra.mxu0 %v179_v55  ;;  %v1068_v54 = vstv %s1939_s5  ;;  %v1070_v55 = vstv %s1943_s8  ;;  %s2166_s8 = sld [smem:[#allocation10 + $0x89]] }
  0xc4   :  { %819 = vmatpush.msra.mxu1 %v349_v56  ;;  %844 = vmatpush.msra.mxu2 %v140_v57  ;;  %v1118_v56 = vstv %s1941_s6  ;;  %v1076_v57 = vstv %s1945_s9  ;;  %s2058_s6 = sld [smem:[#allocation10 + $0x286]] }
  0xc5   :  { %863 = vmatpush.msra.mxu3 %v310_v58  ;;  %801 = vmatpush.msra.mxu0 %v169_v59  ;;  %v1081_v58 = vstv %s1947_s10  ;;  %v1086_v59 = vstv %s1949_s11  ;;  %s2854_s11 = sld [smem:[#allocation56_spill]] }
  0xc6   :  { %820 = vmatpush.msra.mxu1 %v339_v60  ;;  %845 = vmatpush.msra.mxu2 %v130_v61  ;;  %v1091_v60 = vstv %s1951_s12  ;;  %v1096_v61 = vstv %s1953_s13  ;;  %s2842_s13 = sld [smem:[#allocation46_spill]] }
  0xc7   :  { %864 = vmatpush.msra.mxu3 %v300_v62  ;;  %846 = vmatmul.f32.vlgmr.msra.gmra.mxu2 %v1915_v40  ;;  %v1101_v62 = vstv %s1955_s14  ;;  %s2062_s14 = sld [smem:[#allocation10 + $0x287]] }
  0xc8   :  { %802 = vmatpush.msra.mxu0 %v159_v63  ;;  %821 = vmatpush.msra.mxu1 %v329_v0  ;;  %v1120_v63 = vstv %s1957_s1  ;;  %v1123_v0 = vstv %s1959_s15  ;;  %s2067_s15 = sld [smem:[#allocation10 + $0x300]] }
  0xc9   :  { %865 = vmatpush.msra.mxu3 %v290_v1  ;;  %s2072_s12 = sld [smem:[#allocation10 + $0x301]] }
  0xca   :  { %866 = vmatmul.f32.vlgmr.msra.gmra.mxu3 %v1917_v45  ;;  %803 = vmatpush.msra.mxu0 %v149_v2  ;;  %2837 = sst [smem:[#allocation66_spill]] %s2058_s6 }
  0xcb   :  { %822 = vmatpush.msra.mxu1 %v319_v3  ;;  %s2855_s10 = sld [smem:[#allocation57_spill]] }
  0xcc   :  { %804 = vmatpush.msra.mxu0 %v139_v4  ;;  %v1126_v4 = vstv %s1961_s16  ;;  %s2841_s16 = sld [smem:[#allocation45_spill]] }
  0xcd   :  { %823 = vmatpush.msra.mxu1 %v309_v5  ;;  %v1129_v5 = vstv %s1963_s17  ;;  %2838 = sst [smem:[#allocation67_spill]] %s2062_s14 }
  0xce   :  { %805 = vmatpush.msra.mxu0 %v129_v6  ;;  %2839 = sst [smem:[#allocation68_spill]] %s2067_s15 }
  0xcf   :  { %824 = vmatpush.msra.mxu1 %v299_v7  ;;  %806 = vmatmul.f32.vlgmr.msra.gmra.mxu0 %v1915_v40  ;;  %s2840_s17 = sld [smem:[#allocation43_spill]] }
  0xd0   :  { %2843 = sst [smem:[#allocation45_spill]] %s2072_s12 }
  0xd1   :  { %825 = vmatpush.msra.mxu1 %v289_v8  ;;  %v1132_v8 = vstv %s1965_s18  ;;  %s2846_s18 = sld [smem:[#allocation51_spill]] }
  0xd2   :  { %826 = vmatmul.f32.vlgmr.msra.gmra.mxu1 %v1917_v45  ;;  %s2857_s1 = sld [smem:[#allocation58_spill]] }
  0xd3   :  { %2865 = sst [smem:[#allocation56_spill]] %s2146_s30 }
  0xd4   :  { %s2189_s14 = sld [smem:[#allocation11]] }
  0xd5   :  { %s2273_s5 = sld [smem:[#allocation10 + $0x289]] }
  0xd6   :  { %s2284_s9 = sld [smem:[#allocation10 + $0x309]] }
  0xd7   :  { %s2327_s6 = sld [smem:[#allocation10 + $0x383]] }
  0xd8   :  { %s2332_s15 = sld [smem:[#allocation10 + $0x384]] }
  0xda   :  { %v527_v45 = vpop.f32.mrf.mxu2 }
  0xdb   :  { %v487_v40 = vpop.f32.mrf.mxu0  ;;  %v528_v18 = vadd.f32 %v527_v45, %v451_v12  ;;  %v1138_v45 = vstv %s1971_s19  ;;  %v1182_v12 = vstv %s1993_s27  ;;  %s2845_s19 = sld [smem:[#allocation49_spill]] }
  0xdc   :  { %v488_v23 = vadd.f32 %v487_v40, %v450_v17  ;;  %v1135_v40 = vstv %s1967_s4  ;;  %s2844_s4 = sld [smem:[#allocation48_spill]]  ;;  %v1164_v17 = vstv %s1987_s24 }
  0xdd   :  { %v547_v10 = vpop.f32.mrf.mxu3  ;;  %2847 = sst [smem:[#allocation48_spill]] %s2078_s21 }
  0xde   :  { %v507_v9 = vpop.f32.mrf.mxu1  ;;  %v548_v24 = vadd.f32 %v547_v10, %v528_v18  ;;  %v1150_v10 = vstv %s1973_s20  ;;  %s2848_s27 = sld [smem:[#allocation52_spill]] }
  0xdf   :  { %v508_v27 = vadd.f32 %v507_v9, %v488_v23  ;;  %s2081_s20 = sld [smem:[#allocation10 + $0x303]] }
  0xe0   :  { %v871_v28 = vmax.f32 %v548_v24, 0.0  ;;  %v1170_v24 = vstv %s2840_s17  ;;  %s2086_s24 = sld [smem:[#allocation10 + $0x304]] }
  0xe1   :  { %v870_v31 = vmax.f32 %v508_v27, 0.0  ;;  %s2858_s17 = sld [smem:[#allocation59_spill]] }
  0xe2   :  { %v890_v33 = vrot.slane %v871_v28, 7  ;;  %v1190_v28 = vstv %s1999_s29  ;;  %s2097_s29 = sld [smem:[#allocation10 + $0x306]] }
  0xe3   :  { %s2197_s21 = sld [smem:[#allocation10 + $0x109]] }
  0xe4   :  { %v899_v39 = vsel %vm898_vm0, %v870_v31, %v890_v33  ;;  %v1202_v33 = vstv %s2846_s18  ;;  %s2903_s18 = sld [smem:[#allocation45_spill]] }
  0xe5   :  { %2849 = sst [smem:[#allocation49_spill]] %s2081_s20 }
  0xe6   :  { %v567_v15 = vpop.f32.mrf.mxu0  ;;  %v607_v16 = vpop.f32.mrf.mxu2  ;;  %2851 = sst [smem:[#allocation51_spill]] %s2086_s24 }
  0xe7   :  { %v568_v19 = vadd.f32 %v567_v15, %v452_v13  ;;  %v608_v20 = vadd.f32 %v607_v16, %v453_v14  ;;  %v1155_v14 = vstv %s1980_s22  ;;  %v1158_v15 = vstv %s1982_s0  ;;  %s2850_s0 = sld [smem:[#allocation53_spill]] }
  0xe8   :  { %v627_v22 = vpop.f32.mrf.mxu3  ;;  %v1161_v16 = vstv %s1984_s23  ;;  %s2852_s23 = sld [smem:[#allocation54_spill]] }
  0xe9   :  { %v587_v21 = vpop.f32.mrf.mxu1  ;;  %v628_v26 = vadd.f32 %v627_v22, %v608_v20  ;;  %v1167_v22 = vstv %s1989_s25  ;;  %s2853_s22 = sld [smem:[#allocation55_spill]] }
  0xea   :  { %v588_v25 = vadd.f32 %v587_v21, %v568_v19  ;;  %s2091_s25 = sld [smem:[#allocation10 + $0x305]] }
  0xeb   :  { %v873_v30 = vmax.f32 %v628_v26, 0.0  ;;  %v1187_v26 = vstv %s2842_s13  ;;  %s2859_s13 = sld [smem:[#allocation61_spill]] }
  0xec   :  { %v872_v29 = vmax.f32 %v588_v25, 0.0  ;;  %v1184_v25 = vstv %s2841_s16  ;;  %s2211_s20 = sld [smem:[#allocation10 + $0x188]] }
  0xed   :  { %v892_v35 = vrot.slane %v873_v30, 5  ;;  %v1196_v30 = vstv %s2845_s19  ;;  %s2228_s24 = sld [smem:[#allocation11 + $0x2]] }
  0xee   :  { %v891_v34 = vrot.slane %v872_v29, 6  ;;  %v1193_v29 = vstv %s2844_s4  ;;  %s2259_s16 = sld [smem:[#allocation10 + $0x209]] }
  0xef   :  { %s2301_s4 = sld [smem:[#allocation10 + $0x381]] }
  0xf0   :  { %v901_v41 = vsel %vm900_vm1, %v891_v34, %v892_v35  ;;  %2856 = sst [smem:[#allocation52_spill]] %s2091_s25  ;;  %v1214_v34 = vstv %s2848_s27 }
  0xf1   :  { %v2032_v48 = vsel %vm902_vm2, %v899_v39, %v901_v41  ;;  %v458_v41 = vperm.slane %v2028_v47, 0  ;;  %s2313_s19 = sld [smem:[#allocation11 + $0x4]] }
  0xf2   :  { %s2318_s27 = sld [smem:[#allocation10 + $0x382]] }
  0xf3   :  { %2884 = sst [smem:[#allocation61_spill]] %s2228_s24 }
  0xf4   :  { %s2908_s12 = sld [smem:[#allocation48_spill]] }
 0x11f   :  { %v687_v37 = vpop.f32.mrf.mxu2 }
 0x120   :  { %v647_v38 = vpop.f32.mrf.mxu0  ;;  %v688_v43 = vadd.f32 %v687_v37, %v455_v36  ;;  %v1216_v37 = vstv %s2850_s0  ;;  %s2358_s0 = sld [smem:[#allocation10 + $0x386]] }
 0x121   :  { %v648_v42 = vadd.f32 %v647_v38, %v454_v32  ;;  %v1199_v32 = vstv %s2005_s7  ;;  %v1246_v38 = vstv %s2030_s26  ;;  %s2102_s7 = sld [smem:[#allocation10 + $0x307]] }
 0x122   :  { %v707_v44 = vpop.f32.mrf.mxu3  ;;  %s2111_s26 = sld [smem:[#allocation10 + $0x380]] }
 0x123   :  { %v667_v46 = vpop.f32.mrf.mxu1  ;;  %v708_v50 = vadd.f32 %v707_v44, %v688_v43  ;;  %v1222_v43 = vstv %s2853_s22  ;;  %v1225_v44 = vstv %s2854_s11  ;;  %s2912_s11 = sld [smem:[#allocation49_spill]] }
 0x124   :  { %v668_v49 = vadd.f32 %v667_v46, %v648_v42  ;;  %v1219_v42 = vstv %s2852_s23  ;;  %v1228_v46 = vstv %s2855_s10  ;;  %s2902_s10 = sld [smem:[#allocation68_spill]] }
 0x125   :  { %v875_v2 = vmax.f32 %v708_v50, 0.0  ;;  %v1234_v50 = vstv %s2858_s17  ;;  %s2126_s17 = sld [smem:[#allocation10 + $0x8]] }
 0x126   :  { %v874_v1 = vmax.f32 %v668_v49, 0.0  ;;  %v1231_v49 = vstv %s2857_s1  ;;  %s2343_s1 = sld [smem:[#allocation11 + $0x5]] }
 0x127   :  { %v894_v19 = vrot.slane %v875_v2, 3  ;;  %2860 = sst [smem:[#allocation53_spill]] %s2102_s7 }
 0x128   :  { %v893_v18 = vrot.slane %v874_v1, 4  ;;  %2861 = sst [smem:[#allocation54_spill]] %s2111_s26  ;;  %v1251_v1 = vstv %s2038_s3 }
 0x129   :  { %v767_v3 = vpop.f32.mrf.mxu2  ;;  %s2234_s7 = sld [smem:[#allocation10 + $0x189]] }
 0x12a   :  { %v727_v6 = vpop.f32.mrf.mxu0  ;;  %v768_v7 = vadd.f32 %v767_v3, %v457_v52  ;;  %v905_v35 = vsel %vm904_vm3, %v893_v18, %v894_v19  ;;  %v1248_v52 = vstv %s2859_s13  ;;  %v916_v18 = vlaneseq  ;;  %s2281_s3 = sld [smem:[#allocation10 + $0x308]] }
 0x12b   :  { %v728_v9 = vadd.f32 %v727_v6, %v456_v51  ;;  %v1254_v6 = vstv %s2041_s28  ;;  %2862 = sst [smem:[#allocation55_spill]] %s2126_s17  ;;  %v1292_v19 = vstv %s2091_s25 }
 0x12c   :  { %v787_v13 = vpop.f32.mrf.mxu3  ;;  %s2177_s25 = sld [smem:[#allocation10 + $0x108]]  ;;  %vm2297_vm7 = vcmp.lt.s32.totalorder %v916_v18, 256 }
 0x12d   :  { %v747_v20 = vpop.f32.mrf.mxu1  ;;  %v788_v21 = vadd.f32 %v787_v13, %v768_v7  ;;  %v1257_v7 = vstv %s2046_s2  ;;  %s2158_s2 = sld [smem:[#allocation10 + $0x88]] }
 0x12e   :  { %v748_v23 = vadd.f32 %v747_v20, %v728_v9  ;;  %s2217_s28 = sld [smem:[#allocation11 + $0x1]] }
 0x12f   :  { %v877_v27 = vmax.f32 %v788_v21, 0.0  ;;  %s2353_s13 = sld [smem:[#allocation10 + $0x385]] }
 0x130   :  { %v876_v31 = vmax.f32 %v748_v23, 0.0  ;;  %2901 = sst [smem:[#allocation24_spill]] %s2358_s0 }
 0x131   :  { %v896_v36 = vrot.slane %v877_v27, 1  ;;  %s2905_s23 = sld [smem:[#allocation66_spill]] }
 0x132   :  { %v895_v39 = vrot.slane %v876_v31, 2  ;;  %s2369_s0 = sld [smem:[#allocation10 + $0x388]] }
 0x133   :  { %s2387_s22 = sld [smem:[#allocation10 + $0x400]] }
 0x134   :  { %v907_v51 = vsel %vm906_vm4, %v895_v39, %v896_v36  ;;  %2882 = sst [smem:[#allocation57_spill]] %s2217_s28 }
 0x135   :  { %v909_v3 = vsel %vm908_vm5, %v905_v35, %v907_v51  ;;  %2899 = sst [smem:[#allocation29_spill]] %s2353_s13 }
 0x136   :  { %v2122_v13 = vsel %vm910_vm6, %v2032_v48, %v909_v3  ;;  %s2377_s13 = sld [smem:[#allocation10 + $0x389]] }
 0x137   :  { %v2129_v21 = vrot.slane %v2122_v13, 1  ;;  %v2132_v23 = vrot.slane %v2122_v13, 2  ;;  %v2137_v48 = vrot.slane %v2122_v13, 3  ;;  %v2140_v35 = vrot.slane %v2122_v13, 4 }
 0x138   :  { %v2143_v36 = vrot.slane %v2122_v13, 5  ;;  %v1069_v51 = vmul.f32 %v1068_v54, %v2122_v13  ;;  %v2155_v31 = vrot.slane %v2122_v13, 6  ;;  %v2161_v39 = vrot.slane %v2122_v13, 7  ;;  %2907 = sst [smem:[#allocation25_spill]] %s2369_s0 }
 0x139   :  { %v1074_v3 = vmul.f32 %v2129_v21, %v1070_v55  ;;  %v1079_v27 = vmul.f32 %v2132_v23, %v1076_v57  ;;  %v1119_v20 = vmul.f32 %v1118_v56, %v2122_v13  ;;  %v1121_v2 = vmul.f32 %v1120_v63, %v2129_v21  ;;  %s2918_s0 = sld [smem:[#allocation53_spill]] }
 0x13a   :  { %v1084_v54 = vmul.f32 %v2137_v48, %v1081_v58  ;;  %v1094_v57 = vmul.f32 %v2143_v36, %v1091_v60  ;;  %v1099_v63 = vmul.f32 %v2155_v31, %v1096_v61  ;;  %v1124_v58 = vmul.f32 %v1123_v0, %v2132_v23 }
 0x13b   :  { %v1075_v55 = vadd.f32 %v1074_v3, %v1069_v51  ;;  %v1089_v51 = vmul.f32 %v2140_v35, %v1086_v59  ;;  %v1310_v3 = vstv %s2111_s26  ;;  %v1122_v9 = vadd.f32 %v1121_v2, %v1119_v20  ;;  %s2268_s26 = sld [smem:[#allocation10 + $0x288]] }
 0x13c   :  { %v1104_v59 = vmul.f32 %v2161_v39, %v1101_v62  ;;  %v1127_v60 = vmul.f32 %v1126_v4, %v2137_v48  ;;  %v1153_v61 = vmul.f32 %v1152_v11, %v2129_v21  ;;  %v1106_v0 = vstv %s2126_s17  ;;  %s2251_s17 = sld [smem:[#allocation11 + $0x3]] }
 0x13d   :  { %v1080_v56 = vadd.f32 %v1079_v27, %v1075_v55  ;;  %v1151_v27 = vmul.f32 %v1150_v10, %v2122_v13  ;;  %v1125_v20 = vadd.f32 %v1124_v58, %v1122_v9  ;;  %v1130_v62 = vmul.f32 %v1129_v5, %v2140_v35  ;;  %2909 = sst [smem:[#allocation26_spill]] %s2377_s13 }
 0x13e   :  { %v1133_v4 = vmul.f32 %v1132_v8, %v2143_v36  ;;  %v1136_v10 = vmul.f32 %v1135_v40, %v2155_v31  ;;  %v1109_v55 = vstv %s2146_s30  ;;  %v1159_v40 = vmul.f32 %v1158_v15, %v2137_v48  ;;  %s2245_s30 = sld [smem:[#allocation10 + $0x208]] }
 0x13f   :  { %v1085_v2 = vadd.f32 %v1084_v54, %v1080_v56  ;;  %v1154_v11 = vadd.f32 %v1153_v61, %v1151_v27  ;;  %v1156_v54 = vmul.f32 %v1155_v14, %v2132_v23  ;;  %v1128_v5 = vadd.f32 %v1127_v60, %v1125_v20  ;;  %s2915_s13 = sld [smem:[#allocation51_spill]] }
 0x140   :  { %v1139_v56 = vmul.f32 %v1138_v45, %v2161_v39  ;;  %v1183_v14 = vmul.f32 %v1182_v12, %v2122_v13  ;;  %v1141_v45 = vstv %s2158_s2  ;;  %v1162_v27 = vmul.f32 %v1161_v16, %v2140_v35  ;;  %s2927_s2 = sld [smem:[#allocation29_spill]] }
 0x141   :  { %v1090_v9 = vadd.f32 %v1089_v51, %v1085_v2  ;;  %v1157_v8 = vadd.f32 %v1156_v54, %v1154_v11  ;;  %v1185_v51 = vmul.f32 %v1184_v25, %v2129_v21  ;;  %v1131_v60 = vadd.f32 %v1130_v62, %v1128_v5 }
 0x142   :  { %2890 = sst [smem:[#allocation23_spill]] %s2251_s17  ;;  %v1165_v12 = vmul.f32 %v1164_v17, %v2143_v36  ;;  %v1188_v25 = vmul.f32 %v1187_v26, %v2132_v23  ;;  %v1168_v16 = vmul.f32 %v1167_v22, %v2155_v31  ;;  %v1171_v20 = vmul.f32 %v1170_v24, %v2161_v39 }
 0x143   :  { %v1095_v58 = vadd.f32 %v1094_v57, %v1090_v9  ;;  %v1160_v15 = vadd.f32 %v1159_v40, %v1157_v8  ;;  %v1186_v61 = vadd.f32 %v1185_v51, %v1183_v14  ;;  %v1115_v57 = vstv %s2189_s14  ;;  %s2513_s14 = sld [smem:[#allocation10 + $0x486]] }
 0x144   :  { %v1134_v2 = vadd.f32 %v1133_v4, %v1131_v60  ;;  %v1191_v26 = vmul.f32 %v1190_v28, %v2137_v48  ;;  %v1144_v4 = vstv %s2166_s8  ;;  %v1173_v54 = vstv %s2177_s25  ;;  %s2478_s25 = sld [smem:[#allocation10 + $0x480]] }
 0x145   :  { %v1100_v17 = vadd.f32 %v1099_v63, %v1095_v58  ;;  %v1163_v62 = vadd.f32 %v1162_v27, %v1160_v15  ;;  %v1189_v11 = vadd.f32 %v1188_v25, %v1186_v61  ;;  %v1176_v22 = vstv %s2197_s21  ;;  %s2636_s8 = sld [smem:[#allocation13 + $0x86]] }
 0x146   :  { %v1194_v24 = vmul.f32 %v1193_v29, %v2140_v35  ;;  %v1137_v63 = vadd.f32 %v1136_v10, %v1134_v2  ;;  %v1147_v9 = vstv %s2217_s28  ;;  %v1179_v28 = vstv %s2228_s24  ;;  %s2904_s24 = sld [smem:[#allocation65_spill]] }
 0x147   :  { %v1166_v5 = vadd.f32 %v1165_v12, %v1163_v62  ;;  %v1192_v8 = vadd.f32 %v1191_v26, %v1189_v11  ;;  %v1197_v40 = vmul.f32 %v1196_v30, %v2143_v36  ;;  %v1215_v14 = vmul.f32 %v1214_v34, %v2122_v13  ;;  %s2906_s28 = sld [smem:[#allocation67_spill]] }
 0x148   :  { %v1217_v29 = vmul.f32 %v1216_v37, %v2129_v21  ;;  %v2303_v58 = vadd.f32 %v1104_v59, %v1100_v17  ;;  %v1200_v34 = vmul.f32 %v1199_v32, %v2155_v31  ;;  %v1203_v37 = vmul.f32 %v1202_v33, %v2161_v39  ;;  %s2646_s21 = sld [smem:[#allocation13 + $0x87]] }
 0x149   :  { %v1195_v30 = vadd.f32 %v1194_v24, %v1192_v8  ;;  %v1169_v18 = vadd.f32 %v1168_v16, %v1166_v5  ;;  %v1220_v59 = vmul.f32 %v1219_v42, %v2132_v23  ;;  %v2320_v32 = vadd.f32 %v1139_v56, %v1137_v63 }
 0x14a   :  { %v847_v51 = vpop.f32.mrf.mxu2  ;;  %v1218_v27 = vadd.f32 %v1217_v29, %v1215_v14  ;;  %v1205_v33 = vstv %s2211_s20  ;;  %v1208_v12 = vstv %s2234_s7  ;;  %v1211_v61 = vstv %s2251_s17  ;;  %s2364_s17 = sld [smem:[#allocation10 + $0x387]] }
 0x14b   :  { %v848_v60 = vadd.f32 %v847_v51, %v459_v53  ;;  %v1198_v2 = vadd.f32 %v1197_v40, %v1195_v30  ;;  %v1223_v16 = vmul.f32 %v1222_v43, %v2137_v48  ;;  %v1226_v56 = vmul.f32 %v1225_v44, %v2140_v35  ;;  %s2487_s20 = sld [smem:[#allocation10 + $0x481]] }
 0x14c   :  { %v807_v15 = vpop.f32.mrf.mxu0  ;;  %v1221_v42 = vadd.f32 %v1220_v59, %v1218_v27  ;;  %v1247_v47 = vmul.f32 %v1246_v38, %v2122_v13  ;;  %v2345_v11 = vadd.f32 %v1171_v20, %v1169_v18  ;;  %v1229_v26 = vmul.f32 %v1228_v46, %v2143_v36  ;;  %s2495_s7 = sld [smem:[#allocation10 + $0x483]] }
 0x14d   :  { %v808_v53 = vadd.f32 %v807_v15, %v458_v41  ;;  %v867_v25 = vpop.f32.mrf.mxu3  ;;  %v1249_v41 = vmul.f32 %v1248_v52, %v2129_v21  ;;  %v1232_v44 = vmul.f32 %v1231_v49, %v2155_v31  ;;  %v1252_v20 = vmul.f32 %v1251_v1, %v2132_v23 }
 0x14e   :  { %v868_v17 = vadd.f32 %v867_v25, %v848_v60  ;;  %v1224_v43 = vadd.f32 %v1223_v16, %v1221_v42  ;;  %v1201_v63 = vadd.f32 %v1200_v34, %v1198_v2  ;;  %v1235_v46 = vmul.f32 %v1234_v50, %v2161_v39 }
 0x14f   :  { %v827_v62 = vpop.f32.mrf.mxu1  ;;  %v1250_v52 = vadd.f32 %v1249_v41, %v1247_v47  ;;  %v1237_v49 = vstv %s2245_s30  ;;  %v1255_v1 = vmul.f32 %v1254_v6, %v2137_v48  ;;  %v1240_v51 = vstv %s2259_s16  ;;  %s2928_s30 = sld [smem:[#allocation24_spill]] }
 0x150   :  { %v879_v24 = vmax.f32 %v868_v17, 0.0  ;;  %v828_v38 = vadd.f32 %v827_v62, %v808_v53  ;;  %v1227_v5 = vadd.f32 %v1226_v56, %v1224_v43  ;;  %v1243_v30 = vstv %s2313_s19  ;;  %s2508_s16 = sld [smem:[#allocation10 + $0x485]] }
 0x151   :  { %v1253_v14 = vadd.f32 %v1252_v20, %v1250_v52  ;;  %v1258_v50 = vmul.f32 %v1257_v7, %v2140_v35  ;;  %v2910_v18 = vstv %s2902_s10  ;;  %v2911_v27 = vstv %s2903_s18  ;;  %s2398_s10 = sld [smem:[#allocation10 + $0x401]] }
 0x152   :  { %v897_v8 = vrot.slane %v879_v24, 7  ;;  %v878_v40 = vmax.f32 %v828_v38, 0.0  ;;  %v1230_v29 = vadd.f32 %v1229_v26, %v1227_v5  ;;  %v1279_v6 = vmul.f32 %v2910_v18, %v2122_v13  ;;  %s2523_s18 = sld [smem:[#allocation11 + $0x7]] }
 0x153   :  { %v1256_v60 = vadd.f32 %v1255_v1, %v1253_v14  ;;  %v1281_v59 = vmul.f32 %v2911_v27, %v2129_v21  ;;  %v1204_v7 = vadd.f32 %v1203_v37, %v1201_v63  ;;  %v2913_v15 = vstv %s2904_s24  ;;  %s2403_s24 = sld [smem:[#allocation10 + $0x402]] }
 0x154   :  { %v912_v34 = vsel %vm898_vm0, %v878_v40, %v897_v8  ;;  %v1261_v53 = vmul.f32 %v2913_v15, %v2143_v36  ;;  %v2914_v25 = vstv %s2905_s23  ;;  %v2916_v42 = vstv %s2906_s28  ;;  %s2411_s23 = sld [smem:[#allocation10 + $0x403]] }
 0x155   :  { %920 = vst.msk [vmem:[#allocation2 + $0x8] sm:$0x3] %vm2297_vm7, %v912_v34  ;;  %v1264_v2 = vmul.f32 %v2914_v25, %v2155_v31  ;;  %v1267_v16 = vmul.f32 %v2916_v42, %v2161_v39  ;;  %v1233_v10 = vadd.f32 %v1232_v44, %v1230_v29  ;;  %v1259_v17 = vadd.f32 %v1258_v50, %v1256_v60  ;;  %s2932_s28 = sld [smem:[#allocation25_spill]] }
 0x156   :  { %v1282_v56 = vadd.f32 %v1281_v59, %v1279_v6  ;;  %v2919_v37 = vstv %s2908_s12  ;;  %v1269_v41 = vstv %s2268_s26  ;;  %v1272_v62 = vstv %s2273_s5  ;;  %s2417_s12 = sld [smem:[#allocation10 + $0x404]] }
 0x157   :  { %v1284_v47 = vmul.f32 %v2919_v37, %v2132_v23  ;;  %v1275_v43 = vstv %s2343_s1  ;;  %v2920_v26 = vstv %s2912_s11  ;;  %v1262_v44 = vadd.f32 %v1261_v53, %v1259_v17  ;;  %s2429_s26 = sld [smem:[#allocation10 + $0x405]] }
 0x158   :  { %v1287_v24 = vmul.f32 %v2920_v26, %v2137_v48  ;;  %v2922_v52 = vstv %s2915_s13  ;;  %v1312_v63 = vstv %s2301_s4  ;;  %v1293_v5 = vmul.f32 %v1292_v19, %v2143_v36  ;;  %s2434_s4 = sld [smem:[#allocation10 + $0x406]] }
 0x159   :  { %v1285_v38 = vadd.f32 %v1284_v47, %v1282_v56  ;;  %v1290_v20 = vmul.f32 %v2922_v52, %v2140_v35  ;;  %v2923_v8 = vstv %s2097_s29  ;;  %v2924_v14 = vstv %s2918_s0  ;;  %s2442_s29 = sld [smem:[#allocation10 + $0x407]] }
 0x15a   :  { %v1296_v40 = vmul.f32 %v2923_v8, %v2155_v31  ;;  %v1299_v1 = vmul.f32 %v2924_v14, %v2161_v39  ;;  %v1313_v29 = vmul.f32 %v1312_v63, %v2129_v21  ;;  %v1236_v50 = vadd.f32 %v1235_v46, %v1233_v10  ;;  %s2448_s0 = sld [smem:[#allocation10 + $0x408]] }
 0x15b   :  { %v1265_v34 = vadd.f32 %v1264_v2, %v1262_v44  ;;  %v1288_v60 = vadd.f32 %v1287_v24, %v1285_v38  ;;  %v1311_v18 = vmul.f32 %v1310_v3, %v2122_v13  ;;  %v1301_v19 = vstv %s2281_s3  ;;  %s2459_s3 = sld [smem:[#allocation11 + $0x6]] }
 0x15c   :  { %v1304_v6 = vstv %s2284_s9  ;;  %v1315_v27 = vstv %s2318_s27  ;;  %v1318_v59 = vstv %s2327_s6  ;;  %v2440_v15 = vld [vmem:[#allocation2 + $0x8] sm:$0x3]  ;;  %v1321_v2 = vstv %s2332_s15  ;;  %s2468_s9 = sld [smem:[#allocation10 + $0x409]] }
 0x15d   :  { %v1268_v46 = vadd.f32 %v1267_v16, %v1265_v34  ;;  %v1291_v53 = vadd.f32 %v1290_v20, %v1288_v60  ;;  %v1314_v25 = vadd.f32 %v1313_v29, %v1311_v18  ;;  %v2446_v3 = vrot.slane %v2440_v15, 1  ;;  %s2492_s6 = sld [smem:[#allocation10 + $0x482]] }
 0x15e   :  { %v1107_v42 = vmul.f32 %v1106_v0, %v2440_v15  ;;  %v1142_v10 = vmul.f32 %v1141_v45, %v2440_v15  ;;  %v1174_v16 = vmul.f32 %v1173_v54, %v2440_v15  ;;  %v1206_v17 = vmul.f32 %v1205_v33, %v2440_v15  ;;  %s2501_s15 = sld [smem:[#allocation10 + $0x484]] }
 0x15f   :  { %v1238_v56 = vmul.f32 %v1237_v49, %v2440_v15  ;;  %v1270_v37 = vmul.f32 %v1269_v41, %v2440_v15  ;;  %v1294_v47 = vadd.f32 %v1293_v5, %v1291_v53  ;;  %v1113_v45 = vmul.f32 %v2446_v3, %v1109_v55  ;;  %s2519_s11 = sld [smem:[#allocation10 + $0x487]] }
 0x160   :  { %v1108_v0 = vadd.f32 %v1107_v42, %v2303_v58  ;;  %v1143_v54 = vadd.f32 %v1142_v10, %v2320_v32  ;;  %v1145_v26 = vmul.f32 %v1144_v4, %v2446_v3  ;;  %v1175_v33 = vadd.f32 %v1174_v16, %v2345_v11  ;;  %s2533_s5 = sld [smem:[#allocation10 + $0x488]] }
 0x161   :  { %v1177_v49 = vmul.f32 %v1176_v22, %v2446_v3  ;;  %v1207_v41 = vadd.f32 %v1206_v17, %v1204_v7  ;;  %v1209_v58 = vmul.f32 %v1208_v12, %v2446_v3  ;;  %v1239_v32 = vadd.f32 %v1238_v56, %v1236_v50  ;;  %s2933_s13 = sld [smem:[#allocation26_spill]] }
 0x162   :  { %v1114_v55 = vadd.f32 %v1113_v45, %v1108_v0  ;;  %v1146_v4 = vadd.f32 %v1145_v26, %v1143_v54  ;;  %v1241_v24 = vmul.f32 %v1240_v51, %v2446_v3  ;;  %v1271_v7 = vadd.f32 %v1270_v37, %v1268_v46  ;;  %s2550_s19 = sld [smem:[#allocation11 + $0x9]] }
 0x163   :  { %v1178_v22 = vadd.f32 %v1177_v49, %v1175_v33  ;;  %v1210_v11 = vadd.f32 %v1209_v58, %v1207_v41  ;;  %v1273_v44 = vmul.f32 %v1272_v62, %v2446_v3  ;;  %v1297_v38 = vadd.f32 %v1296_v40, %v1294_v47  ;;  %s2560_s1 = sld [smem:[#allocation13 + $0x1]] }
 0x164   :  { %v1116_v12 = vadd.f32 %v1115_v57, %v1114_v55  ;;  %v1324_v52 = vstv %s2927_s2  ;;  %v1327_v20 = vstv %s2928_s30  ;;  %v1148_v51 = vadd.f32 %v1147_v9, %v1146_v4  ;;  %s2545_s2 = sld [smem:[#allocation11 + $0x8]] }
 0x165   :  { %v1180_v63 = vadd.f32 %v1179_v28, %v1178_v22  ;;  %v1242_v5 = vadd.f32 %v1241_v24, %v1239_v32  ;;  %v1302_v8 = vmul.f32 %v1301_v19, %v2440_v15  ;;  %v1212_v62 = vadd.f32 %v1211_v61, %v1210_v11  ;;  %s2621_s30 = sld [smem:[#allocation13 + $0x83]] }
 0x166   :  { %v1274_v14 = vadd.f32 %v1273_v44, %v1271_v7  ;;  %v1300_v29 = vadd.f32 %v1299_v1, %v1297_v38  ;;  %v1316_v57 = vmul.f32 %v1315_v27, %v2132_v23  ;;  %v1305_v40 = vmul.f32 %v1304_v6, %v2446_v3  ;;  %s2630_s27 = sld [smem:[#allocation13 + $0x85]] }
 0x167   :  { %v1307_v9 = vstv %s2459_s3  ;;  %v1319_v28 = vmul.f32 %v1318_v59, %v2137_v48  ;;  %v1322_v50 = vmul.f32 %v1321_v2, %v2140_v35  ;;  %v1325_v1 = vmul.f32 %v1324_v52, %v2143_v36  ;;  %s2539_s3 = sld [smem:[#allocation10 + $0x489]] }
 0x168   :  { %v1303_v34 = vadd.f32 %v1302_v8, %v1300_v29  ;;  %v1317_v61 = vadd.f32 %v1316_v57, %v1314_v25  ;;  %v1328_v60 = vmul.f32 %v1327_v20, %v2155_v31  ;;  %v2525_v18 = vmax.f32 %v1116_v12, 0.0 }
 0x169   :  { %v2527_v19 = vmax.f32 %v1148_v51, 0.0  ;;  %v2529_v6 = vmax.f32 %v1180_v63, 0.0  ;;  %v1244_v27 = vadd.f32 %v1243_v30, %v1242_v5  ;;  %v2535_v59 = vmax.f32 %v1212_v62, 0.0 }
 0x16a   :  { %v1276_v46 = vadd.f32 %v1275_v43, %v1274_v14  ;;  %v1306_v53 = vadd.f32 %v1305_v40, %v1303_v34  ;;  %v1320_v25 = vadd.f32 %v1319_v28, %v1317_v61  ;;  %v1330_v2 = vstv %s2364_s17  ;;  %s2556_s17 = sld [smem:[#allocation13]] }
 0x16b   :  { %v1342_v42 = vstv %s2387_s22  ;;  %v1344_v10 = vstv %s2398_s10  ;;  %v1347_v16 = vstv %s2403_s24  ;;  %v1333_v17 = vstv %s2932_s28  ;;  %s2567_s22 = sld [smem:[#allocation13 + $0x2]] }
 0x16c   :  { %v1323_v30 = vadd.f32 %v1322_v50, %v1320_v25  ;;  %v1343_v56 = vmul.f32 %v1342_v42, %v2122_v13  ;;  %v1345_v43 = vmul.f32 %v1344_v10, %v2129_v21  ;;  %v2552_v37 = vmax.f32 %v1244_v27, 0.0  ;;  %s2571_s10 = sld [smem:[#allocation13 + $0x3]] }
 0x16d   :  { %v1308_v47 = vadd.f32 %v1307_v9, %v1306_v53  ;;  %v1336_v0 = vstv %s2933_s13  ;;  %v1350_v45 = vstv %s2411_s23  ;;  %v1348_v33 = vmul.f32 %v1347_v16, %v2132_v23  ;;  %s2578_s24 = sld [smem:[#allocation13 + $0x4]] }
 0x16e   :  { %v1326_v54 = vadd.f32 %v1325_v1, %v1323_v30  ;;  %v1346_v26 = vadd.f32 %v1345_v43, %v1343_v56  ;;  %v1353_v49 = vstv %s2417_s12  ;;  %v2562_v41 = vmax.f32 %v1276_v46, 0.0  ;;  %s2582_s23 = sld [smem:[#allocation13 + $0x5]] }
 0x16f   :  { %v1331_v58 = vmul.f32 %v1330_v2, %v2161_v39  ;;  %v1334_v55 = vmul.f32 %v1333_v17, %v2440_v15  ;;  %v1356_v4 = vstv %s2429_s26  ;;  %v1337_v24 = vmul.f32 %v1336_v0, %v2446_v3  ;;  %s2588_s12 = sld [smem:[#allocation13 + $0x6]] }
 0x170   :  { %v1329_v32 = vadd.f32 %v1328_v60, %v1326_v54  ;;  %v1349_v22 = vadd.f32 %v1348_v33, %v1346_v26  ;;  %v1351_v11 = vmul.f32 %v1350_v45, %v2137_v48  ;;  %v2573_v7 = vmax.f32 %v1308_v47, 0.0  ;;  %s2592_s26 = sld [smem:[#allocation13 + $0x7]] }
 0x171   :  { %v1339_v44 = vstv %s2523_s18  ;;  %v1354_v12 = vmul.f32 %v1353_v49, %v2140_v35  ;;  %v1374_v38 = vstv %s2478_s25  ;;  %v1357_v51 = vmul.f32 %v1356_v4, %v2143_v36  ;;  %s2617_s25 = sld [smem:[#allocation13 + $0x82]] }
 0x172   :  { %v1332_v52 = vadd.f32 %v1331_v58, %v1329_v32  ;;  %v1352_v20 = vadd.f32 %v1351_v11, %v1349_v22  ;;  %v1359_v63 = vstv %s2434_s4  ;;  %v1362_v5 = vstv %s2442_s29  ;;  %s2598_s4 = sld [smem:[#allocation13 + $0x8]] }
 0x173   :  { %v1365_v8 = vstv %s2448_s0  ;;  %v1376_v62 = vstv %s2487_s20  ;;  %v1379_v14 = vstv %s2492_s6  ;;  %v1375_v40 = vmul.f32 %v1374_v38, %v2122_v13  ;;  %s2602_s29 = sld [smem:[#allocation13 + $0x9]] }
 0x174   :  { %v1335_v29 = vadd.f32 %v1334_v55, %v1332_v52  ;;  %v1355_v57 = vadd.f32 %v1354_v12, %v1352_v20  ;;  %v1377_v9 = vmul.f32 %v1376_v62, %v2129_v21  ;;  %v1360_v28 = vmul.f32 %v1359_v63, %v2155_v31  ;;  %s2607_s0 = sld [smem:[#allocation13 + $0x80]] }
 0x175   :  { %v1368_v50 = vstv %s2468_s9  ;;  %v1380_v34 = vmul.f32 %v1379_v14, %v2132_v23  ;;  %v1382_v61 = vstv %s2495_s7  ;;  %v1385_v27 = vstv %s2501_s15  ;;  %s2611_s9 = sld [smem:[#allocation13 + $0x81]] }
 0x176   :  { %v1358_v1 = vadd.f32 %v1357_v51, %v1355_v57  ;;  %v1378_v60 = vadd.f32 %v1377_v9, %v1375_v40  ;;  %v1388_v46 = vstv %s2508_s16  ;;  %v1338_v13 = vadd.f32 %v1337_v24, %v1335_v29  ;;  %s2626_s20 = sld [smem:[#allocation13 + $0x84]] }
 0x177   :  { %v1363_v21 = vmul.f32 %v1362_v5, %v2161_v39  ;;  %v1366_v53 = vmul.f32 %v1365_v8, %v2440_v15  ;;  %v1371_v25 = vstv %s2545_s2  ;;  %v1369_v2 = vmul.f32 %v1368_v50, %v2446_v3  ;;  %s2639_s6 = sld [smem:[#allocation14]] }
 0x178   :  { %v1361_v23 = vadd.f32 %v1360_v28, %v1358_v1  ;;  %v1381_v42 = vadd.f32 %v1380_v34, %v1378_v60  ;;  %v1383_v10 = vmul.f32 %v1382_v61, %v2137_v48  ;;  %v1386_v16 = vmul.f32 %v1385_v27, %v2140_v35  ;;  %s2649_s7 = sld [smem:[#allocation13 + $0x100]] }
 0x179   :  { %v1389_v30 = vmul.f32 %v1388_v46, %v2143_v36  ;;  %v1391_v17 = vstv %s2513_s14  ;;  %v1406_v56 = vstv %s2556_s17  ;;  %v1394_v0 = vstv %s2519_s11  ;;  %s2655_s15 = sld [smem:[#allocation13 + $0x101]] }
 0x17a   :  { %v1364_v43 = vadd.f32 %v1363_v21, %v1361_v23  ;;  %v1384_v47 = vadd.f32 %v1383_v10, %v1381_v42  ;;  %v1397_v45 = vstv %s2533_s5  ;;  %v1340_v54 = vadd.f32 %v1339_v44, %v1338_v13  ;;  %s2659_s16 = sld [smem:[#allocation13 + $0x102]] }
 0x17b   :  { %v1407_v48 = vmul.f32 %v1406_v56, %v2525_v18  ;;  %v1408_v26 = vstv %s2560_s1  ;;  %v1411_v33 = vstv %s2567_s22  ;;  %v1414_v58 = vstv %s2571_s10  ;;  %s2665_s14 = sld [smem:[#allocation13 + $0x103]]  ;;  %s1851_s22 = smov [#allocation16]  }
 0x17c   :  { %v1367_v35 = vadd.f32 %v1366_v53, %v1364_v43  ;;  %v1387_v36 = vadd.f32 %v1386_v16, %v1384_v47  ;;  %v1409_v49 = vmul.f32 %v1408_v26, %v2527_v19  ;;  %v1392_v55 = vmul.f32 %v1391_v17, %v2155_v31  ;;  %s2670_s11 = sld [smem:[#allocation13 + $0x88]]  ;;  %s1510_s10 = sshll.u32 %s1851_s22, 4  ;;  %s1511_s10 = int_to_ptr.vmem [resolvable:$true] %s1510_s10 }
 0x17d   :  { %v1395_v4 = vmul.f32 %v1394_v0, %v2161_v39  ;;  %v1398_v32 = vmul.f32 %v1397_v45, %v2440_v15  ;;  %v1400_v24 = vstv %s2539_s3  ;;  %v1412_v12 = vmul.f32 %v1411_v33, %v2529_v6  ;;  %s2675_s18 = sld [smem:[#allocation13 + $0x104]] }
 0x17e   :  { %v1370_v22 = vadd.f32 %v1369_v2, %v1367_v35  ;;  %v1390_v11 = vadd.f32 %v1389_v30, %v1387_v36  ;;  %v1410_v44 = vadd.f32 %v1409_v49, %v1407_v48  ;;  %v2641_v38 = vmax.f32 %v1340_v54, 0.0  ;;  %s2679_s28 = sld [smem:[#allocation13 + $0x89]] }
 0x17f   :  { %v1403_v31 = vstv %s2550_s19  ;;  %v1415_v39 = vmul.f32 %v1414_v58, %v2535_v59  ;;  %v1417_v15 = vstv %s2578_s24  ;;  %v1420_v63 = vstv %s2582_s23  ;;  %s2684_s5 = sld [smem:[#allocation13 + $0x105]] }
 0x180   :  { %v1372_v52 = vadd.f32 %v1371_v25, %v1370_v22  ;;  %v1393_v20 = vadd.f32 %v1392_v55, %v1390_v11  ;;  %v1413_v51 = vadd.f32 %v1412_v12, %v1410_v44  ;;  %v1401_v5 = vmul.f32 %v1400_v24, %v2446_v3  ;;  %s2691_s13 = sld [smem:[#allocation13 + $0x106]] }
 0x181   :  { %v1423_v8 = vstv %s2588_s12  ;;  %v1438_v62 = vstv %s2607_s0  ;;  %v1440_v14 = vstv %s2611_s9  ;;  %v1418_v40 = vmul.f32 %v1417_v15, %v2552_v37  ;;  %s2695_s3 = sld [smem:[#allocation13 + $0x107]] }
 0x182   :  { %v1396_v29 = vadd.f32 %v1395_v4, %v1393_v20  ;;  %v1416_v57 = vadd.f32 %v1415_v39, %v1413_v51  ;;  %v1439_v9 = vmul.f32 %v1438_v62, %v2525_v18  ;;  %v1421_v28 = vmul.f32 %v1420_v63, %v2562_v41  ;;  %s2700_s2 = sld [smem:[#allocation14 + $0x1]] }
 0x183   :  { %v1426_v50 = vstv %s2592_s26  ;;  %v1441_v3 = vmul.f32 %v1440_v14, %v2527_v19  ;;  %v1443_v34 = vstv %s2617_s25  ;;  %v2667_v61 = vmax.f32 %v1372_v52, 0.0  ;;  %s2706_s19 = sld [smem:[#allocation13 + $0x108]] }
 0x184   :  { %v1399_v1 = vadd.f32 %v1398_v32, %v1396_v29  ;;  %v1419_v60 = vadd.f32 %v1418_v40, %v1416_v57  ;;  %v1446_v27 = vstv %s2621_s30  ;;  %v1424_v46 = vmul.f32 %v1423_v8, %v2573_v7  ;;  %s1667_s17 = sld [smem:[#allocation13 + $0x109]] }
 0x185   :  { %v1429_v13 = vstv %s2598_s4  ;;  %v1442_v21 = vadd.f32 %v1441_v3, %v1439_v9  ;;  %v1444_v53 = vmul.f32 %v1443_v34, %v2529_v6  ;;  %v1427_v2 = vmul.f32 %v1426_v50, %v2641_v38  ;;  %s1669_s1 = sld [smem:[#allocation14 + $0x2]]  ;;  %s1852_s4 = smov 16  }
 0x186   :  { %v1402_v25 = vadd.f32 %v1401_v5, %v1399_v1  ;;  %v1422_v23 = vadd.f32 %v1421_v28, %v1419_v60  ;;  %v1449_v42 = vstv %s2626_s20  ;;  %v1432_v10 = vstv %s2602_s29  ;;  %s2934_s12 = sld [smem:[#allocation69_spill]]  ;;  %s1853_s29 = smov 1  }
 0x187   :  { %v1435_v16 = vstv %s2639_s6  ;;  %v1445_v30 = vadd.f32 %v1444_v53, %v1442_v21  ;;  %v1447_v17 = vmul.f32 %v1446_v27, %v2535_v59  ;;  %v1430_v47 = vmul.f32 %v1429_v13, %v2667_v61 }
 0x188   :  { %v1404_v56 = vadd.f32 %v1403_v31, %v1402_v25  ;;  %v1425_v43 = vadd.f32 %v1424_v46, %v1422_v23  ;;  %v1452_v0 = vstv %s2630_s27  ;;  %v1450_v54 = vmul.f32 %v1449_v42, %v2552_v37 }
 0x189   :  { %v1448_v45 = vadd.f32 %v1447_v17, %v1445_v30  ;;  %v1455_v48 = vstv %s2636_s8  ;;  %v1472_v26 = vstv %s2649_s7  ;;  %v1474_v49 = vstv %s2655_s15 }
 0x18a   :  { %v1405_v33 = vmax.f32 %v1404_v56, 0.0  ;;  %v1428_v35 = vadd.f32 %v1427_v2, %v1425_v43  ;;  %v1473_v36 = vmul.f32 %v1472_v26, %v2525_v18  ;;  %v1453_v55 = vmul.f32 %v1452_v0, %v2562_v41 }
 0x18b   :  { %v1451_v58 = vadd.f32 %v1450_v54, %v1448_v45  ;;  %v1475_v4 = vmul.f32 %v1474_v49, %v2527_v19  ;;  %v1477_v32 = vstv %s2659_s16  ;;  %v1458_v11 = vstv %s2646_s21 }
 0x18c   :  { %v1431_v24 = vadd.f32 %v1430_v47, %v1428_v35  ;;  %v1433_v22 = vmul.f32 %v1432_v10, %v1405_v33  ;;  %v1480_v44 = vstv %s2665_s14  ;;  %v1456_v12 = vmul.f32 %v1455_v48, %v2573_v7  ;;  %s1512_s26 = sshll.u32 %s2934_s12, 4  ;;  %s1513_s26 = int_to_ptr.hbm [resolvable:$true] %s1512_s26 }
 0x18d   :  { %v1454_v18 = vadd.f32 %v1453_v55, %v1451_v58  ;;  %v1476_v31 = vadd.f32 %v1475_v4, %v1473_v36  ;;  %v1478_v39 = vmul.f32 %v1477_v32, %v2529_v6  ;;  %v1461_v19 = vstv %s2670_s11 }
 0x18e   :  { %v1434_v15 = vadd.f32 %v1433_v22, %v1431_v24  ;;  %v1483_v52 = vstv %s2675_s18  ;;  %v1459_v51 = vmul.f32 %v1458_v11, %v2641_v38  ;;  %v1481_v5 = vmul.f32 %v1480_v44, %v2535_v59 }
 0x18f   :  { %v1457_v20 = vadd.f32 %v1456_v12, %v1454_v18  ;;  %v1479_v63 = vadd.f32 %v1478_v39, %v1476_v31  ;;  %v1464_v62 = vstv %s2679_s28  ;;  %v1486_v14 = vstv %s2684_s5 }
 0x190   :  { %v1436_v8 = vadd.f32 %v1435_v16, %v1434_v15  ;;  %v1462_v6 = vmul.f32 %v1461_v19, %v2667_v61  ;;  %v1484_v40 = vmul.f32 %v1483_v52, %v2552_v37  ;;  %v1489_v9 = vstv %s2691_s13 }
 0x191   :  { %v1460_v29 = vadd.f32 %v1459_v51, %v1457_v20  ;;  %v1482_v57 = vadd.f32 %v1481_v5, %v1479_v63  ;;  %v1465_v50 = vmul.f32 %v1464_v62, %v1405_v33  ;;  %v1487_v59 = vmul.f32 %v1486_v14, %v2562_v41 }
 0x192   :  { %1437 = vst [vmem:[#allocation16] sm:$0x1] %v1436_v8  ;;  %v1467_v34 = vstv %s2700_s2  ;;  %v1492_v1 = vstv %s2695_s3  ;;  %v1490_v46 = vmul.f32 %v1489_v9, %v2573_v7  ;;  %v1495_v13 = vstv %s2706_s19 }
 0x193   :  { %v1463_v28 = vadd.f32 %v1462_v6, %v1460_v29  ;;  %v1485_v3 = vadd.f32 %v1484_v40, %v1482_v57  ;;  %v1493_v25 = vmul.f32 %v1492_v1, %v2641_v38  ;;  %v1498_v37 = vstv %s1667_s17 }
 0x194   :  { %v1496_v2 = vmul.f32 %v1495_v13, %v2667_v61  ;;  %v1499_v10 = vmul.f32 %v1498_v37, %v1405_v33  ;;  %v1501_v41 = vstv %s1669_s1 }
 0x195   :  { %v1466_v60 = vadd.f32 %v1465_v50, %v1463_v28  ;;  %v1488_v27 = vadd.f32 %v1487_v59, %v1485_v3 }
 0x197   :  { %v1468_v21 = vadd.f32 %v1467_v34, %v1466_v60  ;;  %v1491_v53 = vadd.f32 %v1490_v46, %v1488_v27 }
 0x199   :  { %1471 = vst [vmem:[#allocation16 + $0x1] sm:$0x1] %v1468_v21  ;;  %v1494_v23 = vadd.f32 %v1493_v25, %v1491_v53 }
 0x19b   :  { %v1497_v42 = vadd.f32 %v1496_v2, %v1494_v23 }
 0x19d   :  { %v1500_v7 = vadd.f32 %v1499_v10, %v1497_v42 }
 0x19f   :  { %v1502_v16 = vadd.f32 %v1501_v41, %v1500_v7 }
 0x1a1   :  { %1505 = vst [vmem:[#allocation16 + $0x2] sm:$0x1] %v1502_v16 }
 0x1a2   :  { %1518 = dma.vmem_to_hbm [thread:$0]  %s1511_s10, 48, %s1513_s26, [#allocation5], %s1852_s4, %s1852_s4, %s1853_s29  }
 0x1a3   :  { %1838 = dma.done.wait [#allocation5], 48  }
 0x1a4   :  { %1839 = vsyncadd [#allocation5], 4294967248 }
 0x1a5   :  { %1523 = vsyncpa [#allocation4], 1 }
 0x1a6   :  { %1524 = vsyncpa [#allocation8], 1 }
 0x1a7   :  { %1525 = vsyncpa [#allocation5], 1 }
 0x1a8   :  { %1526 = vsyncpa [#allocation6], 1 }
 0x1a9   :  { %1527 = vsyncpa [#allocation12], 1 }
 0x1aa   :  { %1528 = vsyncpa [#allocation15], 1 }

</bundles_post_ra>
